<compile_context>
chip_gen: v7x
topology: tpu7x:2x2x1
jax: 0.10.0
libtpu: 0.0.40
codegen_flags: <defaults>
</compile_context>

<pallas_src>
import numpy as np
import jax
import jax.numpy as jnp
from jax.experimental import pallas as pl
from jax.experimental.pallas import tpu as pltpu

LANE = 128                                        # lane width: inter-layer channel padding
_LAYERS = ((8, 4, 32), (4, 2, 64), (3, 1, 64))    # (kernel, stride, cout) per conv


def _conv_out(n, k, s):
    return (n - k) // s + 1


# ---------------------------------------------------------------------------
# Fused kernel: all three conv layers for ONE image per grid step.
#   p1_ref  : [1, M1, K1]    layer-1 im2col patches of this image (bf16, streamed)
#   w1_ref  : [K1, 128]      layer-1 weights, cout padded to 128 (bf16, resident)
#   b1_ref  : [1, 128]       layer-1 bias (f32)
#   sel2_ref: [16, M2, M1]   layer-2 one-hot gather matrices (bf16)
#   w2_ref  : [16, 128, 128] layer-2 per-offset weight slabs (bf16)
#   b2_ref  : [1, 128]
#   sel3_ref: [9, M3, M2]    layer-3 one-hot gather matrices (bf16)
#   w3_ref  : [9, 128, 64]   layer-3 per-offset weight slabs (final cout = 64)
#   b3_ref  : [1, 64]
#   o_ref   : [1, M3, 64]    final activations (f32)
# ---------------------------------------------------------------------------
def _convnn_kernel(p1_ref, w1_ref, b1_ref,
                   sel2_ref, w2_ref, b2_ref,
                   sel3_ref, w3_ref, b3_ref,
                   o_ref):
    f32, bf16 = jnp.float32, jnp.bfloat16

    # Layer 1: one fused GEMM (+bias+ReLU) on the pre-extracted patch rows.
    a1 = jnp.dot(p1_ref[0], w1_ref[...], preferred_element_type=f32)    # [M1, 128]
    a1 = jnp.maximum(a1 + b1_ref[...], 0.0).astype(bf16)

    # Layers 2 & 3: in-kernel im2col.  For each kernel offset, gather the patch
    # rows from the previous activation with a one-hot matmul (exact: each row
    # has a single 1.0), then contract against that offset's weight slab.
    # Everything stays in VMEM/vregs; accumulation in f32.
    def conv_from(act, sel_ref, w_ref, b_ref):
        m_out, n_out = sel_ref.shape[1], w_ref.shape[2]
        acc = jnp.zeros((m_out, n_out), f32)
        for idx in range(sel_ref.shape[0]):                     # static unroll (<= 16)
            rows = jnp.dot(sel_ref[idx], act,
                           preferred_element_type=f32).astype(bf16)   # exact gather
            acc = acc + jnp.dot(rows, w_ref[idx], preferred_element_type=f32)
        return jnp.maximum(acc + b_ref[...], 0.0)

    a2 = conv_from(a1, sel2_ref, w2_ref, b2_ref).astype(bf16)          # [M2, 128]
    a3 = conv_from(a2, sel3_ref, w3_ref, b3_ref)                       # [M3, 64] f32
    o_ref[0] = a3.astype(o_ref.dtype)


# ---------------------------------------------------------------------------
# Wrapper-side helpers (tiny, one-time layout plumbing)
# ---------------------------------------------------------------------------
def _im2col(x, ksize, stride):
    """[B,H,W,C] -> [B, Ho*Wo, K*K*C] patches (columns ordered (kh, kw, c)),
    built from static strided slices only (no gather)."""
    B, H, W, C = x.shape
    ho, wo = _conv_out(H, ksize, stride), _conv_out(W, ksize, stride)
    cols = []
    for kh in range(ksize):
        for kw in range(ksize):
            cols.append(x[:, kh:kh + (ho - 1) * stride + 1:stride,
                            kw:kw + (wo - 1) * stride + 1:stride, :])
    p = jnp.stack(cols, axis=3)                      # [B, Ho, Wo, K*K, C]
    return p.reshape(B, ho * wo, ksize * ksize * C)


def _selection(h_in, w_in, ksize, stride, dtype):
    """One-hot matrices S[off] ([M_out, M_in]) s.t. S[off] @ act gathers the
    patch rows of kernel offset off = kh*ksize + kw."""
    h_out, w_out = _conv_out(h_in, ksize, stride), _conv_out(w_in, ksize, stride)
    sel = np.zeros((ksize * ksize, h_out * w_out, h_in * w_in), np.float32)
    oh, ow = np.arange(h_out)[:, None], np.arange(w_out)[None, :]
    rows = (oh * w_out + ow).reshape(-1)
    for kh in range(ksize):
        for kw in range(ksize):
            cols = ((oh * stride + kh) * w_in + (ow * stride + kw)).reshape(-1)
            sel[kh * ksize + kw, rows, cols] = 1.0
    return jnp.asarray(sel, dtype), h_out, w_out


def pack_params(params, n_channels, height, width, compute_dtype=jnp.bfloat16):
    """Pre-pack weights/biases + gather one-hots for the fused kernel (done once,
    outside the jitted forward, so the forward has no per-call pad/reshape passes)."""
    (wa, ba), (wb, bb), (wc, bc) = params            # HWIO weights, [Cout] biases
    (k1, s1, c1), (k2, s2, c2), (k3, s3, c3) = _LAYERS

    ho1, wo1 = _conv_out(height, k1, s1), _conv_out(width, k1, s1)

    # layer 1: dense [K1, 128] matrix, cout padded to the lane width.
    w1m = jnp.pad(wa.reshape(k1 * k1 * n_channels, c1),
                  ((0, 0), (0, LANE - c1))).astype(compute_dtype)
    b1r = jnp.pad(ba, (0, LANE - c1)).astype(jnp.float32).reshape(1, LANE)

    # layer 2: gather one-hots + per-offset [128, 128] weight slabs.
    sel2, ho2, wo2 = _selection(ho1, wo1, k2, s2, compute_dtype)
    w2s = jnp.pad(wb.reshape(k2 * k2, c1, c2),
                  ((0, 0), (0, LANE - c1), (0, LANE - c2))).astype(compute_dtype)
    b2r = jnp.pad(bb, (0, LANE - c2)).astype(jnp.float32).reshape(1, LANE)

    # layer 3 (final): cout stays 64 -> only the real output is stored.
    sel3, _, _ = _selection(ho2, wo2, k3, s3, compute_dtype)
    w3s = jnp.pad(wc.reshape(k3 * k3, c2, c3),
                  ((0, 0), (0, LANE - c2), (0, 0))).astype(compute_dtype)
    b3r = bc.astype(jnp.float32).reshape(1, c3)

    return (w1m, b1r, sel2, w2s, b2r, sel3, w3s, b3r)


def convnn_forward(x_nchw, packed):
    """ConvNN forward. x: [B, n_channels, H, W] f32 (NCHW) -> [B, 64, Ho, Wo] f32."""
    w1m, b1r, sel2, w2s, b2r, sel3, w3s, b3r = packed
    (k1, s1, _), (k2, s2, _), (k3, s3, _) = _LAYERS
    B, _, H, W = x_nchw.shape
    ho1, wo1 = _conv_out(H, k1, s1), _conv_out(W, k1, s1)
    ho2, wo2 = _conv_out(ho1, k2, s2), _conv_out(wo1, k2, s2)
    ho3, wo3 = _conv_out(ho2, k3, s3), _conv_out(wo2, k3, s3)
    m1, m3 = ho1 * wo1, ho3 * wo3
    cout = w3s.shape[2]
    kk1 = w1m.shape[0]

    # NHWC + bf16 once; layer-1 im2col from static strided slices.
    x = jnp.transpose(x_nchw, (0, 2, 3, 1)).astype(w1m.dtype)
    p1 = _im2col(x, k1, s1)                           # [B, M1, K1] bf16

    out = pl.pallas_call(
        _convnn_kernel,
        out_shape=jax.ShapeDtypeStruct((B, m3, cout), jnp.float32),
        grid=(B,),
        in_specs=[
            pl.BlockSpec((1, m1, kk1), lambda b: (b, 0, 0)),   # per-image patches (streamed)
            pl.BlockSpec(w1m.shape, lambda b: (0, 0)),         # everything below: VMEM-resident
            pl.BlockSpec(b1r.shape, lambda b: (0, 0)),
            pl.BlockSpec(sel2.shape, lambda b: (0, 0, 0)),
            pl.BlockSpec(w2s.shape, lambda b: (0, 0, 0)),
            pl.BlockSpec(b2r.shape, lambda b: (0, 0)),
            pl.BlockSpec(sel3.shape, lambda b: (0, 0, 0)),
            pl.BlockSpec(w3s.shape, lambda b: (0, 0, 0)),
            pl.BlockSpec(b3r.shape, lambda b: (0, 0)),
        ],
        out_specs=pl.BlockSpec((1, m3, cout), lambda b: (b, 0, 0)),
        # Working set ~1 MiB << default scoped VMEM on v5e/v6e/v7x: no override.
        compiler_params=pltpu.CompilerParams(dimension_semantics=("parallel",)),
    )(p1, w1m, b1r, sel2, w2s, b2r, sel3, w3s, b3r)

    return jnp.transpose(out.reshape(B, ho3, wo3, cout), (0, 3, 1, 2))


# ---------------------------------------------------------------------------
# Reference + parameter init
# ---------------------------------------------------------------------------
def convnn_reference(x_nchw, params, compute_dtype=jnp.bfloat16):
    """Pure-JAX reference with the same rounding points (bf16 matmul operands,
    f32 accumulation / bias / ReLU) as the Pallas kernel."""
    x = jnp.transpose(x_nchw, (0, 2, 3, 1)).astype(jnp.float32)
    for (w, b), (_, s, _) in zip(params, _LAYERS):
        y = jax.lax.conv_general_dilated(
            x.astype(compute_dtype), w.astype(compute_dtype),
            window_strides=(s, s), padding="VALID",
            dimension_numbers=("NHWC", "HWIO", "NHWC"),
            preferred_element_type=jnp.float32,
            precision=jax.lax.Precision.HIGHEST)
        x = jnp.maximum(y + b, 0.0)
    return jnp.transpose(x, (0, 3, 1, 2))


def init_params(key, n_channels):
    """Deterministic PyTorch-like uniform init, HWIO layout."""
    specs = [(n_channels, 32, 8), (32, 64, 4), (64, 64, 3)]
    ks = jax.random.split(key, 2 * len(specs))
    params = []
    for i, (cin, cout, k) in enumerate(specs):
        bound = 1.0 / jnp.sqrt(jnp.float32(cin * k * k))
        w = jax.random.uniform(ks[2 * i], (k, k, cin, cout), jnp.float32, -bound, bound)
        b = jax.random.uniform(ks[2 * i + 1], (cout,), jnp.float32, -bound, bound)
        params.append((w, b))
    return params


if __name__ == "__main__":
    key = jax.random.PRNGKey(0)
    k_x, k_p = jax.random.split(key)

    # Smallest "nice" spatial size for this stack: 44 -> 10 -> 4 -> 2.
    B, n_channels, H, W = 2, 4, 44, 44
    x = jax.random.normal(k_x, (B, n_channels, H, W), jnp.float32)
    params = init_params(k_p, n_channels)
    packed = pack_params(params, n_channels, H, W)

    fwd = jax.jit(convnn_forward)
    out = fwd(x, packed)
    jax.block_until_ready(out)

    ref = convnn_reference(x, params)
    assert out.shape == (B, 64, 2, 2), out.shape
    err = float(jnp.max(jnp.abs(out - ref)))
    assert jnp.allclose(out, ref, atol=5e-3, rtol=5e-3), err

    print("KERNEL_OK")
</pallas_src>

<mosaic_0001>
module attributes {stable_mosaic.version = 11 : i64} {
  func.func @_convnn_kernel(%arg0: i32, %arg1: memref<1x100x256xbf16, #tpu.memory_space<vmem>>, %arg2: memref<256x128xbf16, #tpu.memory_space<vmem>>, %arg3: memref<1x128xf32, #tpu.memory_space<vmem>>, %arg4: memref<16x16x100xbf16, #tpu.memory_space<vmem>>, %arg5: memref<16x128x128xbf16, #tpu.memory_space<vmem>>, %arg6: memref<1x128xf32, #tpu.memory_space<vmem>>, %arg7: memref<9x4x16xbf16, #tpu.memory_space<vmem>>, %arg8: memref<9x128x64xbf16, #tpu.memory_space<vmem>>, %arg9: memref<1x64xf32, #tpu.memory_space<vmem>>, %arg10: memref<1x4x64xf32, #tpu.memory_space<vmem>>) attributes {dimension_semantics = [#tpu.dimension_semantics<parallel>], iteration_bounds = array<i64: 2>, scalar_prefetch = 0 : i64, scratch_operands = 0 : i64, tpu.core_type = #tpu.core_type<tc>, window_params = [{transform_indices = @transform_0, window_bounds = array<i64: 1, 100, 256>}, {pipeline_mode = #tpu.pipeline_mode<synchronous>, transform_indices = @transform_1, window_bounds = array<i64: 256, 128>}, {pipeline_mode = #tpu.pipeline_mode<synchronous>, transform_indices = @transform_2, window_bounds = array<i64: 1, 128>}, {pipeline_mode = #tpu.pipeline_mode<synchronous>, transform_indices = @transform_3, window_bounds = array<i64: 16, 16, 100>}, {pipeline_mode = #tpu.pipeline_mode<synchronous>, transform_indices = @transform_4, window_bounds = array<i64: 16, 128, 128>}, {pipeline_mode = #tpu.pipeline_mode<synchronous>, transform_indices = @transform_5, window_bounds = array<i64: 1, 128>}, {pipeline_mode = #tpu.pipeline_mode<synchronous>, transform_indices = @transform_6, window_bounds = array<i64: 9, 4, 16>}, {pipeline_mode = #tpu.pipeline_mode<synchronous>, transform_indices = @transform_7, window_bounds = array<i64: 9, 128, 64>}, {pipeline_mode = #tpu.pipeline_mode<synchronous>, transform_indices = @transform_8, window_bounds = array<i64: 1, 64>}, {transform_indices = @transform_9, window_bounds = array<i64: 1, 4, 64>}]} {
    %c0 = arith.constant 0 : index
    %c0_0 = arith.constant 0 : index
    %c0_1 = arith.constant 0 : index
    %0 = vector.load %arg1[%c0, %c0_0, %c0_1] : memref<1x100x256xbf16, #tpu.memory_space<vmem>>, vector<1x100x256xbf16>
    %1 = vector.shape_cast %0 : vector<1x100x256xbf16> to vector<100x256xbf16>
    %c0_2 = arith.constant 0 : index
    %c0_3 = arith.constant 0 : index
    %2 = vector.load %arg2[%c0_2, %c0_3] : memref<256x128xbf16, #tpu.memory_space<vmem>>, vector<256x128xbf16>
    %cst = arith.constant dense<0.000000e+00> : vector<100x128xf32>
    %3 = tpu.matmul %1, %2, %cst {dimension_numbers = #tpu.dot_dimension_numbers<[1], [0], [0], [1], [0, 0, 1, 1], [], []>} : vector<100x256xbf16>, vector<256x128xbf16>, vector<100x128xf32> -> vector<100x128xf32>
    %c0_4 = arith.constant 0 : index
    %c0_5 = arith.constant 0 : index
    %4 = vector.load %arg3[%c0_4, %c0_5] : memref<1x128xf32, #tpu.memory_space<vmem>>, vector<1x128xf32>
    %5 = vector.broadcast %4 : vector<1x128xf32> to vector<100x128xf32>
    %6 = arith.addf %3, %5 : vector<100x128xf32>
    %cst_6 = arith.constant 0.000000e+00 : f32
    %7 = vector.broadcast %cst_6 : f32 to vector<100x128xf32>
    %8 = arith.maximumf %6, %7 : vector<100x128xf32>
    %9 = arith.truncf %8 : vector<100x128xf32> to vector<100x128xbf16>
    %cst_7 = arith.constant 0.000000e+00 : f32
    %10 = vector.broadcast %cst_7 : f32 to vector<16x128xf32>
    %c0_8 = arith.constant 0 : index
    %c0_9 = arith.constant 0 : index
    %c0_10 = arith.constant 0 : index
    %11 = vector.load %arg4[%c0_8, %c0_9, %c0_10] : memref<16x16x100xbf16, #tpu.memory_space<vmem>>, vector<1x16x100xbf16>
    %12 = vector.shape_cast %11 : vector<1x16x100xbf16> to vector<16x100xbf16>
    %cst_11 = arith.constant dense<0.000000e+00> : vector<16x128xf32>
    %13 = tpu.matmul %12, %9, %cst_11 {dimension_numbers = #tpu.dot_dimension_numbers<[1], [0], [0], [1], [0, 0, 1, 1], [], []>} : vector<16x100xbf16>, vector<100x128xbf16>, vector<16x128xf32> -> vector<16x128xf32>
    %14 = arith.truncf %13 : vector<16x128xf32> to vector<16x128xbf16>
    %c0_12 = arith.constant 0 : index
    %c0_13 = arith.constant 0 : index
    %c0_14 = arith.constant 0 : index
    %15 = vector.load %arg5[%c0_12, %c0_13, %c0_14] : memref<16x128x128xbf16, #tpu.memory_space<vmem>>, vector<1x128x128xbf16>
    %16 = vector.shape_cast %15 : vector<1x128x128xbf16> to vector<128x128xbf16>
    %cst_15 = arith.constant dense<0.000000e+00> : vector<16x128xf32>
    %17 = tpu.matmul %14, %16, %cst_15 {dimension_numbers = #tpu.dot_dimension_numbers<[1], [0], [0], [1], [0, 0, 1, 1], [], []>} : vector<16x128xbf16>, vector<128x128xbf16>, vector<16x128xf32> -> vector<16x128xf32>
    %18 = arith.addf %10, %17 : vector<16x128xf32>
    %c1 = arith.constant 1 : index
    %c0_16 = arith.constant 0 : index
    %c0_17 = arith.constant 0 : index
    %19 = vector.load %arg4[%c1, %c0_16, %c0_17] : memref<16x16x100xbf16, #tpu.memory_space<vmem>>, vector<1x16x100xbf16>
    %20 = vector.shape_cast %19 : vector<1x16x100xbf16> to vector<16x100xbf16>
    %cst_18 = arith.constant dense<0.000000e+00> : vector<16x128xf32>
    %21 = tpu.matmul %20, %9, %cst_18 {dimension_numbers = #tpu.dot_dimension_numbers<[1], [0], [0], [1], [0, 0, 1, 1], [], []>} : vector<16x100xbf16>, vector<100x128xbf16>, vector<16x128xf32> -> vector<16x128xf32>
    %22 = arith.truncf %21 : vector<16x128xf32> to vector<16x128xbf16>
    %c1_19 = arith.constant 1 : index
    %c0_20 = arith.constant 0 : index
    %c0_21 = arith.constant 0 : index
    %23 = vector.load %arg5[%c1_19, %c0_20, %c0_21] : memref<16x128x128xbf16, #tpu.memory_space<vmem>>, vector<1x128x128xbf16>
    %24 = vector.shape_cast %23 : vector<1x128x128xbf16> to vector<128x128xbf16>
    %cst_22 = arith.constant dense<0.000000e+00> : vector<16x128xf32>
    %25 = tpu.matmul %22, %24, %cst_22 {dimension_numbers = #tpu.dot_dimension_numbers<[1], [0], [0], [1], [0, 0, 1, 1], [], []>} : vector<16x128xbf16>, vector<128x128xbf16>, vector<16x128xf32> -> vector<16x128xf32>
    %26 = arith.addf %18, %25 : vector<16x128xf32>
    %c2 = arith.constant 2 : index
    %c0_23 = arith.constant 0 : index
    %c0_24 = arith.constant 0 : index
    %27 = vector.load %arg4[%c2, %c0_23, %c0_24] : memref<16x16x100xbf16, #tpu.memory_space<vmem>>, vector<1x16x100xbf16>
    %28 = vector.shape_cast %27 : vector<1x16x100xbf16> to vector<16x100xbf16>
    %cst_25 = arith.constant dense<0.000000e+00> : vector<16x128xf32>
    %29 = tpu.matmul %28, %9, %cst_25 {dimension_numbers = #tpu.dot_dimension_numbers<[1], [0], [0], [1], [0, 0, 1, 1], [], []>} : vector<16x100xbf16>, vector<100x128xbf16>, vector<16x128xf32> -> vector<16x128xf32>
    %30 = arith.truncf %29 : vector<16x128xf32> to vector<16x128xbf16>
    %c2_26 = arith.constant 2 : index
    %c0_27 = arith.constant 0 : index
    %c0_28 = arith.constant 0 : index
    %31 = vector.load %arg5[%c2_26, %c0_27, %c0_28] : memref<16x128x128xbf16, #tpu.memory_space<vmem>>, vector<1x128x128xbf16>
    %32 = vector.shape_cast %31 : vector<1x128x128xbf16> to vector<128x128xbf16>
    %cst_29 = arith.constant dense<0.000000e+00> : vector<16x128xf32>
    %33 = tpu.matmul %30, %32, %cst_29 {dimension_numbers = #tpu.dot_dimension_numbers<[1], [0], [0], [1], [0, 0, 1, 1], [], []>} : vector<16x128xbf16>, vector<128x128xbf16>, vector<16x128xf32> -> vector<16x128xf32>
    %34 = arith.addf %26, %33 : vector<16x128xf32>
    %c3 = arith.constant 3 : index
    %c0_30 = arith.constant 0 : index
    %c0_31 = arith.constant 0 : index
    %35 = vector.load %arg4[%c3, %c0_30, %c0_31] : memref<16x16x100xbf16, #tpu.memory_space<vmem>>, vector<1x16x100xbf16>
    %36 = vector.shape_cast %35 : vector<1x16x100xbf16> to vector<16x100xbf16>
    %cst_32 = arith.constant dense<0.000000e+00> : vector<16x128xf32>
    %37 = tpu.matmul %36, %9, %cst_32 {dimension_numbers = #tpu.dot_dimension_numbers<[1], [0], [0], [1], [0, 0, 1, 1], [], []>} : vector<16x100xbf16>, vector<100x128xbf16>, vector<16x128xf32> -> vector<16x128xf32>
    %38 = arith.truncf %37 : vector<16x128xf32> to vector<16x128xbf16>
    %c3_33 = arith.constant 3 : index
    %c0_34 = arith.constant 0 : index
    %c0_35 = arith.constant 0 : index
    %39 = vector.load %arg5[%c3_33, %c0_34, %c0_35] : memref<16x128x128xbf16, #tpu.memory_space<vmem>>, vector<1x128x128xbf16>
    %40 = vector.shape_cast %39 : vector<1x128x128xbf16> to vector<128x128xbf16>
    %cst_36 = arith.constant dense<0.000000e+00> : vector<16x128xf32>
    %41 = tpu.matmul %38, %40, %cst_36 {dimension_numbers = #tpu.dot_dimension_numbers<[1], [0], [0], [1], [0, 0, 1, 1], [], []>} : vector<16x128xbf16>, vector<128x128xbf16>, vector<16x128xf32> -> vector<16x128xf32>
    %42 = arith.addf %34, %41 : vector<16x128xf32>
    %c4 = arith.constant 4 : index
    %c0_37 = arith.constant 0 : index
    %c0_38 = arith.constant 0 : index
    %43 = vector.load %arg4[%c4, %c0_37, %c0_38] : memref<16x16x100xbf16, #tpu.memory_space<vmem>>, vector<1x16x100xbf16>
    %44 = vector.shape_cast %43 : vector<1x16x100xbf16> to vector<16x100xbf16>
    %cst_39 = arith.constant dense<0.000000e+00> : vector<16x128xf32>
    %45 = tpu.matmul %44, %9, %cst_39 {dimension_numbers = #tpu.dot_dimension_numbers<[1], [0], [0], [1], [0, 0, 1, 1], [], []>} : vector<16x100xbf16>, vector<100x128xbf16>, vector<16x128xf32> -> vector<16x128xf32>
    %46 = arith.truncf %45 : vector<16x128xf32> to vector<16x128xbf16>
    %c4_40 = arith.constant 4 : index
    %c0_41 = arith.constant 0 : index
    %c0_42 = arith.constant 0 : index
    %47 = vector.load %arg5[%c4_40, %c0_41, %c0_42] : memref<16x128x128xbf16, #tpu.memory_space<vmem>>, vector<1x128x128xbf16>
    %48 = vector.shape_cast %47 : vector<1x128x128xbf16> to vector<128x128xbf16>
    %cst_43 = arith.constant dense<0.000000e+00> : vector<16x128xf32>
    %49 = tpu.matmul %46, %48, %cst_43 {dimension_numbers = #tpu.dot_dimension_numbers<[1], [0], [0], [1], [0, 0, 1, 1], [], []>} : vector<16x128xbf16>, vector<128x128xbf16>, vector<16x128xf32> -> vector<16x128xf32>
    %50 = arith.addf %42, %49 : vector<16x128xf32>
    %c5 = arith.constant 5 : index
    %c0_44 = arith.constant 0 : index
    %c0_45 = arith.constant 0 : index
    %51 = vector.load %arg4[%c5, %c0_44, %c0_45] : memref<16x16x100xbf16, #tpu.memory_space<vmem>>, vector<1x16x100xbf16>
    %52 = vector.shape_cast %51 : vector<1x16x100xbf16> to vector<16x100xbf16>
    %cst_46 = arith.constant dense<0.000000e+00> : vector<16x128xf32>
    %53 = tpu.matmul %52, %9, %cst_46 {dimension_numbers = #tpu.dot_dimension_numbers<[1], [0], [0], [1], [0, 0, 1, 1], [], []>} : vector<16x100xbf16>, vector<100x128xbf16>, vector<16x128xf32> -> vector<16x128xf32>
    %54 = arith.truncf %53 : vector<16x128xf32> to vector<16x128xbf16>
    %c5_47 = arith.constant 5 : index
    %c0_48 = arith.constant 0 : index
    %c0_49 = arith.constant 0 : index
    %55 = vector.load %arg5[%c5_47, %c0_48, %c0_49] : memref<16x128x128xbf16, #tpu.memory_space<vmem>>, vector<1x128x128xbf16>
    %56 = vector.shape_cast %55 : vector<1x128x128xbf16> to vector<128x128xbf16>
    %cst_50 = arith.constant dense<0.000000e+00> : vector<16x128xf32>
    %57 = tpu.matmul %54, %56, %cst_50 {dimension_numbers = #tpu.dot_dimension_numbers<[1], [0], [0], [1], [0, 0, 1, 1], [], []>} : vector<16x128xbf16>, vector<128x128xbf16>, vector<16x128xf32> -> vector<16x128xf32>
    %58 = arith.addf %50, %57 : vector<16x128xf32>
    %c6 = arith.constant 6 : index
    %c0_51 = arith.constant 0 : index
    %c0_52 = arith.constant 0 : index
    %59 = vector.load %arg4[%c6, %c0_51, %c0_52] : memref<16x16x100xbf16, #tpu.memory_space<vmem>>, vector<1x16x100xbf16>
    %60 = vector.shape_cast %59 : vector<1x16x100xbf16> to vector<16x100xbf16>
    %cst_53 = arith.constant dense<0.000000e+00> : vector<16x128xf32>
    %61 = tpu.matmul %60, %9, %cst_53 {dimension_numbers = #tpu.dot_dimension_numbers<[1], [0], [0], [1], [0, 0, 1, 1], [], []>} : vector<16x100xbf16>, vector<100x128xbf16>, vector<16x128xf32> -> vector<16x128xf32>
    %62 = arith.truncf %61 : vector<16x128xf32> to vector<16x128xbf16>
    %c6_54 = arith.constant 6 : index
    %c0_55 = arith.constant 0 : index
    %c0_56 = arith.constant 0 : index
    %63 = vector.load %arg5[%c6_54, %c0_55, %c0_56] : memref<16x128x128xbf16, #tpu.memory_space<vmem>>, vector<1x128x128xbf16>
    %64 = vector.shape_cast %63 : vector<1x128x128xbf16> to vector<128x128xbf16>
    %cst_57 = arith.constant dense<0.000000e+00> : vector<16x128xf32>
    %65 = tpu.matmul %62, %64, %cst_57 {dimension_numbers = #tpu.dot_dimension_numbers<[1], [0], [0], [1], [0, 0, 1, 1], [], []>} : vector<16x128xbf16>, vector<128x128xbf16>, vector<16x128xf32> -> vector<16x128xf32>
    %66 = arith.addf %58, %65 : vector<16x128xf32>
    %c7 = arith.constant 7 : index
    %c0_58 = arith.constant 0 : index
    %c0_59 = arith.constant 0 : index
    %67 = vector.load %arg4[%c7, %c0_58, %c0_59] : memref<16x16x100xbf16, #tpu.memory_space<vmem>>, vector<1x16x100xbf16>
    %68 = vector.shape_cast %67 : vector<1x16x100xbf16> to vector<16x100xbf16>
    %cst_60 = arith.constant dense<0.000000e+00> : vector<16x128xf32>
    %69 = tpu.matmul %68, %9, %cst_60 {dimension_numbers = #tpu.dot_dimension_numbers<[1], [0], [0], [1], [0, 0, 1, 1], [], []>} : vector<16x100xbf16>, vector<100x128xbf16>, vector<16x128xf32> -> vector<16x128xf32>
    %70 = arith.truncf %69 : vector<16x128xf32> to vector<16x128xbf16>
    %c7_61 = arith.constant 7 : index
    %c0_62 = arith.constant 0 : index
    %c0_63 = arith.constant 0 : index
    %71 = vector.load %arg5[%c7_61, %c0_62, %c0_63] : memref<16x128x128xbf16, #tpu.memory_space<vmem>>, vector<1x128x128xbf16>
    %72 = vector.shape_cast %71 : vector<1x128x128xbf16> to vector<128x128xbf16>
    %cst_64 = arith.constant dense<0.000000e+00> : vector<16x128xf32>
    %73 = tpu.matmul %70, %72, %cst_64 {dimension_numbers = #tpu.dot_dimension_numbers<[1], [0], [0], [1], [0, 0, 1, 1], [], []>} : vector<16x128xbf16>, vector<128x128xbf16>, vector<16x128xf32> -> vector<16x128xf32>
    %74 = arith.addf %66, %73 : vector<16x128xf32>
    %c8 = arith.constant 8 : index
    %c0_65 = arith.constant 0 : index
    %c0_66 = arith.constant 0 : index
    %75 = vector.load %arg4[%c8, %c0_65, %c0_66] : memref<16x16x100xbf16, #tpu.memory_space<vmem>>, vector<1x16x100xbf16>
    %76 = vector.shape_cast %75 : vector<1x16x100xbf16> to vector<16x100xbf16>
    %cst_67 = arith.constant dense<0.000000e+00> : vector<16x128xf32>
    %77 = tpu.matmul %76, %9, %cst_67 {dimension_numbers = #tpu.dot_dimension_numbers<[1], [0], [0], [1], [0, 0, 1, 1], [], []>} : vector<16x100xbf16>, vector<100x128xbf16>, vector<16x128xf32> -> vector<16x128xf32>
    %78 = arith.truncf %77 : vector<16x128xf32> to vector<16x128xbf16>
    %c8_68 = arith.constant 8 : index
    %c0_69 = arith.constant 0 : index
    %c0_70 = arith.constant 0 : index
    %79 = vector.load %arg5[%c8_68, %c0_69, %c0_70] : memref<16x128x128xbf16, #tpu.memory_space<vmem>>, vector<1x128x128xbf16>
    %80 = vector.shape_cast %79 : vector<1x128x128xbf16> to vector<128x128xbf16>
    %cst_71 = arith.constant dense<0.000000e+00> : vector<16x128xf32>
    %81 = tpu.matmul %78, %80, %cst_71 {dimension_numbers = #tpu.dot_dimension_numbers<[1], [0], [0], [1], [0, 0, 1, 1], [], []>} : vector<16x128xbf16>, vector<128x128xbf16>, vector<16x128xf32> -> vector<16x128xf32>
    %82 = arith.addf %74, %81 : vector<16x128xf32>
    %c9 = arith.constant 9 : index
    %c0_72 = arith.constant 0 : index
    %c0_73 = arith.constant 0 : index
    %83 = vector.load %arg4[%c9, %c0_72, %c0_73] : memref<16x16x100xbf16, #tpu.memory_space<vmem>>, vector<1x16x100xbf16>
    %84 = vector.shape_cast %83 : vector<1x16x100xbf16> to vector<16x100xbf16>
    %cst_74 = arith.constant dense<0.000000e+00> : vector<16x128xf32>
    %85 = tpu.matmul %84, %9, %cst_74 {dimension_numbers = #tpu.dot_dimension_numbers<[1], [0], [0], [1], [0, 0, 1, 1], [], []>} : vector<16x100xbf16>, vector<100x128xbf16>, vector<16x128xf32> -> vector<16x128xf32>
    %86 = arith.truncf %85 : vector<16x128xf32> to vector<16x128xbf16>
    %c9_75 = arith.constant 9 : index
    %c0_76 = arith.constant 0 : index
    %c0_77 = arith.constant 0 : index
    %87 = vector.load %arg5[%c9_75, %c0_76, %c0_77] : memref<16x128x128xbf16, #tpu.memory_space<vmem>>, vector<1x128x128xbf16>
    %88 = vector.shape_cast %87 : vector<1x128x128xbf16> to vector<128x128xbf16>
    %cst_78 = arith.constant dense<0.000000e+00> : vector<16x128xf32>
    %89 = tpu.matmul %86, %88, %cst_78 {dimension_numbers = #tpu.dot_dimension_numbers<[1], [0], [0], [1], [0, 0, 1, 1], [], []>} : vector<16x128xbf16>, vector<128x128xbf16>, vector<16x128xf32> -> vector<16x128xf32>
    %90 = arith.addf %82, %89 : vector<16x128xf32>
    %c10 = arith.constant 10 : index
    %c0_79 = arith.constant 0 : index
    %c0_80 = arith.constant 0 : index
    %91 = vector.load %arg4[%c10, %c0_79, %c0_80] : memref<16x16x100xbf16, #tpu.memory_space<vmem>>, vector<1x16x100xbf16>
    %92 = vector.shape_cast %91 : vector<1x16x100xbf16> to vector<16x100xbf16>
    %cst_81 = arith.constant dense<0.000000e+00> : vector<16x128xf32>
    %93 = tpu.matmul %92, %9, %cst_81 {dimension_numbers = #tpu.dot_dimension_numbers<[1], [0], [0], [1], [0, 0, 1, 1], [], []>} : vector<16x100xbf16>, vector<100x128xbf16>, vector<16x128xf32> -> vector<16x128xf32>
    %94 = arith.truncf %93 : vector<16x128xf32> to vector<16x128xbf16>
    %c10_82 = arith.constant 10 : index
    %c0_83 = arith.constant 0 : index
    %c0_84 = arith.constant 0 : index
    %95 = vector.load %arg5[%c10_82, %c0_83, %c0_84] : memref<16x128x128xbf16, #tpu.memory_space<vmem>>, vector<1x128x128xbf16>
    %96 = vector.shape_cast %95 : vector<1x128x128xbf16> to vector<128x128xbf16>
    %cst_85 = arith.constant dense<0.000000e+00> : vector<16x128xf32>
    %97 = tpu.matmul %94, %96, %cst_85 {dimension_numbers = #tpu.dot_dimension_numbers<[1], [0], [0], [1], [0, 0, 1, 1], [], []>} : vector<16x128xbf16>, vector<128x128xbf16>, vector<16x128xf32> -> vector<16x128xf32>
    %98 = arith.addf %90, %97 : vector<16x128xf32>
    %c11 = arith.constant 11 : index
    %c0_86 = arith.constant 0 : index
    %c0_87 = arith.constant 0 : index
    %99 = vector.load %arg4[%c11, %c0_86, %c0_87] : memref<16x16x100xbf16, #tpu.memory_space<vmem>>, vector<1x16x100xbf16>
    %100 = vector.shape_cast %99 : vector<1x16x100xbf16> to vector<16x100xbf16>
    %cst_88 = arith.constant dense<0.000000e+00> : vector<16x128xf32>
    %101 = tpu.matmul %100, %9, %cst_88 {dimension_numbers = #tpu.dot_dimension_numbers<[1], [0], [0], [1], [0, 0, 1, 1], [], []>} : vector<16x100xbf16>, vector<100x128xbf16>, vector<16x128xf32> -> vector<16x128xf32>
    %102 = arith.truncf %101 : vector<16x128xf32> to vector<16x128xbf16>
    %c11_89 = arith.constant 11 : index
    %c0_90 = arith.constant 0 : index
    %c0_91 = arith.constant 0 : index
    %103 = vector.load %arg5[%c11_89, %c0_90, %c0_91] : memref<16x128x128xbf16, #tpu.memory_space<vmem>>, vector<1x128x128xbf16>
    %104 = vector.shape_cast %103 : vector<1x128x128xbf16> to vector<128x128xbf16>
    %cst_92 = arith.constant dense<0.000000e+00> : vector<16x128xf32>
    %105 = tpu.matmul %102, %104, %cst_92 {dimension_numbers = #tpu.dot_dimension_numbers<[1], [0], [0], [1], [0, 0, 1, 1], [], []>} : vector<16x128xbf16>, vector<128x128xbf16>, vector<16x128xf32> -> vector<16x128xf32>
    %106 = arith.addf %98, %105 : vector<16x128xf32>
    %c12 = arith.constant 12 : index
    %c0_93 = arith.constant 0 : index
    %c0_94 = arith.constant 0 : index
    %107 = vector.load %arg4[%c12, %c0_93, %c0_94] : memref<16x16x100xbf16, #tpu.memory_space<vmem>>, vector<1x16x100xbf16>
    %108 = vector.shape_cast %107 : vector<1x16x100xbf16> to vector<16x100xbf16>
    %cst_95 = arith.constant dense<0.000000e+00> : vector<16x128xf32>
    %109 = tpu.matmul %108, %9, %cst_95 {dimension_numbers = #tpu.dot_dimension_numbers<[1], [0], [0], [1], [0, 0, 1, 1], [], []>} : vector<16x100xbf16>, vector<100x128xbf16>, vector<16x128xf32> -> vector<16x128xf32>
    %110 = arith.truncf %109 : vector<16x128xf32> to vector<16x128xbf16>
    %c12_96 = arith.constant 12 : index
    %c0_97 = arith.constant 0 : index
    %c0_98 = arith.constant 0 : index
    %111 = vector.load %arg5[%c12_96, %c0_97, %c0_98] : memref<16x128x128xbf16, #tpu.memory_space<vmem>>, vector<1x128x128xbf16>
    %112 = vector.shape_cast %111 : vector<1x128x128xbf16> to vector<128x128xbf16>
    %cst_99 = arith.constant dense<0.000000e+00> : vector<16x128xf32>
    %113 = tpu.matmul %110, %112, %cst_99 {dimension_numbers = #tpu.dot_dimension_numbers<[1], [0], [0], [1], [0, 0, 1, 1], [], []>} : vector<16x128xbf16>, vector<128x128xbf16>, vector<16x128xf32> -> vector<16x128xf32>
    %114 = arith.addf %106, %113 : vector<16x128xf32>
    %c13 = arith.constant 13 : index
    %c0_100 = arith.constant 0 : index
    %c0_101 = arith.constant 0 : index
    %115 = vector.load %arg4[%c13, %c0_100, %c0_101] : memref<16x16x100xbf16, #tpu.memory_space<vmem>>, vector<1x16x100xbf16>
    %116 = vector.shape_cast %115 : vector<1x16x100xbf16> to vector<16x100xbf16>
    %cst_102 = arith.constant dense<0.000000e+00> : vector<16x128xf32>
    %117 = tpu.matmul %116, %9, %cst_102 {dimension_numbers = #tpu.dot_dimension_numbers<[1], [0], [0], [1], [0, 0, 1, 1], [], []>} : vector<16x100xbf16>, vector<100x128xbf16>, vector<16x128xf32> -> vector<16x128xf32>
    %118 = arith.truncf %117 : vector<16x128xf32> to vector<16x128xbf16>
    %c13_103 = arith.constant 13 : index
    %c0_104 = arith.constant 0 : index
    %c0_105 = arith.constant 0 : index
    %119 = vector.load %arg5[%c13_103, %c0_104, %c0_105] : memref<16x128x128xbf16, #tpu.memory_space<vmem>>, vector<1x128x128xbf16>
    %120 = vector.shape_cast %119 : vector<1x128x128xbf16> to vector<128x128xbf16>
    %cst_106 = arith.constant dense<0.000000e+00> : vector<16x128xf32>
    %121 = tpu.matmul %118, %120, %cst_106 {dimension_numbers = #tpu.dot_dimension_numbers<[1], [0], [0], [1], [0, 0, 1, 1], [], []>} : vector<16x128xbf16>, vector<128x128xbf16>, vector<16x128xf32> -> vector<16x128xf32>
    %122 = arith.addf %114, %121 : vector<16x128xf32>
    %c14 = arith.constant 14 : index
    %c0_107 = arith.constant 0 : index
    %c0_108 = arith.constant 0 : index
    %123 = vector.load %arg4[%c14, %c0_107, %c0_108] : memref<16x16x100xbf16, #tpu.memory_space<vmem>>, vector<1x16x100xbf16>
    %124 = vector.shape_cast %123 : vector<1x16x100xbf16> to vector<16x100xbf16>
    %cst_109 = arith.constant dense<0.000000e+00> : vector<16x128xf32>
    %125 = tpu.matmul %124, %9, %cst_109 {dimension_numbers = #tpu.dot_dimension_numbers<[1], [0], [0], [1], [0, 0, 1, 1], [], []>} : vector<16x100xbf16>, vector<100x128xbf16>, vector<16x128xf32> -> vector<16x128xf32>
    %126 = arith.truncf %125 : vector<16x128xf32> to vector<16x128xbf16>
    %c14_110 = arith.constant 14 : index
    %c0_111 = arith.constant 0 : index
    %c0_112 = arith.constant 0 : index
    %127 = vector.load %arg5[%c14_110, %c0_111, %c0_112] : memref<16x128x128xbf16, #tpu.memory_space<vmem>>, vector<1x128x128xbf16>
    %128 = vector.shape_cast %127 : vector<1x128x128xbf16> to vector<128x128xbf16>
    %cst_113 = arith.constant dense<0.000000e+00> : vector<16x128xf32>
    %129 = tpu.matmul %126, %128, %cst_113 {dimension_numbers = #tpu.dot_dimension_numbers<[1], [0], [0], [1], [0, 0, 1, 1], [], []>} : vector<16x128xbf16>, vector<128x128xbf16>, vector<16x128xf32> -> vector<16x128xf32>
    %130 = arith.addf %122, %129 : vector<16x128xf32>
    %c15 = arith.constant 15 : index
    %c0_114 = arith.constant 0 : index
    %c0_115 = arith.constant 0 : index
    %131 = vector.load %arg4[%c15, %c0_114, %c0_115] : memref<16x16x100xbf16, #tpu.memory_space<vmem>>, vector<1x16x100xbf16>
    %132 = vector.shape_cast %131 : vector<1x16x100xbf16> to vector<16x100xbf16>
    %cst_116 = arith.constant dense<0.000000e+00> : vector<16x128xf32>
    %133 = tpu.matmul %132, %9, %cst_116 {dimension_numbers = #tpu.dot_dimension_numbers<[1], [0], [0], [1], [0, 0, 1, 1], [], []>} : vector<16x100xbf16>, vector<100x128xbf16>, vector<16x128xf32> -> vector<16x128xf32>
    %134 = arith.truncf %133 : vector<16x128xf32> to vector<16x128xbf16>
    %c15_117 = arith.constant 15 : index
    %c0_118 = arith.constant 0 : index
    %c0_119 = arith.constant 0 : index
    %135 = vector.load %arg5[%c15_117, %c0_118, %c0_119] : memref<16x128x128xbf16, #tpu.memory_space<vmem>>, vector<1x128x128xbf16>
    %136 = vector.shape_cast %135 : vector<1x128x128xbf16> to vector<128x128xbf16>
    %cst_120 = arith.constant dense<0.000000e+00> : vector<16x128xf32>
    %137 = tpu.matmul %134, %136, %cst_120 {dimension_numbers = #tpu.dot_dimension_numbers<[1], [0], [0], [1], [0, 0, 1, 1], [], []>} : vector<16x128xbf16>, vector<128x128xbf16>, vector<16x128xf32> -> vector<16x128xf32>
    %138 = arith.addf %130, %137 : vector<16x128xf32>
    %c0_121 = arith.constant 0 : index
    %c0_122 = arith.constant 0 : index
    %139 = vector.load %arg6[%c0_121, %c0_122] : memref<1x128xf32, #tpu.memory_space<vmem>>, vector<1x128xf32>
    %140 = vector.broadcast %139 : vector<1x128xf32> to vector<16x128xf32>
    %141 = arith.addf %138, %140 : vector<16x128xf32>
    %cst_123 = arith.constant 0.000000e+00 : f32
    %142 = vector.broadcast %cst_123 : f32 to vector<16x128xf32>
    %143 = arith.maximumf %141, %142 : vector<16x128xf32>
    %144 = arith.truncf %143 : vector<16x128xf32> to vector<16x128xbf16>
    %cst_124 = arith.constant 0.000000e+00 : f32
    %145 = vector.broadcast %cst_124 : f32 to vector<4x64xf32>
    %c0_125 = arith.constant 0 : index
    %c0_126 = arith.constant 0 : index
    %c0_127 = arith.constant 0 : index
    %146 = vector.load %arg7[%c0_125, %c0_126, %c0_127] : memref<9x4x16xbf16, #tpu.memory_space<vmem>>, vector<1x4x16xbf16>
    %147 = vector.shape_cast %146 : vector<1x4x16xbf16> to vector<4x16xbf16>
    %cst_128 = arith.constant dense<0.000000e+00> : vector<4x128xf32>
    %148 = tpu.matmul %147, %144, %cst_128 {dimension_numbers = #tpu.dot_dimension_numbers<[1], [0], [0], [1], [0, 0, 1, 1], [], []>} : vector<4x16xbf16>, vector<16x128xbf16>, vector<4x128xf32> -> vector<4x128xf32>
    %149 = arith.truncf %148 : vector<4x128xf32> to vector<4x128xbf16>
    %c0_129 = arith.constant 0 : index
    %c0_130 = arith.constant 0 : index
    %c0_131 = arith.constant 0 : index
    %150 = vector.load %arg8[%c0_129, %c0_130, %c0_131] : memref<9x128x64xbf16, #tpu.memory_space<vmem>>, vector<1x128x64xbf16>
    %151 = vector.shape_cast %150 : vector<1x128x64xbf16> to vector<128x64xbf16>
    %cst_132 = arith.constant dense<0.000000e+00> : vector<4x64xf32>
    %152 = tpu.matmul %149, %151, %cst_132 {dimension_numbers = #tpu.dot_dimension_numbers<[1], [0], [0], [1], [0, 0, 1, 1], [], []>} : vector<4x128xbf16>, vector<128x64xbf16>, vector<4x64xf32> -> vector<4x64xf32>
    %153 = arith.addf %145, %152 : vector<4x64xf32>
    %c1_133 = arith.constant 1 : index
    %c0_134 = arith.constant 0 : index
    %c0_135 = arith.constant 0 : index
    %154 = vector.load %arg7[%c1_133, %c0_134, %c0_135] : memref<9x4x16xbf16, #tpu.memory_space<vmem>>, vector<1x4x16xbf16>
    %155 = vector.shape_cast %154 : vector<1x4x16xbf16> to vector<4x16xbf16>
    %cst_136 = arith.constant dense<0.000000e+00> : vector<4x128xf32>
    %156 = tpu.matmul %155, %144, %cst_136 {dimension_numbers = #tpu.dot_dimension_numbers<[1], [0], [0], [1], [0, 0, 1, 1], [], []>} : vector<4x16xbf16>, vector<16x128xbf16>, vector<4x128xf32> -> vector<4x128xf32>
    %157 = arith.truncf %156 : vector<4x128xf32> to vector<4x128xbf16>
    %c1_137 = arith.constant 1 : index
    %c0_138 = arith.constant 0 : index
    %c0_139 = arith.constant 0 : index
    %158 = vector.load %arg8[%c1_137, %c0_138, %c0_139] : memref<9x128x64xbf16, #tpu.memory_space<vmem>>, vector<1x128x64xbf16>
    %159 = vector.shape_cast %158 : vector<1x128x64xbf16> to vector<128x64xbf16>
    %cst_140 = arith.constant dense<0.000000e+00> : vector<4x64xf32>
    %160 = tpu.matmul %157, %159, %cst_140 {dimension_numbers = #tpu.dot_dimension_numbers<[1], [0], [0], [1], [0, 0, 1, 1], [], []>} : vector<4x128xbf16>, vector<128x64xbf16>, vector<4x64xf32> -> vector<4x64xf32>
    %161 = arith.addf %153, %160 : vector<4x64xf32>
    %c2_141 = arith.constant 2 : index
    %c0_142 = arith.constant 0 : index
    %c0_143 = arith.constant 0 : index
    %162 = vector.load %arg7[%c2_141, %c0_142, %c0_143] : memref<9x4x16xbf16, #tpu.memory_space<vmem>>, vector<1x4x16xbf16>
    %163 = vector.shape_cast %162 : vector<1x4x16xbf16> to vector<4x16xbf16>
    %cst_144 = arith.constant dense<0.000000e+00> : vector<4x128xf32>
    %164 = tpu.matmul %163, %144, %cst_144 {dimension_numbers = #tpu.dot_dimension_numbers<[1], [0], [0], [1], [0, 0, 1, 1], [], []>} : vector<4x16xbf16>, vector<16x128xbf16>, vector<4x128xf32> -> vector<4x128xf32>
    %165 = arith.truncf %164 : vector<4x128xf32> to vector<4x128xbf16>
    %c2_145 = arith.constant 2 : index
    %c0_146 = arith.constant 0 : index
    %c0_147 = arith.constant 0 : index
    %166 = vector.load %arg8[%c2_145, %c0_146, %c0_147] : memref<9x128x64xbf16, #tpu.memory_space<vmem>>, vector<1x128x64xbf16>
    %167 = vector.shape_cast %166 : vector<1x128x64xbf16> to vector<128x64xbf16>
    %cst_148 = arith.constant dense<0.000000e+00> : vector<4x64xf32>
    %168 = tpu.matmul %165, %167, %cst_148 {dimension_numbers = #tpu.dot_dimension_numbers<[1], [0], [0], [1], [0, 0, 1, 1], [], []>} : vector<4x128xbf16>, vector<128x64xbf16>, vector<4x64xf32> -> vector<4x64xf32>
    %169 = arith.addf %161, %168 : vector<4x64xf32>
    %c3_149 = arith.constant 3 : index
    %c0_150 = arith.constant 0 : index
    %c0_151 = arith.constant 0 : index
    %170 = vector.load %arg7[%c3_149, %c0_150, %c0_151] : memref<9x4x16xbf16, #tpu.memory_space<vmem>>, vector<1x4x16xbf16>
    %171 = vector.shape_cast %170 : vector<1x4x16xbf16> to vector<4x16xbf16>
    %cst_152 = arith.constant dense<0.000000e+00> : vector<4x128xf32>
    %172 = tpu.matmul %171, %144, %cst_152 {dimension_numbers = #tpu.dot_dimension_numbers<[1], [0], [0], [1], [0, 0, 1, 1], [], []>} : vector<4x16xbf16>, vector<16x128xbf16>, vector<4x128xf32> -> vector<4x128xf32>
    %173 = arith.truncf %172 : vector<4x128xf32> to vector<4x128xbf16>
    %c3_153 = arith.constant 3 : index
    %c0_154 = arith.constant 0 : index
    %c0_155 = arith.constant 0 : index
    %174 = vector.load %arg8[%c3_153, %c0_154, %c0_155] : memref<9x128x64xbf16, #tpu.memory_space<vmem>>, vector<1x128x64xbf16>
    %175 = vector.shape_cast %174 : vector<1x128x64xbf16> to vector<128x64xbf16>
    %cst_156 = arith.constant dense<0.000000e+00> : vector<4x64xf32>
    %176 = tpu.matmul %173, %175, %cst_156 {dimension_numbers = #tpu.dot_dimension_numbers<[1], [0], [0], [1], [0, 0, 1, 1], [], []>} : vector<4x128xbf16>, vector<128x64xbf16>, vector<4x64xf32> -> vector<4x64xf32>
    %177 = arith.addf %169, %176 : vector<4x64xf32>
    %c4_157 = arith.constant 4 : index
    %c0_158 = arith.constant 0 : index
    %c0_159 = arith.constant 0 : index
    %178 = vector.load %arg7[%c4_157, %c0_158, %c0_159] : memref<9x4x16xbf16, #tpu.memory_space<vmem>>, vector<1x4x16xbf16>
    %179 = vector.shape_cast %178 : vector<1x4x16xbf16> to vector<4x16xbf16>
    %cst_160 = arith.constant dense<0.000000e+00> : vector<4x128xf32>
    %180 = tpu.matmul %179, %144, %cst_160 {dimension_numbers = #tpu.dot_dimension_numbers<[1], [0], [0], [1], [0, 0, 1, 1], [], []>} : vector<4x16xbf16>, vector<16x128xbf16>, vector<4x128xf32> -> vector<4x128xf32>
    %181 = arith.truncf %180 : vector<4x128xf32> to vector<4x128xbf16>
    %c4_161 = arith.constant 4 : index
    %c0_162 = arith.constant 0 : index
    %c0_163 = arith.constant 0 : index
    %182 = vector.load %arg8[%c4_161, %c0_162, %c0_163] : memref<9x128x64xbf16, #tpu.memory_space<vmem>>, vector<1x128x64xbf16>
    %183 = vector.shape_cast %182 : vector<1x128x64xbf16> to vector<128x64xbf16>
    %cst_164 = arith.constant dense<0.000000e+00> : vector<4x64xf32>
    %184 = tpu.matmul %181, %183, %cst_164 {dimension_numbers = #tpu.dot_dimension_numbers<[1], [0], [0], [1], [0, 0, 1, 1], [], []>} : vector<4x128xbf16>, vector<128x64xbf16>, vector<4x64xf32> -> vector<4x64xf32>
    %185 = arith.addf %177, %184 : vector<4x64xf32>
    %c5_165 = arith.constant 5 : index
    %c0_166 = arith.constant 0 : index
    %c0_167 = arith.constant 0 : index
    %186 = vector.load %arg7[%c5_165, %c0_166, %c0_167] : memref<9x4x16xbf16, #tpu.memory_space<vmem>>, vector<1x4x16xbf16>
    %187 = vector.shape_cast %186 : vector<1x4x16xbf16> to vector<4x16xbf16>
    %cst_168 = arith.constant dense<0.000000e+00> : vector<4x128xf32>
    %188 = tpu.matmul %187, %144, %cst_168 {dimension_numbers = #tpu.dot_dimension_numbers<[1], [0], [0], [1], [0, 0, 1, 1], [], []>} : vector<4x16xbf16>, vector<16x128xbf16>, vector<4x128xf32> -> vector<4x128xf32>
    %189 = arith.truncf %188 : vector<4x128xf32> to vector<4x128xbf16>
    %c5_169 = arith.constant 5 : index
    %c0_170 = arith.constant 0 : index
    %c0_171 = arith.constant 0 : index
    %190 = vector.load %arg8[%c5_169, %c0_170, %c0_171] : memref<9x128x64xbf16, #tpu.memory_space<vmem>>, vector<1x128x64xbf16>
    %191 = vector.shape_cast %190 : vector<1x128x64xbf16> to vector<128x64xbf16>
    %cst_172 = arith.constant dense<0.000000e+00> : vector<4x64xf32>
    %192 = tpu.matmul %189, %191, %cst_172 {dimension_numbers = #tpu.dot_dimension_numbers<[1], [0], [0], [1], [0, 0, 1, 1], [], []>} : vector<4x128xbf16>, vector<128x64xbf16>, vector<4x64xf32> -> vector<4x64xf32>
    %193 = arith.addf %185, %192 : vector<4x64xf32>
    %c6_173 = arith.constant 6 : index
    %c0_174 = arith.constant 0 : index
    %c0_175 = arith.constant 0 : index
    %194 = vector.load %arg7[%c6_173, %c0_174, %c0_175] : memref<9x4x16xbf16, #tpu.memory_space<vmem>>, vector<1x4x16xbf16>
    %195 = vector.shape_cast %194 : vector<1x4x16xbf16> to vector<4x16xbf16>
    %cst_176 = arith.constant dense<0.000000e+00> : vector<4x128xf32>
    %196 = tpu.matmul %195, %144, %cst_176 {dimension_numbers = #tpu.dot_dimension_numbers<[1], [0], [0], [1], [0, 0, 1, 1], [], []>} : vector<4x16xbf16>, vector<16x128xbf16>, vector<4x128xf32> -> vector<4x128xf32>
    %197 = arith.truncf %196 : vector<4x128xf32> to vector<4x128xbf16>
    %c6_177 = arith.constant 6 : index
    %c0_178 = arith.constant 0 : index
    %c0_179 = arith.constant 0 : index
    %198 = vector.load %arg8[%c6_177, %c0_178, %c0_179] : memref<9x128x64xbf16, #tpu.memory_space<vmem>>, vector<1x128x64xbf16>
    %199 = vector.shape_cast %198 : vector<1x128x64xbf16> to vector<128x64xbf16>
    %cst_180 = arith.constant dense<0.000000e+00> : vector<4x64xf32>
    %200 = tpu.matmul %197, %199, %cst_180 {dimension_numbers = #tpu.dot_dimension_numbers<[1], [0], [0], [1], [0, 0, 1, 1], [], []>} : vector<4x128xbf16>, vector<128x64xbf16>, vector<4x64xf32> -> vector<4x64xf32>
    %201 = arith.addf %193, %200 : vector<4x64xf32>
    %c7_181 = arith.constant 7 : index
    %c0_182 = arith.constant 0 : index
    %c0_183 = arith.constant 0 : index
    %202 = vector.load %arg7[%c7_181, %c0_182, %c0_183] : memref<9x4x16xbf16, #tpu.memory_space<vmem>>, vector<1x4x16xbf16>
    %203 = vector.shape_cast %202 : vector<1x4x16xbf16> to vector<4x16xbf16>
    %cst_184 = arith.constant dense<0.000000e+00> : vector<4x128xf32>
    %204 = tpu.matmul %203, %144, %cst_184 {dimension_numbers = #tpu.dot_dimension_numbers<[1], [0], [0], [1], [0, 0, 1, 1], [], []>} : vector<4x16xbf16>, vector<16x128xbf16>, vector<4x128xf32> -> vector<4x128xf32>
    %205 = arith.truncf %204 : vector<4x128xf32> to vector<4x128xbf16>
    %c7_185 = arith.constant 7 : index
    %c0_186 = arith.constant 0 : index
    %c0_187 = arith.constant 0 : index
    %206 = vector.load %arg8[%c7_185, %c0_186, %c0_187] : memref<9x128x64xbf16, #tpu.memory_space<vmem>>, vector<1x128x64xbf16>
    %207 = vector.shape_cast %206 : vector<1x128x64xbf16> to vector<128x64xbf16>
    %cst_188 = arith.constant dense<0.000000e+00> : vector<4x64xf32>
    %208 = tpu.matmul %205, %207, %cst_188 {dimension_numbers = #tpu.dot_dimension_numbers<[1], [0], [0], [1], [0, 0, 1, 1], [], []>} : vector<4x128xbf16>, vector<128x64xbf16>, vector<4x64xf32> -> vector<4x64xf32>
    %209 = arith.addf %201, %208 : vector<4x64xf32>
    %c8_189 = arith.constant 8 : index
    %c0_190 = arith.constant 0 : index
    %c0_191 = arith.constant 0 : index
    %210 = vector.load %arg7[%c8_189, %c0_190, %c0_191] : memref<9x4x16xbf16, #tpu.memory_space<vmem>>, vector<1x4x16xbf16>
    %211 = vector.shape_cast %210 : vector<1x4x16xbf16> to vector<4x16xbf16>
    %cst_192 = arith.constant dense<0.000000e+00> : vector<4x128xf32>
    %212 = tpu.matmul %211, %144, %cst_192 {dimension_numbers = #tpu.dot_dimension_numbers<[1], [0], [0], [1], [0, 0, 1, 1], [], []>} : vector<4x16xbf16>, vector<16x128xbf16>, vector<4x128xf32> -> vector<4x128xf32>
    %213 = arith.truncf %212 : vector<4x128xf32> to vector<4x128xbf16>
    %c8_193 = arith.constant 8 : index
    %c0_194 = arith.constant 0 : index
    %c0_195 = arith.constant 0 : index
    %214 = vector.load %arg8[%c8_193, %c0_194, %c0_195] : memref<9x128x64xbf16, #tpu.memory_space<vmem>>, vector<1x128x64xbf16>
    %215 = vector.shape_cast %214 : vector<1x128x64xbf16> to vector<128x64xbf16>
    %cst_196 = arith.constant dense<0.000000e+00> : vector<4x64xf32>
    %216 = tpu.matmul %213, %215, %cst_196 {dimension_numbers = #tpu.dot_dimension_numbers<[1], [0], [0], [1], [0, 0, 1, 1], [], []>} : vector<4x128xbf16>, vector<128x64xbf16>, vector<4x64xf32> -> vector<4x64xf32>
    %217 = arith.addf %209, %216 : vector<4x64xf32>
    %c0_197 = arith.constant 0 : index
    %c0_198 = arith.constant 0 : index
    %218 = vector.load %arg9[%c0_197, %c0_198] : memref<1x64xf32, #tpu.memory_space<vmem>>, vector<1x64xf32>
    %219 = vector.broadcast %218 : vector<1x64xf32> to vector<4x64xf32>
    %220 = arith.addf %217, %219 : vector<4x64xf32>
    %cst_199 = arith.constant 0.000000e+00 : f32
    %221 = vector.broadcast %cst_199 : f32 to vector<4x64xf32>
    %222 = arith.maximumf %220, %221 : vector<4x64xf32>
    %c0_200 = arith.constant 0 : index
    %c0_201 = arith.constant 0 : index
    %c0_202 = arith.constant 0 : index
    %223 = vector.load %arg10[%c0_200, %c0_201, %c0_202] : memref<1x4x64xf32, #tpu.memory_space<vmem>>, vector<1x4x64xf32>
    %224 = vector.shape_cast %223 : vector<1x4x64xf32> to vector<4x64xf32>
    %225 = vector.shape_cast %222 : vector<4x64xf32> to vector<1x4x64xf32>
    tpu.vector_store %arg10[%c0_200, %c0_201, %c0_202], %225 {strides = array<i32>} : memref<1x4x64xf32, #tpu.memory_space<vmem>>, vector<1x4x64xf32>,
    return
  }
  func.func @transform_0(%arg0: i32) -> (i32, i32, i32) {
    %c0_i32 = arith.constant 0 : i32
    %c0_i32_0 = arith.constant 0 : i32
    %c0_i32_1 = arith.constant 0 : i32
    return %arg0, %c0_i32, %c0_i32_0 : i32, i32, i32
  }
  func.func @transform_1(%arg0: i32) -> (i32, i32) {
    %c0_i32 = arith.constant 0 : i32
    %c0_i32_0 = arith.constant 0 : i32
    %c0_i32_1 = arith.constant 0 : i32
    return %c0_i32, %c0_i32_0 : i32, i32
  }
  func.func @transform_2(%arg0: i32) -> (i32, i32) {
    %c0_i32 = arith.constant 0 : i32
    %c0_i32_0 = arith.constant 0 : i32
    %c0_i32_1 = arith.constant 0 : i32
    return %c0_i32, %c0_i32_0 : i32, i32
  }
  func.func @transform_3(%arg0: i32) -> (i32, i32, i32) {
    %c0_i32 = arith.constant 0 : i32
    %c0_i32_0 = arith.constant 0 : i32
    %c0_i32_1 = arith.constant 0 : i32
    %c0_i32_2 = arith.constant 0 : i32
    return %c0_i32, %c0_i32_0, %c0_i32_1 : i32, i32, i32
  }
  func.func @transform_4(%arg0: i32) -> (i32, i32, i32) {
    %c0_i32 = arith.constant 0 : i32
    %c0_i32_0 = arith.constant 0 : i32
    %c0_i32_1 = arith.constant 0 : i32
    %c0_i32_2 = arith.constant 0 : i32
    return %c0_i32, %c0_i32_0, %c0_i32_1 : i32, i32, i32
  }
  func.func @transform_5(%arg0: i32) -> (i32, i32) {
    %c0_i32 = arith.constant 0 : i32
    %c0_i32_0 = arith.constant 0 : i32
    %c0_i32_1 = arith.constant 0 : i32
    return %c0_i32, %c0_i32_0 : i32, i32
  }
  func.func @transform_6(%arg0: i32) -> (i32, i32, i32) {
    %c0_i32 = arith.constant 0 : i32
    %c0_i32_0 = arith.constant 0 : i32
    %c0_i32_1 = arith.constant 0 : i32
    %c0_i32_2 = arith.constant 0 : i32
    return %c0_i32, %c0_i32_0, %c0_i32_1 : i32, i32, i32
  }
  func.func @transform_7(%arg0: i32) -> (i32, i32, i32) {
    %c0_i32 = arith.constant 0 : i32
    %c0_i32_0 = arith.constant 0 : i32
    %c0_i32_1 = arith.constant 0 : i32
    %c0_i32_2 = arith.constant 0 : i32
    return %c0_i32, %c0_i32_0, %c0_i32_1 : i32, i32, i32
  }
  func.func @transform_8(%arg0: i32) -> (i32, i32) {
    %c0_i32 = arith.constant 0 : i32
    %c0_i32_0 = arith.constant 0 : i32
    %c0_i32_1 = arith.constant 0 : i32
    return %c0_i32, %c0_i32_0 : i32, i32
  }
  func.func @transform_9(%arg0: i32) -> (i32, i32, i32) {
    %c0_i32 = arith.constant 0 : i32
    %c0_i32_0 = arith.constant 0 : i32
    %c0_i32_1 = arith.constant 0 : i32
    return %arg0, %c0_i32, %c0_i32_0 : i32, i32, i32
  }
}

</mosaic_0001>

<bundles_post_ra>
// kernel: convnn_forward.1
= control target key start
LH: loop header
LB: loop body
LE: loop exit
PB: predicated region body
PF: predicated region fallthrough
CT: control target
= control target key end

     0   :  { %14 = vsyncpa [#allocation3], 0  ;;  %s8532_s0 = inlined_call_operand.vmem [shape: bf16[2,100,256], index: 0, kind: input, shape index: {}]   ;;  %s8533_s1 = inlined_call_operand.vmem [shape: bf16[256,128], index: 1, kind: input, shape index: {}]   ;;  %s8534_s2 = inlined_call_operand.vmem [shape: f32[1,128], index: 2, kind: input, shape index: {}]   ;;  %s8535_s3 = inlined_call_operand.vmem [shape: bf16[16,16,100], index: 3, kind: input, shape index: {}]   ;;  %s8536_s4 = inlined_call_operand.vmem [shape: bf16[16,128,128], index: 4, kind: input, shape index: {}]   ;;  %s8537_s5 = inlined_call_operand.vmem [shape: f32[1,128], index: 5, kind: input, shape index: {}]   ;;  %s8538_s6 = inlined_call_operand.vmem [shape: bf16[9,4,16], index: 6, kind: input, shape index: {}]   ;;  %s8539_s7 = inlined_call_operand.vmem [shape: bf16[9,128,64], index: 7, kind: input, shape index: {}]   ;;  %s8540_s8 = inlined_call_operand.vmem [shape: f32[1,64], index: 8, kind: input, shape index: {}]   ;;  %s8541_s9 = inlined_call_operand.hbm [shape: f32[2,4,64], index: 9, kind: output, shape index: {}]  }
   0x1   :  { %16 = vsyncpa [#allocation3 + $0x1], 0  ;;  %s7063_s30 = smov 0   ;;  %s7065_s10 = smov 0  }
   0x2   :  { %s7067_s11 = smov 0   ;;  %s7069_s12 = smov 0  }
   0x3 LB: > { %s7084_s13 = sadd.s32 4294967295, %s7008_s12   ;;  %s4691_s14 = sadd.s32 4294967294, %s7008_s12   ;;  %s7008_s12 = sphi %s7069_s12, %s8547_s12   ;;  %s7004_s11 = sphi %s7067_s11, %s8546_s11   ;;  %s7000_s10 = sphi %s7065_s10, %s8545_s10   ;;  %s6996_s30 = sphi %s7063_s30, %s8544_s30  }
   0x4   : > { %s7088_s15 = sadd.s32 1, %s7008_s12   ;;  %s223_s16 = sadd.s32 1, %s7004_s11 }
   0x5   : > { %s220_s17 = ssub.s32 %s7008_s12, %s7088_s15  ;;  %p233_p0 = scmp.ne.s32.totalorder %s7004_s11, %s7000_s10 }
   0x6   : > { %p221_p1 = scmp.eq.s32.totalorder %s220_s17, 0  ;;  %p234_p2 = scmp.eq.s32.totalorder %s7084_s13, 1 }
   0x7   : > { %p239_p3 = scmp.ne.s32.totalorder %s7000_s10, %s6996_s30  ;;  %p240_p4 = scmp.eq.s32.totalorder %s4691_s14, 1 }
   0x8   : > { %s7099_s18 = scalar_select %p221_p1, %s7004_s11, %s223_s16  }
   0x9   : > { %p7101_p5 = por %p234_p2, %p233_p0  ;;  %p7105_p6 = por %p240_p4, %p239_p3 }
   0xa   : > { %p4694_p7 = scmp.ge.s32.totalorder %s7008_s12, 1  ;;  %p290_p8 = scmp.lt.s32.totalorder %s7008_s12, 3 }
   0xc   : > { %p291_p9 = pnand %p4694_p7, %p290_p8 }
   0xd   : > { %v6694_v0 = vld [vmem:[%s8533_s1 + $0x40] sm:$0xff] (!%p291_p9)   ;;  %v6696_v2 = vld [vmem:[%s8533_s1 + $0x48] sm:$0xff] (!%p291_p9)   ;;  %p326_p10 = scmp.lt.s32.totalorder (!%p291_p9), %s7084_s13, 1  ;;  %v6698_v4 = vld [vmem:[%s8533_s1 + $0x50] sm:$0xff] (!%p291_p9)   ;;  %v7010_v31 = vmov (!%p291_p9), 0.0   ;;  %vm7011_vm0 = vmmov (!%p291_p9), 0  }
   0xe   : > { %294 = sbr.rel (%p291_p9) target bundleno = 3294 (0xcde), region = 56  ;;  %v6695_v1 = vld [vmem:[%s8533_s1] sm:$0xff] (!%p291_p9)   ;;  %5381 = vmatprep.subr.bf16.mxu0 (!%p291_p9), %v6694_v0  ;;  %v6697_v3 = vld [vmem:[%s8533_s1 + $0x8] sm:$0xff] (!%p291_p9)   ;;  %v6699_v5 = vld [vmem:[%s8533_s1 + $0x10] sm:$0xff] (!%p291_p9)   ;;  %5810 = vmatprep.subr.bf16.mxu1 (!%p291_p9), %v7010_v31  ;;  %vm666_vm1 = vcmask (!%p291_p9), 1041408   ;;  %vm662_vm2 = vcmask (!%p291_p9), 818176  }
   0xf   : > { %5382 = vmatpush3.bf16.msra.mxu0 (!%p291_p9), %v6695_v1  ;;  %v6700_v6 = vld [vmem:[%s8533_s1 + $0x58] sm:$0xff] (!%p291_p9)   ;;  %v6702_v8 = vld [vmem:[%s8533_s1 + $0x60] sm:$0xff] (!%p291_p9)   ;;  %v6704_v10 = vld [vmem:[%s8533_s1 + $0x68] sm:$0xff] (!%p291_p9)   ;;  %5824 = vmatprep.mubr.msk.bf16.mxu1 (!%p291_p9), %vm7011_vm0, %v7010_v31  ;;  %vm3243_vm3 = vcmask (!%p291_p9), 130048   ;;  %s323_s22 = sand.u32 (!%p291_p9), 1, %s7000_s10   ;;  %vm4616_vm4 = vcmask (!%p291_p9), 519168  }
  0x10   : > { %5383 = vmatprep.subr.bf16.mxu0 (!%p291_p9), %v6696_v2  ;;  %v6701_v7 = vld [vmem:[%s8533_s1 + $0x18] sm:$0xff] (!%p291_p9)   ;;  %v6703_v9 = vld [vmem:[%s8533_s1 + $0x20] sm:$0xff] (!%p291_p9)   ;;  %v6705_v12 = vld [vmem:[%s8533_s1 + $0x28] sm:$0xff] (!%p291_p9)   ;;  %s4619_s14 = scalar_lea.sflag (!%p291_p9), [#allocation3], %s323_s22 }
  0x11   : > { %v6706_v13 = vld [vmem:[%s8533_s1 + $0x70] sm:$0xff] (!%p291_p9)   ;;  %v6708_v15 = vld [vmem:[%s8533_s1 + $0x78] sm:$0xff] (!%p291_p9)   ;;  %v6734_v32 = vld [vmem:[%s8536_s4 + $0x40] sm:$0xff] (!%p291_p9)  }
  0x12   : > { %v6707_v14 = vld [vmem:[%s8533_s1 + $0x30] sm:$0xff] (!%p291_p9)   ;;  %v6709_v16 = vld [vmem:[%s8533_s1 + $0x38] sm:$0xff] (!%p291_p9)   ;;  %v6737_v33 = vld [vmem:[%s8536_s4 + $0x48] sm:$0xff] (!%p291_p9)  }
  0x13   : > { %5384 = vmatpush3.bf16.msra.mxu0 (!%p291_p9), %v6697_v3  ;;  %v6740_v34 = vld [vmem:[%s8536_s4 + $0x50] sm:$0xff] (!%p291_p9)   ;;  %v7200_v36 = vld [vmem:[%s8534_s2] ss:$0 sm:$0xff] (!%p291_p9) }
  0x14   : > { %5385 = vmatprep.subr.bf16.mxu0 (!%p291_p9), %v6698_v4 }
  0x15   : > { %s327_s16 = scalar_select %p326_p10, %s7084_s13, 1 }
  0x17   : > { %s6652_s24 = smul.u32 104, %s327_s16  ;;  %5386 = vmatpush3.bf16.msra.mxu0 %v6699_v5  ;;  %s4695_s16 = sshll.u32 %s323_s22, 2 }
  0x18   : > { %5387 = vmatprep.subr.bf16.mxu0 %v6700_v6  ;;  %s325_s26 = scalar_lea.vmem [#allocation2], %s4695_s16 }
  0x19   : > { %s7143_s17 = scalar_lea.vmem %s8532_s0, %s6652_s24  ;;  %s4632_s24 = sshll.u32 %s325_s26, 4  ;;  %s8492_s24 = int_to_ptr.vmem [resolvable:$true] %s4632_s24 }
  0x1a   : > { %v6712_v11 = vld [vmem:[%s7143_s17 + $0x4] ss:$8 sps:$4 sm:$0xff]   ;;  %v6710_v17 = vld [vmem:[%s7143_s17] ss:$8 sps:$4 sm:$0xff]   ;;  %v6713_v18 = vld [vmem:[%s7143_s17 + $0x14] ss:$8 sps:$4 sm:$0xff]  }
  0x1b   : > { %5388 = vmatpush3.bf16.msra.mxu0 %v6701_v7  ;;  %579 = vmatprep.mubr.bf16.mxu0 %v6712_v11  ;;  %v6715_v19 = vld [vmem:[%s7143_s17 + $0x10] ss:$8 sps:$4 sm:$0xff]   ;;  %v6716_v20 = vld [vmem:[%s7143_s17 + $0x24] ss:$8 sps:$4 sm:$0xff]   ;;  %v6718_v21 = vld [vmem:[%s7143_s17 + $0x20] ss:$8 sps:$4 sm:$0xff]  }
  0x1c   : > { %5389 = vmatprep.subr.bf16.mxu0 %v6702_v8  ;;  %v6719_v22 = vld [vmem:[%s7143_s17 + $0x34] ss:$8 sps:$4 sm:$0xff]   ;;  %v6721_v23 = vld [vmem:[%s7143_s17 + $0x30] ss:$8 sps:$4 sm:$0xff]   ;;  %v6722_v24 = vld [vmem:[%s7143_s17 + $0x44] ss:$8 sps:$4 sm:$0xff]  }
  0x1d   : > { %v6724_v25 = vld [vmem:[%s7143_s17 + $0x40] ss:$8 sps:$4 sm:$0xff]   ;;  %v6725_v26 = vld [vmem:[%s7143_s17 + $0x54] ss:$8 sps:$4 sm:$0xff]   ;;  %v6727_v28 = vld [vmem:[%s7143_s17 + $0x50] ss:$8 sps:$4 sm:$0xff]  }
  0x1e   : > { %v344_v27 = vld [vmem:[%s7143_s17 + $0x60] sm:$0x33]  ;;  %s5378_s17 = sshll.u32 %s7084_s13, 6  ;;  %s6946_s21 = scalar_lea.vmem %s8492_s24, 64 }
  0x1f   : > { %5390 = vmatpush3.bf16.msra.mxu0 %v6703_v9  ;;  %v4711_v29 = vcombine.high %v344_v27, %v344_v27  ;;  %v4710_v30 = vcombine.low %v344_v27, %v344_v27  ;;  %s8490_s29 = scalar_lea.hbm %s8541_s9, %s5378_s17  ;;  %p6947_p11 = scmp.ne.s32.totalorder %s8492_s24, %s6946_s21 }
  0x20   : > { %5391 = vmatprep.subr.bf16.mxu0 %v6704_v10  ;;  %s7012_s13 = smov [#allocation2]  }
  0x21   : > { %p6948_p12 = pnand %p6947_p11, %p7101_p5  ;;  %s6950_s16 = sshll.u32 %s7012_s13, 4  ;;  %s6951_s16 = int_to_ptr.vmem [resolvable:$false] %s6950_s16 }
  0x22   : > { %s6952_s23 = scalar_lea.vmem %s6951_s16, 128  ;;  %p6953_p0 = scmp.lt.s32.totalorder %s8492_s24, %s6951_s16 }
  0x23   : > { %5392 = vmatpush3.bf16.msra.mxu0 %v6705_v12  ;;  %p6949_p13 = pneg %p6948_p12  ;;  %p6954_p1 = scmp.lt.s32.totalorder %s6952_s23, %s6946_s21 }
  0x24   : > { %5393 = vmatprep.subr.bf16.mxu0 %v6706_v13 }
  0x25   : > { %p6955_p2 = por %p6954_p1, %p6953_p0 }
  0x27   : > { %5394 = vmatpush3.bf16.msra.mxu0 %v6707_v14  ;;  %p6956_p3 = pnand %p6955_p2, %p6949_p13 }
  0x28   : > { %5395 = vmatprep.subr.bf16.mxu0 %v6708_v15 }
  0x2b   : > { %5396 = vmatpush3.bf16.msra.mxu0 %v6709_v16 }
  0x2c   : > { %5846 = vmatprep.subr.bf16.mxu0 %v7010_v31 }
  0x2e   : > { %580 = vmatmul.mubr.bf16.vlgmr.msra.gmra.mrb[0].mxu0 %v6710_v17 }
  0x2f   : > { %587 = vmatprep.mubr.bf16.mxu0 %v6713_v18  ;;  %5847 = vmatpush3.bf16.msra.mxu0 %v6734_v32 }
  0x30   : > { %5848 = vmatprep.subr.bf16.mxu0 %v7010_v31 }
  0x33   : > { %5849 = vmatpush3.bf16.msra.mxu0 %v6737_v33 }
  0x34   : > { %5850 = vmatprep.subr.bf16.mxu0 %v7010_v31 }
  0x36   : > { %588 = vmatmul.mubr.bf16.gmra.mrb[4].mxu0 %v6715_v19 }
  0x37   : > { %595 = vmatprep.mubr.bf16.mxu0 %v6716_v20  ;;  %5851 = vmatpush3.bf16.msra.mxu0 %v6740_v34 }
  0x38   : > { %5852 = vmatprep.subr.bf16.mxu0 %v7010_v31 }
  0x3e   : > { %596 = vmatmul.mubr.bf16.gmra.mrb[8].mxu0 %v6718_v21 }
  0x3f   : > { %603 = vmatprep.mubr.bf16.mxu0 %v6719_v22 }
  0x46   : > { %604 = vmatmul.mubr.bf16.gmra.mrb[12].mxu0 %v6721_v23 }
  0x47   : > { %611 = vmatprep.mubr.bf16.mxu0 %v6722_v24 }
  0x4e   : > { %612 = vmatmul.mubr.bf16.gmra.mrb[16].mxu0 %v6724_v25 }
  0x4f   : > { %619 = vmatprep.mubr.bf16.mxu0 %v6725_v26 }
  0x56   : > { %620 = vmatmul.mubr.bf16.gmra.mrb[20].mxu0 %v6727_v28 }
  0x57   : > { %627 = vmatprep.mubr.bf16.mxu0 %v4711_v29 }
  0x5e   : > { %628 = vmatmul.mubr.bf16.gmra.mrb[24].mxu0 %v4710_v30 }
  0x5f   : > { %5862 = vmatprep.mubr.msk.bf16.mxu0 %vm7011_vm0, %v7010_v31 }
 0x101   : > { %v5397_v35 = vpop.f32.mrb[0].mxu0 }
 0x102   : > { %v5398_v37 = vpop.f32.mrb[1].mxu0 }
 0x103   : > { %v5399_v38 = vadd.f32 %v5398_v37, %v5397_v35  ;;  %v5400_v39 = vpop.f32.mrb[2].mxu0 }
 0x104   : > { %v5401_v40 = vpop.f32.mrb[3].mxu0 }
 0x105   : > { %v582_v41 = vadd.f32 %v5399_v38, %v7200_v36  ;;  %v5402_v42 = vadd.f32 %v5401_v40, %v5400_v39 }
 0x107   : > { %v585_v43 = vadd.f32 %v5402_v42, %v7200_v36  ;;  %v635_v44 = vmax.f32 %v582_v41, 0.0 }
 0x109   : > { %v636_v45 = vmax.f32 %v585_v43, 0.0  ;;  %v5403_v46 = vpop.f32.mrb[4].mxu0 }
 0x10a   : > { %v5404_v47 = vpop.f32.mrb[5].mxu0 }
 0x10b   : > { %v7204_v48 = vpack.c.bf16 %v636_v45, %v635_v44  ;;  %v5405_v49 = vadd.f32 %v5404_v47, %v5403_v46  ;;  %v5406_v50 = vpop.f32.mrb[6].mxu0 }
 0x10c   : > { %v5407_v51 = vpop.f32.mrb[7].mxu0 }
 0x10d   : > { %v590_v52 = vadd.f32 %v5405_v49, %v7200_v36  ;;  %v5408_v53 = vadd.f32 %v5407_v51, %v5406_v50  ;;  %5811 = vmatpush3.bf16.msra.mxu1 %v7204_v48  ;;  %v6730_v50 = vld [vmem:[%s8535_s3] sm:$0xff]  }
 0x10e   : > { %5812 = vmatprep.subr.bf16.mxu1 %v7010_v31  ;;  %v6732_v51 = vld [vmem:[%s8536_s4] sm:$0xff]  }
 0x10f   : > { %v593_v54 = vadd.f32 %v5408_v53, %v7200_v36  ;;  %v637_v55 = vmax.f32 %v590_v52, 0.0  ;;  %v6733_v52 = vld [vmem:[%s8536_s4 + $0x8] sm:$0xff]   ;;  %v6735_v53 = vld [vmem:[%s8536_s4 + $0x10] sm:$0xff]  }
 0x111   : > { %v638_v56 = vmax.f32 %v593_v54, 0.0  ;;  %v5409_v57 = vpop.f32.mrb[8].mxu0  ;;  %v6736_v54 = vld [vmem:[%s8536_s4 + $0x18] sm:$0xff]  }
 0x112   : > { %v5410_v58 = vpop.f32.mrb[9].mxu0 }
 0x113   : > { %v7210_v59 = vpack.c.bf16 %v638_v56, %v637_v55  ;;  %v5411_v60 = vadd.f32 %v5410_v58, %v5409_v57  ;;  %v5412_v61 = vpop.f32.mrb[10].mxu0  ;;  %v6738_v55 = vld [vmem:[%s8536_s4 + $0x20] sm:$0xff]   ;;  %v6739_v56 = vld [vmem:[%s8536_s4 + $0x28] sm:$0xff]   ;;  %v6741_v57 = vld [vmem:[%s8536_s4 + $0x30] sm:$0xff]  }
 0x114   : > { %v5413_v62 = vpop.f32.mrb[11].mxu0  ;;  %v6742_v58 = vld [vmem:[%s8536_s4 + $0x38] sm:$0xff]  }
 0x115   : > { %v598_v63 = vadd.f32 %v5411_v60, %v7200_v36  ;;  %v5414_v0 = vadd.f32 %v5413_v62, %v5412_v61  ;;  %5813 = vmatpush3.bf16.msra.mxu1 %v7210_v59  ;;  %v6743_v60 = vld [vmem:[%s8536_s4 + $0x58] sm:$0xff]   ;;  %v6744_v61 = vld [vmem:[%s8536_s4 + $0x60] sm:$0xff]   ;;  %v6745_v62 = vld [vmem:[%s8536_s4 + $0x68] sm:$0xff]  }
 0x116   : > { %5814 = vmatprep.subr.bf16.mxu1 %v7010_v31  ;;  %5853 = vmatpush3.bf16.msra.mxu0 %v6743_v60  ;;  %v6771_v60 = vld [vmem:[%s8536_s4 + $0xf8] sm:$0xff]  }
 0x117   : > { %v601_v1 = vadd.f32 %v5414_v0, %v7200_v36  ;;  %v639_v2 = vmax.f32 %v598_v63, 0.0  ;;  %5854 = vmatprep.subr.bf16.mxu0 %v7010_v31  ;;  %v6746_v63 = vld [vmem:[%s8536_s4 + $0x70] sm:$0xff]   ;;  %v6747_v0 = vld [vmem:[%s8536_s4 + $0x78] sm:$0xff]  }
 0x119   : > { %v640_v3 = vmax.f32 %v601_v1, 0.0  ;;  %v5415_v4 = vpop.f32.mrb[12].mxu0 }
 0x11a   : > { %v5416_v5 = vpop.f32.mrb[13].mxu0  ;;  %5855 = vmatpush3.bf16.msra.mxu0 %v6744_v61 }
 0x11b   : > { %v7216_v6 = vpack.c.bf16 %v640_v3, %v639_v2  ;;  %v5417_v7 = vadd.f32 %v5416_v5, %v5415_v4  ;;  %v5418_v8 = vpop.f32.mrb[14].mxu0  ;;  %5856 = vmatprep.subr.bf16.mxu0 %v7010_v31 }
 0x11c   : > { %v5419_v9 = vpop.f32.mrb[15].mxu0 }
 0x11d   : > { %v606_v10 = vadd.f32 %v5417_v7, %v7200_v36  ;;  %v5420_v11 = vadd.f32 %v5419_v9, %v5418_v8  ;;  %5815 = vmatpush3.bf16.msra.mxu1 %v7216_v6 }
 0x11e   : > { %5816 = vmatprep.subr.bf16.mxu1 %v7010_v31  ;;  %5857 = vmatpush3.bf16.msra.mxu0 %v6745_v62 }
 0x11f   : > { %v609_v12 = vadd.f32 %v5420_v11, %v7200_v36  ;;  %v641_v13 = vmax.f32 %v606_v10, 0.0  ;;  %5858 = vmatprep.subr.bf16.mxu0 %v7010_v31 }
 0x121   : > { %v642_v14 = vmax.f32 %v609_v12, 0.0  ;;  %v5421_v15 = vpop.f32.mrb[16].mxu0  ;;  %v6748_v12 = vld [vmem:[%s8535_s3 + $0x10] sm:$0xff]  }
 0x122   : > { %v5422_v16 = vpop.f32.mrb[17].mxu0  ;;  %5859 = vmatpush3.bf16.msra.mxu0 %v6746_v63  ;;  %v6772_v63 = vld [vmem:[%s8536_s4 + $0x100] sm:$0xff]  }
 0x123   : > { %v7222_v17 = vpack.c.bf16 %v642_v14, %v641_v13  ;;  %v5423_v18 = vadd.f32 %v5422_v16, %v5421_v15  ;;  %v5424_v19 = vpop.f32.mrb[18].mxu0  ;;  %5860 = vmatprep.subr.bf16.mxu0 %v7010_v31  ;;  %v6749_v13 = vld [vmem:[%s8535_s3 + $0x18] sm:$0xff]   ;;  %v6750_v14 = vld [vmem:[%s8535_s3 + $0x20] sm:$0xff]   ;;  %v6756_v16 = vld [vmem:[%s8536_s4 + $0x88] sm:$0xff]  }
 0x124   : > { %v5425_v20 = vpop.f32.mrb[19].mxu0  ;;  %v6755_v15 = vld [vmem:[%s8536_s4 + $0x80] sm:$0xff]  }
 0x125   : > { %v614_v21 = vadd.f32 %v5423_v18, %v7200_v36  ;;  %v5426_v22 = vadd.f32 %v5425_v20, %v5424_v19  ;;  %5817 = vmatpush3.bf16.msra.mxu1 %v7222_v17  ;;  %v6757_v18 = vld [vmem:[%s8536_s4 + $0x90] sm:$0xff]   ;;  %v6758_v19 = vld [vmem:[%s8536_s4 + $0x98] sm:$0xff]   ;;  %v6760_v20 = vld [vmem:[%s8536_s4 + $0xa0] sm:$0xff]  }
 0x126   : > { %5818 = vmatprep.subr.bf16.mxu1 %v7010_v31  ;;  %5861 = vmatpush3.bf16.msra.mxu0 %v6747_v0  ;;  %v6773_v0 = vld [vmem:[%s8536_s4 + $0x108] sm:$0xff]  }
 0x127   : > { %v617_v23 = vadd.f32 %v5426_v22, %v7200_v36  ;;  %v643_v24 = vmax.f32 %v614_v21, 0.0  ;;  %5886 = vmatprep.subr.bf16.mxu0 %v7010_v31  ;;  %v6761_v21 = vld [vmem:[%s8536_s4 + $0xa8] sm:$0xff]   ;;  %v6762_v22 = vld [vmem:[%s8536_s4 + $0xb0] sm:$0xff]  }
 0x129   : > { %v644_v25 = vmax.f32 %v617_v23, 0.0  ;;  %v5427_v26 = vpop.f32.mrb[20].mxu0  ;;  %v6751_v23 = vld [vmem:[%s8535_s3 + $0x28] sm:$0xff]  }
 0x12a   : > { %v5428_v27 = vpop.f32.mrb[21].mxu0 }
 0x12b   : > { %v7228_v28 = vpack.c.bf16 %v644_v25, %v643_v24  ;;  %v5429_v29 = vadd.f32 %v5428_v27, %v5427_v26  ;;  %v5430_v30 = vpop.f32.mrb[22].mxu0  ;;  %v6763_v24 = vld [vmem:[%s8536_s4 + $0xb8] sm:$0xff]   ;;  %v6752_v25 = vld [vmem:[%s8535_s3 + $0x30] sm:$0xff]  }
 0x12c   : > { %v5431_v32 = vpop.f32.mrb[23].mxu0  ;;  %v6753_v26 = vld [vmem:[%s8535_s3 + $0x38] sm:$0xff]  }
 0x12d   : > { %v622_v33 = vadd.f32 %v5429_v29, %v7200_v36  ;;  %v5432_v34 = vadd.f32 %v5431_v32, %v5430_v30  ;;  %5819 = vmatpush3.bf16.msra.mxu1 %v7228_v28 }
 0x12e   : > { %5820 = vmatprep.subr.bf16.mxu1 %v7010_v31 }
 0x12f   : > { %v625_v35 = vadd.f32 %v5432_v34, %v7200_v36  ;;  %v645_v37 = vmax.f32 %v622_v33, 0.0  ;;  %v6754_v33 = vld [vmem:[%s8535_s3 + $0x40] sm:$0xff]  }
 0x131   : > { %v646_v38 = vmax.f32 %v625_v35, 0.0  ;;  %v5433_v39 = vpop.f32.mrb[24].mxu0 }
 0x132   : > { %v5434_v40 = vpop.f32.mrb[25].mxu0 }
 0x133   : > { %v7234_v41 = vpack.c.bf16 %v646_v38, %v645_v37  ;;  %v5435_v42 = vadd.f32 %v5434_v40, %v5433_v39  ;;  %v5436_v43 = vpop.f32.mrb[26].mxu0 }
 0x134   : > { %v5437_v44 = vpop.f32.mrb[27].mxu0 }
 0x135   : > { %v630_v45 = vadd.f32 %v5435_v42, %v7200_v36  ;;  %5821 = vmatpush3.bf16.msra.mxu1 %v7234_v41  ;;  %v6731_v36 = vld [vmem:[%s8535_s3 + $0x8] sm:$0xff]  }
 0x136   : > { %5822 = vmatprep.subr.bf16.mxu1 %v7010_v31  ;;  %v6759_v42 = vld [vmem:[%s8535_s3 + $0x48] sm:$0xff]  }
 0x137   : > { %v647_v46 = vmax.f32 %v630_v45, 0.0 }
 0x139   : > { %v654_v47 = vpack.c.bf16 %v647_v46, %v647_v46  ;;  %v6764_v46 = vld [vmem:[%s8536_s4 + $0xc0] sm:$0xff]  }
 0x13b   : > { %v7239_v49 = vsel %vm666_vm1, %v654_v47, 0 }
 0x13c   : > { %5823 = vmatpush3.bf16.msra.mxu1 %v7239_v49 }
 0x13d   : > { %5828 = vmatprep.subr.bf16.mxu1 %v7010_v31 }
 0x13f   : > { %5825 = vmatmul.mubr.msk.bf16.vlgmr.msra.gmra.mrb[0].mxu1 %vm662_vm2, %v6730_v50 }
 0x140   : > { %5829 = vmatpush3.bf16.msra.mxu1 %v7204_v48  ;;  %5842 = vmatprep.mubr.msk.bf16.mxu1 %vm7011_vm0, %v7010_v31 }
 0x141   : > { %5830 = vmatprep.subr.bf16.mxu1 %v7010_v31 }
 0x144   : > { %5831 = vmatpush3.bf16.msra.mxu1 %v7210_v59 }
 0x145   : > { %5832 = vmatprep.subr.bf16.mxu1 %v7010_v31 }
 0x148   : > { %5833 = vmatpush3.bf16.msra.mxu1 %v7216_v6 }
 0x149   : > { %5834 = vmatprep.subr.bf16.mxu1 %v7010_v31 }
 0x14c   : > { %5835 = vmatpush3.bf16.msra.mxu1 %v7222_v17 }
 0x14d   : > { %5836 = vmatprep.subr.bf16.mxu1 %v7010_v31 }
 0x150   : > { %5837 = vmatpush3.bf16.msra.mxu1 %v7228_v28 }
 0x151   : > { %5838 = vmatprep.subr.bf16.mxu1 %v7010_v31 }
 0x154   : > { %5839 = vmatpush3.bf16.msra.mxu1 %v7234_v41 }
 0x155   : > { %5840 = vmatprep.subr.bf16.mxu1 %v7010_v31 }
 0x158   : > { %5841 = vmatpush3.bf16.msra.mxu1 %v7239_v49 }
 0x159   : > { %5866 = vmatprep.subr.bf16.mxu1 %v7010_v31 }
 0x15b   : > { %5843 = vmatmul.mubr.msk.bf16.vlgmr.msra.gmra.mrb[4].mxu1 %vm662_vm2, %v6731_v36  ;;  %v6765_v36 = vld [vmem:[%s8536_s4 + $0xc8] sm:$0xff]  }
 0x15c   : > { %5867 = vmatpush3.bf16.msra.mxu1 %v6732_v51  ;;  %5882 = vmatprep.mubr.msk.bf16.mxu1 %vm7011_vm0, %v7010_v31  ;;  %v6766_v51 = vld [vmem:[%s8536_s4 + $0xd0] sm:$0xff]  }
 0x15d   : > { %5868 = vmatprep.subr.bf16.mxu1 %v7010_v31 }
 0x160   : > { %5869 = vmatpush3.bf16.msra.mxu1 %v6733_v52  ;;  %v6767_v52 = vld [vmem:[%s8536_s4 + $0xd8] sm:$0xff]  }
 0x161   : > { %5870 = vmatprep.subr.bf16.mxu1 %v7010_v31 }
 0x164   : > { %5871 = vmatpush3.bf16.msra.mxu1 %v6735_v53  ;;  %v6768_v53 = vld [vmem:[%s8536_s4 + $0xe0] sm:$0xff]  }
 0x165   : > { %5872 = vmatprep.subr.bf16.mxu1 %v7010_v31 }
 0x168   : > { %5873 = vmatpush3.bf16.msra.mxu1 %v6736_v54  ;;  %v6769_v54 = vld [vmem:[%s8536_s4 + $0xe8] sm:$0xff]  }
 0x169   : > { %5874 = vmatprep.subr.bf16.mxu1 %v7010_v31 }
 0x16c   : > { %5875 = vmatpush3.bf16.msra.mxu1 %v6738_v55  ;;  %v6770_v55 = vld [vmem:[%s8536_s4 + $0xf0] sm:$0xff]  }
 0x16d   : > { %5876 = vmatprep.subr.bf16.mxu1 %v7010_v31 }
 0x170   : > { %5877 = vmatpush3.bf16.msra.mxu1 %v6739_v56 }
 0x171   : > { %5878 = vmatprep.subr.bf16.mxu1 %v7010_v31 }
 0x174   : > { %5879 = vmatpush3.bf16.msra.mxu1 %v6741_v57 }
 0x175   : > { %5880 = vmatprep.subr.bf16.mxu1 %v7010_v31 }
 0x178   : > { %5881 = vmatpush3.bf16.msra.mxu1 %v6742_v58 }
 0x179   : > { %5904 = vmatprep.subr.bf16.mxu1 %v7010_v31 }
 0x212   : > { %v704_v1 = vpop.f32.mrb[0].mxu1 }
 0x213   : > { %v5826_v2 = vpop.f32.mrb[1].mxu1 }
 0x214   : > { %v707_v3 = vpop.f32.mrb[2].mxu1  ;;  %v6774_v2 = vld [vmem:[%s8536_s4 + $0x110] sm:$0xff]  }
 0x215   : > { %v711_v4 = vpack.c.bf16 %v707_v3, %v704_v1  ;;  %v5827_v5 = vpop.f32.mrb[3].mxu1  ;;  %v6806_v1 = vld [vmem:[%s8536_s4 + $0x240] sm:$0xff]   ;;  %v6808_v3 = vld [vmem:[%s8536_s4 + $0x248] sm:$0xff]  }
 0x216   : > { %v6810_v5 = vld [vmem:[%s8536_s4 + $0x250] sm:$0xff]  }
 0x217   : > { %5883 = vmatmul.mubr.bf16.vlgmr.msra.gmra.mrb[8].mxu1 %v711_v4  ;;  %v6775_v4 = vld [vmem:[%s8536_s4 + $0x118] sm:$0xff]  }
 0x218   : > { %5920 = vmatprep.mubr.msk.bf16.mxu1 %vm7011_vm0, %v7010_v31  ;;  %5905 = vmatpush3.bf16.msra.mxu1 %v6755_v15 }
 0x219   : > { %5906 = vmatprep.subr.bf16.mxu1 %v7010_v31 }
 0x21c   : > { %5907 = vmatpush3.bf16.msra.mxu1 %v6756_v16 }
 0x21d   : > { %5908 = vmatprep.subr.bf16.mxu1 %v7010_v31 }
 0x220   : > { %5909 = vmatpush3.bf16.msra.mxu1 %v6757_v18  ;;  %v6816_v18 = vld [vmem:[%s8536_s4 + $0x268] sm:$0xff]  }
 0x221   : > { %5910 = vmatprep.subr.bf16.mxu1 %v7010_v31 }
 0x224   : > { %5911 = vmatpush3.bf16.msra.mxu1 %v6758_v19  ;;  %v6779_v19 = vld [vmem:[%s8536_s4 + $0x138] sm:$0xff]  }
 0x225   : > { %5912 = vmatprep.subr.bf16.mxu1 %v7010_v31 }
 0x228   : > { %5913 = vmatpush3.bf16.msra.mxu1 %v6760_v20  ;;  %v6818_v20 = vld [vmem:[%s8536_s4 + $0x270] sm:$0xff]  }
 0x229   : > { %5914 = vmatprep.subr.bf16.mxu1 %v7010_v31 }
 0x22c   : > { %5915 = vmatpush3.bf16.msra.mxu1 %v6761_v21  ;;  %v6780_v21 = vld [vmem:[%s8536_s4 + $0x140] sm:$0xff]  }
 0x22d   : > { %5916 = vmatprep.subr.bf16.mxu1 %v7010_v31 }
 0x22e   : > { %v773_v7 = vpop.f32.mrb[4].mxu1 }
 0x22f   : > { %v5844_v8 = vpop.f32.mrb[5].mxu1 }
 0x230   : > { %v776_v9 = vpop.f32.mrb[6].mxu1  ;;  %5917 = vmatpush3.bf16.msra.mxu1 %v6762_v22  ;;  %v6812_v8 = vld [vmem:[%s8536_s4 + $0x258] sm:$0xff]  }
 0x231   : > { %v780_v10 = vpack.c.bf16 %v776_v9, %v773_v7  ;;  %v5845_v11 = vpop.f32.mrb[7].mxu1  ;;  %5918 = vmatprep.subr.bf16.mxu1 %v7010_v31  ;;  %v6776_v7 = vld [vmem:[%s8536_s4 + $0x120] sm:$0xff]   ;;  %v6777_v9 = vld [vmem:[%s8536_s4 + $0x128] sm:$0xff]   ;;  %v6819_v22 = vld [vmem:[%s8536_s4 + $0x278] sm:$0xff]  }
 0x232   : > { %v6814_v11 = vld [vmem:[%s8536_s4 + $0x260] sm:$0xff]  }
 0x233   : > { %5863 = vmatmul.mubr.bf16.vlgmr.msra.gmra.mrb[28].mxu0 %v780_v10 }
 0x234   : > { %5887 = vmatpush3.bf16.msra.mxu0 %v7204_v48  ;;  %5900 = vmatprep.mubr.msk.bf16.mxu0 %vm7011_vm0, %v7010_v31 }
 0x235   : > { %5888 = vmatprep.subr.bf16.mxu0 %v7010_v31  ;;  %5919 = vmatpush3.bf16.msra.mxu1 %v6763_v24  ;;  %v6782_v24 = vld [vmem:[%s8536_s4 + $0x150] sm:$0xff]  }
 0x236   : > { %5942 = vmatprep.subr.bf16.mxu1 %v7010_v31 }
 0x238   : > { %5889 = vmatpush3.bf16.msra.mxu0 %v7210_v59 }
 0x239   : > { %5890 = vmatprep.subr.bf16.mxu0 %v7010_v31 }
 0x23c   : > { %5891 = vmatpush3.bf16.msra.mxu0 %v7216_v6 }
 0x23d   : > { %5892 = vmatprep.subr.bf16.mxu0 %v7010_v31 }
 0x240   : > { %5893 = vmatpush3.bf16.msra.mxu0 %v7222_v17 }
 0x241   : > { %5894 = vmatprep.subr.bf16.mxu0 %v7010_v31 }
 0x244   : > { %5895 = vmatpush3.bf16.msra.mxu0 %v7228_v28 }
 0x245   : > { %5896 = vmatprep.subr.bf16.mxu0 %v7010_v31 }
 0x248   : > { %5897 = vmatpush3.bf16.msra.mxu0 %v7234_v41 }
 0x249   : > { %5898 = vmatprep.subr.bf16.mxu0 %v7010_v31 }
 0x24c   : > { %5899 = vmatpush3.bf16.msra.mxu0 %v7239_v49 }
 0x24d   : > { %5924 = vmatprep.subr.bf16.mxu0 %v7010_v31 }
 0x24f   : > { %5901 = vmatmul.mubr.msk.bf16.vlgmr.msra.gmra.mrb[32].mxu0 %vm662_vm2, %v6748_v12 }
 0x250   : > { %5925 = vmatpush3.bf16.msra.mxu0 %v7204_v48  ;;  %5938 = vmatprep.mubr.msk.bf16.mxu0 %vm7011_vm0, %v7010_v31 }
 0x251   : > { %5926 = vmatprep.subr.bf16.mxu0 %v7010_v31 }
 0x254   : > { %5927 = vmatpush3.bf16.msra.mxu0 %v7210_v59 }
 0x255   : > { %5928 = vmatprep.subr.bf16.mxu0 %v7010_v31 }
 0x258   : > { %5929 = vmatpush3.bf16.msra.mxu0 %v7216_v6 }
 0x259   : > { %5930 = vmatprep.subr.bf16.mxu0 %v7010_v31 }
 0x25c   : > { %5931 = vmatpush3.bf16.msra.mxu0 %v7222_v17 }
 0x25d   : > { %5932 = vmatprep.subr.bf16.mxu0 %v7010_v31 }
 0x260   : > { %5933 = vmatpush3.bf16.msra.mxu0 %v7228_v28 }
 0x261   : > { %5934 = vmatprep.subr.bf16.mxu0 %v7010_v31 }
 0x264   : > { %5935 = vmatpush3.bf16.msra.mxu0 %v7234_v41 }
 0x265   : > { %5936 = vmatprep.subr.bf16.mxu0 %v7010_v31 }
 0x268   : > { %5937 = vmatpush3.bf16.msra.mxu0 %v7239_v49 }
 0x269   : > { %5962 = vmatprep.subr.bf16.mxu0 %v7010_v31 }
 0x26b   : > { %5939 = vmatmul.mubr.msk.bf16.vlgmr.msra.gmra.mrb[36].mxu0 %vm662_vm2, %v6749_v13 }
 0x26c   : > { %5963 = vmatpush3.bf16.msra.mxu0 %v7204_v48  ;;  %5976 = vmatprep.mubr.msk.bf16.mxu0 %vm7011_vm0, %v7010_v31 }
 0x26d   : > { %5964 = vmatprep.subr.bf16.mxu0 %v7010_v31 }
 0x270   : > { %5965 = vmatpush3.bf16.msra.mxu0 %v7210_v59 }
 0x271   : > { %5966 = vmatprep.subr.bf16.mxu0 %v7010_v31 }
 0x274   : > { %5967 = vmatpush3.bf16.msra.mxu0 %v7216_v6 }
 0x275   : > { %5968 = vmatprep.subr.bf16.mxu0 %v7010_v31 }
 0x278   : > { %5969 = vmatpush3.bf16.msra.mxu0 %v7222_v17 }
 0x279   : > { %5970 = vmatprep.subr.bf16.mxu0 %v7010_v31 }
 0x27c   : > { %5971 = vmatpush3.bf16.msra.mxu0 %v7228_v28 }
 0x27d   : > { %5972 = vmatprep.subr.bf16.mxu0 %v7010_v31 }
 0x280   : > { %5973 = vmatpush3.bf16.msra.mxu0 %v7234_v41 }
 0x281   : > { %5974 = vmatprep.subr.bf16.mxu0 %v7010_v31 }
 0x284   : > { %5975 = vmatpush3.bf16.msra.mxu0 %v7239_v49 }
 0x285   : > { %6000 = vmatprep.subr.bf16.mxu0 %v7010_v31 }
 0x287   : > { %5977 = vmatmul.mubr.msk.bf16.vlgmr.msra.gmra.mrb[40].mxu0 %vm662_vm2, %v6750_v14  ;;  %v6778_v14 = vld [vmem:[%s8536_s4 + $0x130] sm:$0xff]  }
 0x288   : > { %6001 = vmatpush3.bf16.msra.mxu0 %v7204_v48  ;;  %6014 = vmatprep.mubr.msk.bf16.mxu0 %vm7011_vm0, %v7010_v31 }
 0x289   : > { %6002 = vmatprep.subr.bf16.mxu0 %v7010_v31 }
 0x28c   : > { %6003 = vmatpush3.bf16.msra.mxu0 %v7210_v59 }
 0x28d   : > { %6004 = vmatprep.subr.bf16.mxu0 %v7010_v31 }
 0x290   : > { %6005 = vmatpush3.bf16.msra.mxu0 %v7216_v6 }
 0x291   : > { %6006 = vmatprep.subr.bf16.mxu0 %v7010_v31 }
 0x294   : > { %6007 = vmatpush3.bf16.msra.mxu0 %v7222_v17 }
 0x295   : > { %6008 = vmatprep.subr.bf16.mxu0 %v7010_v31 }
 0x298   : > { %6009 = vmatpush3.bf16.msra.mxu0 %v7228_v28 }
 0x299   : > { %6010 = vmatprep.subr.bf16.mxu0 %v7010_v31 }
 0x29c   : > { %6011 = vmatpush3.bf16.msra.mxu0 %v7234_v41 }
 0x29d   : > { %6012 = vmatprep.subr.bf16.mxu0 %v7010_v31 }
 0x2a0   : > { %6013 = vmatpush3.bf16.msra.mxu0 %v7239_v49 }
 0x2a1   : > { %6038 = vmatprep.subr.bf16.mxu0 %v7010_v31 }
 0x2a3   : > { %6015 = vmatmul.mubr.msk.bf16.vlgmr.msra.gmra.mrb[44].mxu0 %vm662_vm2, %v6751_v23  ;;  %v6781_v23 = vld [vmem:[%s8536_s4 + $0x148] sm:$0xff]  }
 0x2a4   : > { %6039 = vmatpush3.bf16.msra.mxu0 %v7204_v48  ;;  %6052 = vmatprep.mubr.msk.bf16.mxu0 %vm7011_vm0, %v7010_v31 }
 0x2a5   : > { %6040 = vmatprep.subr.bf16.mxu0 %v7010_v31 }
 0x2a8   : > { %6041 = vmatpush3.bf16.msra.mxu0 %v7210_v59 }
 0x2a9   : > { %6042 = vmatprep.subr.bf16.mxu0 %v7010_v31 }
 0x2ac   : > { %6043 = vmatpush3.bf16.msra.mxu0 %v7216_v6 }
 0x2ad   : > { %6044 = vmatprep.subr.bf16.mxu0 %v7010_v31 }
 0x2b0   : > { %6045 = vmatpush3.bf16.msra.mxu0 %v7222_v17 }
 0x2b1   : > { %6046 = vmatprep.subr.bf16.mxu0 %v7010_v31 }
 0x2b4   : > { %6047 = vmatpush3.bf16.msra.mxu0 %v7228_v28 }
 0x2b5   : > { %6048 = vmatprep.subr.bf16.mxu0 %v7010_v31 }
 0x2b8   : > { %6049 = vmatpush3.bf16.msra.mxu0 %v7234_v41 }
 0x2b9   : > { %6050 = vmatprep.subr.bf16.mxu0 %v7010_v31 }
 0x2bc   : > { %6051 = vmatpush3.bf16.msra.mxu0 %v7239_v49 }
 0x2bd   : > { %6076 = vmatprep.subr.bf16.mxu0 %v7010_v31 }
 0x2bf   : > { %6053 = vmatmul.mubr.msk.bf16.vlgmr.msra.gmra.mrb[48].mxu0 %vm662_vm2, %v6752_v25  ;;  %v6783_v25 = vld [vmem:[%s8536_s4 + $0x158] sm:$0xff]  }
 0x2c0   : > { %6077 = vmatpush3.bf16.msra.mxu0 %v7204_v48  ;;  %6090 = vmatprep.mubr.msk.bf16.mxu0 %vm7011_vm0, %v7010_v31 }
 0x2c1   : > { %6078 = vmatprep.subr.bf16.mxu0 %v7010_v31 }
 0x2c4   : > { %6079 = vmatpush3.bf16.msra.mxu0 %v7210_v59 }
 0x2c5   : > { %6080 = vmatprep.subr.bf16.mxu0 %v7010_v31 }
 0x2c8   : > { %6081 = vmatpush3.bf16.msra.mxu0 %v7216_v6 }
 0x2c9   : > { %6082 = vmatprep.subr.bf16.mxu0 %v7010_v31 }
 0x2cc   : > { %6083 = vmatpush3.bf16.msra.mxu0 %v7222_v17 }
 0x2cd   : > { %6084 = vmatprep.subr.bf16.mxu0 %v7010_v31 }
 0x2d0   : > { %6085 = vmatpush3.bf16.msra.mxu0 %v7228_v28 }
 0x2d1   : > { %6086 = vmatprep.subr.bf16.mxu0 %v7010_v31 }
 0x2d4   : > { %6087 = vmatpush3.bf16.msra.mxu0 %v7234_v41 }
 0x2d5   : > { %6088 = vmatprep.subr.bf16.mxu0 %v7010_v31 }
 0x2d8   : > { %6089 = vmatpush3.bf16.msra.mxu0 %v7239_v49 }
 0x2d9   : > { %6114 = vmatprep.subr.bf16.mxu0 %v7010_v31 }
 0x2db   : > { %6091 = vmatmul.mubr.msk.bf16.vlgmr.msra.gmra.mrb[52].mxu0 %vm662_vm2, %v6753_v26  ;;  %v6784_v26 = vld [vmem:[%s8536_s4 + $0x160] sm:$0xff]  }
 0x2dc   : > { %6115 = vmatpush3.bf16.msra.mxu0 %v7204_v48  ;;  %6128 = vmatprep.mubr.msk.bf16.mxu0 %vm7011_vm0, %v7010_v31 }
 0x2dd   : > { %6116 = vmatprep.subr.bf16.mxu0 %v7010_v31 }
 0x2e0   : > { %6117 = vmatpush3.bf16.msra.mxu0 %v7210_v59 }
 0x2e1   : > { %6118 = vmatprep.subr.bf16.mxu0 %v7010_v31 }
 0x2e4   : > { %6119 = vmatpush3.bf16.msra.mxu0 %v7216_v6 }
 0x2e5   : > { %6120 = vmatprep.subr.bf16.mxu0 %v7010_v31 }
 0x2e8   : > { %6121 = vmatpush3.bf16.msra.mxu0 %v7222_v17 }
 0x2e9   : > { %6122 = vmatprep.subr.bf16.mxu0 %v7010_v31 }
 0x2ea   : > { %v969_v27 = vpop.f32.mrb[8].mxu1 }
 0x2eb   : > { %v5884_v29 = vpop.f32.mrb[9].mxu1 }
 0x2ec   : > { %6123 = vmatpush3.bf16.msra.mxu0 %v7228_v28  ;;  %v972_v30 = vpop.f32.mrb[10].mxu1 }
 0x2ed   : > { %v5885_v32 = vpop.f32.mrb[11].mxu1  ;;  %6124 = vmatprep.subr.bf16.mxu0 %v7010_v31 }
 0x2ee   : > { %v6785_v32 = vld [vmem:[%s8536_s4 + $0x168] sm:$0xff]  }
 0x2f0   : > { %6125 = vmatpush3.bf16.msra.mxu0 %v7234_v41 }
 0x2f1   : > { %6126 = vmatprep.subr.bf16.mxu0 %v7010_v31 }
 0x2f4   : > { %6127 = vmatpush3.bf16.msra.mxu0 %v7239_v49 }
 0x2f5   : > { %6152 = vmatprep.subr.bf16.mxu0 %v7010_v31 }
 0x2f7   : > { %6129 = vmatmul.mubr.msk.bf16.vlgmr.msra.gmra.mrb[56].mxu0 %vm662_vm2, %v6754_v33 }
 0x2f8   : > { %6153 = vmatpush3.bf16.msra.mxu0 %v7204_v48  ;;  %6166 = vmatprep.mubr.msk.bf16.mxu0 %vm7011_vm0, %v7010_v31 }
 0x2f9   : > { %6154 = vmatprep.subr.bf16.mxu0 %v7010_v31 }
 0x2fc   : > { %6155 = vmatpush3.bf16.msra.mxu0 %v7210_v59 }
 0x2fd   : > { %6156 = vmatprep.subr.bf16.mxu0 %v7010_v31 }
 0x300   : > { %6157 = vmatpush3.bf16.msra.mxu0 %v7216_v6 }
 0x301   : > { %6158 = vmatprep.subr.bf16.mxu0 %v7010_v31 }
 0x304   : > { %6159 = vmatpush3.bf16.msra.mxu0 %v7222_v17 }
 0x305   : > { %6160 = vmatprep.subr.bf16.mxu0 %v7010_v31 }
 0x306   : > { %v880_v34 = vpop.f32.mrb[28].mxu0 }
 0x307   : > { %v7505_v35 = vadd.f32 %v969_v27, %v880_v34  ;;  %v5864_v37 = vpop.f32.mrb[29].mxu0 }
 0x308   : > { %6161 = vmatpush3.bf16.msra.mxu0 %v7228_v28  ;;  %v883_v38 = vpop.f32.mrb[30].mxu0  ;;  %v6786_v37 = vld [vmem:[%s8536_s4 + $0x170] sm:$0xff]  }
 0x309   : > { %v7508_v39 = vadd.f32 %v972_v30, %v883_v38  ;;  %v5865_v40 = vpop.f32.mrb[31].mxu0  ;;  %6162 = vmatprep.subr.bf16.mxu0 %v7010_v31  ;;  %v6787_v38 = vld [vmem:[%s8536_s4 + $0x178] sm:$0xff]  }
 0x30a   : > { %v6788_v40 = vld [vmem:[%s8536_s4 + $0x180] sm:$0xff]  }
 0x30c   : > { %6163 = vmatpush3.bf16.msra.mxu0 %v7234_v41 }
 0x30d   : > { %6164 = vmatprep.subr.bf16.mxu0 %v7010_v31 }
 0x310   : > { %6165 = vmatpush3.bf16.msra.mxu0 %v7239_v49 }
 0x311   : > { %6170 = vmatprep.subr.bf16.mxu0 %v7010_v31 }
 0x313   : > { %6167 = vmatmul.mubr.msk.bf16.vlgmr.msra.gmra.mrb[60].mxu0 %vm662_vm2, %v6759_v42  ;;  %v6789_v42 = vld [vmem:[%s8536_s4 + $0x188] sm:$0xff]  }
 0x314   : > { %6186 = vmatprep.mubr.msk.bf16.mxu0 %vm7011_vm0, %v7010_v31  ;;  %6171 = vmatpush3.bf16.msra.mxu0 %v6806_v1  ;;  %v6800_v1 = vld [vmem:[%s8536_s4 + $0x1e0] sm:$0xff]  }
 0x315   : > { %6172 = vmatprep.subr.bf16.mxu0 %v7010_v31 }
 0x318   : > { %6173 = vmatpush3.bf16.msra.mxu0 %v6808_v3  ;;  %v6802_v3 = vld [vmem:[%s8536_s4 + $0x1f0] sm:$0xff]  }
 0x319   : > { %6174 = vmatprep.subr.bf16.mxu0 %v7010_v31 }
 0x31c   : > { %6175 = vmatpush3.bf16.msra.mxu0 %v6810_v5  ;;  %v6804_v5 = vld [vmem:[%s8536_s4 + $0x200] sm:$0xff]  }
 0x31d   : > { %6176 = vmatprep.subr.bf16.mxu0 %v7010_v31 }
 0x320   : > { %6177 = vmatpush3.bf16.msra.mxu0 %v6812_v8 }
 0x321   : > { %6178 = vmatprep.subr.bf16.mxu0 %v7010_v31 }
 0x322   : > { %v1021_v43 = vpop.f32.mrb[32].mxu0 }
 0x323   : > { %v5902_v44 = vpop.f32.mrb[33].mxu0 }
 0x324   : > { %v1024_v45 = vpop.f32.mrb[34].mxu0  ;;  %6179 = vmatpush3.bf16.msra.mxu0 %v6814_v11  ;;  %v6791_v44 = vld [vmem:[%s8536_s4 + $0x198] sm:$0xff]   ;;  %v6807_v11 = vld [vmem:[%s8536_s4 + $0x210] sm:$0xff]  }
 0x325   : > { %v1028_v47 = vpack.c.bf16 %v1024_v45, %v1021_v43  ;;  %v5903_v50 = vpop.f32.mrb[35].mxu0  ;;  %6180 = vmatprep.subr.bf16.mxu0 %v7010_v31  ;;  %v6790_v43 = vld [vmem:[%s8536_s4 + $0x190] sm:$0xff]  }
 0x326   : > { %v6792_v50 = vld [vmem:[%s8536_s4 + $0x1a0] sm:$0xff]  }
 0x327   : > { %5921 = vmatmul.mubr.bf16.vlgmr.msra.gmra.mrb[12].mxu1 %v1028_v47 }
 0x328   : > { %5943 = vmatpush3.bf16.msra.mxu1 %v6764_v46  ;;  %5958 = vmatprep.mubr.msk.bf16.mxu1 %vm7011_vm0, %v7010_v31 }
 0x329   : > { %5944 = vmatprep.subr.bf16.mxu1 %v7010_v31  ;;  %6181 = vmatpush3.bf16.msra.mxu0 %v6816_v18  ;;  %v6815_v18 = vld [vmem:[%s8536_s4 + $0x230] sm:$0xff]  }
 0x32a   : > { %6182 = vmatprep.subr.bf16.mxu0 %v7010_v31 }
 0x32c   : > { %5945 = vmatpush3.bf16.msra.mxu1 %v6765_v36 }
 0x32d   : > { %5946 = vmatprep.subr.bf16.mxu1 %v7010_v31  ;;  %6183 = vmatpush3.bf16.msra.mxu0 %v6818_v20 }
 0x32e   : > { %6184 = vmatprep.subr.bf16.mxu0 %v7010_v31 }
 0x330   : > { %5947 = vmatpush3.bf16.msra.mxu1 %v6766_v51 }
 0x331   : > { %5948 = vmatprep.subr.bf16.mxu1 %v7010_v31  ;;  %6185 = vmatpush3.bf16.msra.mxu0 %v6819_v22 }
 0x332   : > { %6228 = vmatprep.subr.bf16.mxu0 %v7010_v31 }
 0x334   : > { %5949 = vmatpush3.bf16.msra.mxu1 %v6767_v52  ;;  %v6793_v52 = vld [vmem:[%s8536_s4 + $0x1a8] sm:$0xff]  }
 0x335   : > { %5950 = vmatprep.subr.bf16.mxu1 %v7010_v31 }
 0x338   : > { %5951 = vmatpush3.bf16.msra.mxu1 %v6768_v53  ;;  %v6794_v53 = vld [vmem:[%s8536_s4 + $0x1b0] sm:$0xff]  }
 0x339   : > { %5952 = vmatprep.subr.bf16.mxu1 %v7010_v31 }
 0x33c   : > { %5953 = vmatpush3.bf16.msra.mxu1 %v6769_v54  ;;  %v6795_v54 = vld [vmem:[%s8536_s4 + $0x1b8] sm:$0xff]  }
 0x33d   : > { %5954 = vmatprep.subr.bf16.mxu1 %v7010_v31 }
 0x33e   : > { %v1182_v56 = vpop.f32.mrb[36].mxu0 }
 0x33f   : > { %v5940_v57 = vpop.f32.mrb[37].mxu0 }
 0x340   : > { %5955 = vmatpush3.bf16.msra.mxu1 %v6770_v55  ;;  %v1185_v58 = vpop.f32.mrb[38].mxu0  ;;  %v6796_v55 = vld [vmem:[%s8536_s4 + $0x1c0] sm:$0xff]   ;;  %v6798_v57 = vld [vmem:[%s8536_s4 + $0x1d0] sm:$0xff]  }
 0x341   : > { %v1189_v61 = vpack.c.bf16 %v1185_v58, %v1182_v56  ;;  %v5941_v62 = vpop.f32.mrb[39].mxu0  ;;  %5956 = vmatprep.subr.bf16.mxu1 %v7010_v31  ;;  %v6797_v56 = vld [vmem:[%s8536_s4 + $0x1c8] sm:$0xff]  }
 0x342   : > { %v6799_v62 = vld [vmem:[%s8536_s4 + $0x1d8] sm:$0xff]  }
 0x344   : > { %5957 = vmatpush3.bf16.msra.mxu1 %v6771_v60 }
 0x345   : > { %5980 = vmatprep.subr.bf16.mxu1 %v7010_v31 }
 0x347   : > { %5959 = vmatmul.mubr.bf16.vlgmr.msra.gmra.mrb[16].mxu1 %v1189_v61 }
 0x348   : > { %5981 = vmatpush3.bf16.msra.mxu1 %v6772_v63  ;;  %5996 = vmatprep.mubr.msk.bf16.mxu1 %vm7011_vm0, %v7010_v31 }
 0x349   : > { %5982 = vmatprep.subr.bf16.mxu1 %v7010_v31 }
 0x34c   : > { %5983 = vmatpush3.bf16.msra.mxu1 %v6773_v0 }
 0x34d   : > { %5984 = vmatprep.subr.bf16.mxu1 %v7010_v31 }
 0x350   : > { %5985 = vmatpush3.bf16.msra.mxu1 %v6774_v2  ;;  %v6801_v2 = vld [vmem:[%s8536_s4 + $0x1e8] sm:$0xff]  }
 0x351   : > { %5986 = vmatprep.subr.bf16.mxu1 %v7010_v31 }
 0x354   : > { %5987 = vmatpush3.bf16.msra.mxu1 %v6775_v4  ;;  %v6803_v4 = vld [vmem:[%s8536_s4 + $0x1f8] sm:$0xff]  }
 0x355   : > { %5988 = vmatprep.subr.bf16.mxu1 %v7010_v31 }
 0x358   : > { %5989 = vmatpush3.bf16.msra.mxu1 %v6776_v7  ;;  %v6805_v7 = vld [vmem:[%s8536_s4 + $0x208] sm:$0xff]  }
 0x359   : > { %5990 = vmatprep.subr.bf16.mxu1 %v7010_v31 }
 0x35a   : > { %v1343_v10 = vpop.f32.mrb[40].mxu0 }
 0x35b   : > { %v5978_v12 = vpop.f32.mrb[41].mxu0 }
 0x35c   : > { %5991 = vmatpush3.bf16.msra.mxu1 %v6777_v9  ;;  %v1346_v13 = vpop.f32.mrb[42].mxu0 }
 0x35d   : > { %v1350_v15 = vpack.c.bf16 %v1346_v13, %v1343_v10  ;;  %v5979_v16 = vpop.f32.mrb[43].mxu0  ;;  %5992 = vmatprep.subr.bf16.mxu1 %v7010_v31 }
 0x35e   : > { %v6813_v16 = vld [vmem:[%s8536_s4 + $0x228] sm:$0xff]  }
 0x360   : > { %5993 = vmatpush3.bf16.msra.mxu1 %v6778_v14  ;;  %v6809_v14 = vld [vmem:[%s8536_s4 + $0x218] sm:$0xff]  }
 0x361   : > { %5994 = vmatprep.subr.bf16.mxu1 %v7010_v31 }
 0x364   : > { %5995 = vmatpush3.bf16.msra.mxu1 %v6779_v19  ;;  %v6817_v19 = vld [vmem:[%s8536_s4 + $0x238] sm:$0xff]  }
 0x365   : > { %6018 = vmatprep.subr.bf16.mxu1 %v7010_v31 }
 0x367   : > { %5997 = vmatmul.mubr.bf16.vlgmr.msra.gmra.mrb[20].mxu1 %v1350_v15  ;;  %v6811_v15 = vld [vmem:[%s8536_s4 + $0x220] sm:$0xff]  }
 0x368   : > { %6019 = vmatpush3.bf16.msra.mxu1 %v6780_v21  ;;  %6034 = vmatprep.mubr.msk.bf16.mxu1 %vm7011_vm0, %v7010_v31 }
 0x369   : > { %6020 = vmatprep.subr.bf16.mxu1 %v7010_v31 }
 0x36c   : > { %6021 = vmatpush3.bf16.msra.mxu1 %v6781_v23 }
 0x36d   : > { %6022 = vmatprep.subr.bf16.mxu1 %v7010_v31 }
 0x370   : > { %6023 = vmatpush3.bf16.msra.mxu1 %v6782_v24 }
 0x371   : > { %6024 = vmatprep.subr.bf16.mxu1 %v7010_v31 }
 0x374   : > { %6025 = vmatpush3.bf16.msra.mxu1 %v6783_v25 }
 0x375   : > { %6026 = vmatprep.subr.bf16.mxu1 %v7010_v31 }
 0x376   : > { %v1504_v27 = vpop.f32.mrb[44].mxu0 }
 0x377   : > { %v6016_v29 = vpop.f32.mrb[45].mxu0 }
 0x378   : > { %6027 = vmatpush3.bf16.msra.mxu1 %v6784_v26  ;;  %v1507_v30 = vpop.f32.mrb[46].mxu0 }
 0x379   : > { %v1511_v33 = vpack.c.bf16 %v1507_v30, %v1504_v27  ;;  %v6017_v34 = vpop.f32.mrb[47].mxu0  ;;  %6028 = vmatprep.subr.bf16.mxu1 %v7010_v31 }
 0x37c   : > { %6029 = vmatpush3.bf16.msra.mxu1 %v6785_v32 }
 0x37d   : > { %6030 = vmatprep.subr.bf16.mxu1 %v7010_v31 }
 0x380   : > { %6031 = vmatpush3.bf16.msra.mxu1 %v6786_v37 }
 0x381   : > { %6032 = vmatprep.subr.bf16.mxu1 %v7010_v31 }
 0x384   : > { %6033 = vmatpush3.bf16.msra.mxu1 %v6787_v38 }
 0x385   : > { %6056 = vmatprep.subr.bf16.mxu1 %v7010_v31 }
 0x387   : > { %6035 = vmatmul.mubr.bf16.vlgmr.msra.gmra.mrb[24].mxu1 %v1511_v33  ;;  %v6820_v33 = vld [vmem:[%s8535_s3 + $0x50] sm:$0xff]  }
 0x388   : > { %6057 = vmatpush3.bf16.msra.mxu1 %v6788_v40  ;;  %6072 = vmatprep.mubr.msk.bf16.mxu1 %vm7011_vm0, %v7010_v31 }
 0x389   : > { %6058 = vmatprep.subr.bf16.mxu1 %v7010_v31 }
 0x38c   : > { %6059 = vmatpush3.bf16.msra.mxu1 %v6789_v42 }
 0x38d   : > { %6060 = vmatprep.subr.bf16.mxu1 %v7010_v31 }
 0x390   : > { %6061 = vmatpush3.bf16.msra.mxu1 %v6790_v43  ;;  %v6822_v43 = vld [vmem:[%s8536_s4 + $0x280] sm:$0xff]  }
 0x391   : > { %6062 = vmatprep.subr.bf16.mxu1 %v7010_v31 }
 0x392   : > { %v1665_v45 = vpop.f32.mrb[48].mxu0 }
 0x393   : > { %v6054_v46 = vpop.f32.mrb[49].mxu0 }
 0x394   : > { %6063 = vmatpush3.bf16.msra.mxu1 %v6791_v44  ;;  %v1668_v47 = vpop.f32.mrb[50].mxu0 }
 0x395   : > { %v1672_v36 = vpack.c.bf16 %v1668_v47, %v1665_v45  ;;  %v6055_v51 = vpop.f32.mrb[51].mxu0  ;;  %6064 = vmatprep.subr.bf16.mxu1 %v7010_v31 }
 0x396   : > { %v6823_v51 = vld [vmem:[%s8536_s4 + $0x288] sm:$0xff]  }
 0x398   : > { %6065 = vmatpush3.bf16.msra.mxu1 %v6792_v50 }
 0x399   : > { %6066 = vmatprep.subr.bf16.mxu1 %v7010_v31 }
 0x39c   : > { %6067 = vmatpush3.bf16.msra.mxu1 %v6793_v52  ;;  %v6824_v52 = vld [vmem:[%s8536_s4 + $0x2c0] sm:$0xff]  }
 0x39d   : > { %6068 = vmatprep.subr.bf16.mxu1 %v7010_v31 }
 0x3a0   : > { %6069 = vmatpush3.bf16.msra.mxu1 %v6794_v53  ;;  %v6825_v53 = vld [vmem:[%s8536_s4 + $0x290] sm:$0xff]  }
 0x3a1   : > { %6070 = vmatprep.subr.bf16.mxu1 %v7010_v31 }
 0x3a4   : > { %6071 = vmatpush3.bf16.msra.mxu1 %v6795_v54  ;;  %v6826_v54 = vld [vmem:[%s8536_s4 + $0x2c8] sm:$0xff]  }
 0x3a5   : > { %6094 = vmatprep.subr.bf16.mxu1 %v7010_v31 }
 0x3a7   : > { %6073 = vmatmul.mubr.bf16.vlgmr.msra.gmra.mrb[28].mxu1 %v1672_v36 }
 0x3a8   : > { %6095 = vmatpush3.bf16.msra.mxu1 %v6796_v55  ;;  %6110 = vmatprep.mubr.msk.bf16.mxu1 %vm7011_vm0, %v7010_v31  ;;  %v6827_v55 = vld [vmem:[%s8536_s4 + $0x298] sm:$0xff]  }
 0x3a9   : > { %6096 = vmatprep.subr.bf16.mxu1 %v7010_v31 }
 0x3ac   : > { %6097 = vmatpush3.bf16.msra.mxu1 %v6797_v56  ;;  %v6828_v56 = vld [vmem:[%s8536_s4 + $0x2d0] sm:$0xff]  }
 0x3ad   : > { %6098 = vmatprep.subr.bf16.mxu1 %v7010_v31 }
 0x3ae   : > { %v1826_v58 = vpop.f32.mrb[52].mxu0 }
 0x3af   : > { %v6092_v60 = vpop.f32.mrb[53].mxu0 }
 0x3b0   : > { %6099 = vmatpush3.bf16.msra.mxu1 %v6798_v57  ;;  %v1829_v61 = vpop.f32.mrb[54].mxu0  ;;  %v6829_v57 = vld [vmem:[%s8536_s4 + $0x2a0] sm:$0xff]   ;;  %v6831_v60 = vld [vmem:[%s8536_s4 + $0x2a8] sm:$0xff]  }
 0x3b1   : > { %v1833_v63 = vpack.c.bf16 %v1829_v61, %v1826_v58  ;;  %v6093_v0 = vpop.f32.mrb[55].mxu0  ;;  %6100 = vmatprep.subr.bf16.mxu1 %v7010_v31  ;;  %v6830_v58 = vld [vmem:[%s8536_s4 + $0x2d8] sm:$0xff]   ;;  %v6832_v61 = vld [vmem:[%s8536_s4 + $0x2e0] sm:$0xff]  }
 0x3b2   : > { %v6835_v0 = vld [vmem:[%s8536_s4 + $0x2b8] sm:$0xff]  }
 0x3b4   : > { %6101 = vmatpush3.bf16.msra.mxu1 %v6799_v62  ;;  %v6833_v62 = vld [vmem:[%s8536_s4 + $0x2b0] sm:$0xff]  }
 0x3b5   : > { %6102 = vmatprep.subr.bf16.mxu1 %v7010_v31 }
 0x3b8   : > { %6103 = vmatpush3.bf16.msra.mxu1 %v6800_v1  ;;  %v6836_v1 = vld [vmem:[%s8536_s4 + $0x2f0] sm:$0xff]  }
 0x3b9   : > { %6104 = vmatprep.subr.bf16.mxu1 %v7010_v31 }
 0x3bc   : > { %6105 = vmatpush3.bf16.msra.mxu1 %v6801_v2  ;;  %v6837_v2 = vld [vmem:[%s8536_s4 + $0x2f8] sm:$0xff]  }
 0x3bd   : > { %6106 = vmatprep.subr.bf16.mxu1 %v7010_v31 }
 0x3c0   : > { %6107 = vmatpush3.bf16.msra.mxu1 %v6802_v3 }
 0x3c1   : > { %6108 = vmatprep.subr.bf16.mxu1 %v7010_v31 }
 0x3c4   : > { %6109 = vmatpush3.bf16.msra.mxu1 %v6803_v4 }
 0x3c5   : > { %6132 = vmatprep.subr.bf16.mxu1 %v7010_v31 }
 0x3c7   : > { %6111 = vmatmul.mubr.bf16.vlgmr.msra.gmra.mrb[32].mxu1 %v1833_v63  ;;  %v6834_v63 = vld [vmem:[%s8536_s4 + $0x2e8] sm:$0xff]  }
 0x3c8   : > { %6133 = vmatpush3.bf16.msra.mxu1 %v6804_v5  ;;  %6148 = vmatprep.mubr.msk.bf16.mxu1 %vm7011_vm0, %v7010_v31 }
 0x3c9   : > { %6134 = vmatprep.subr.bf16.mxu1 %v7010_v31 }
 0x3ca   : > { %v1987_v8 = vpop.f32.mrb[56].mxu0 }
 0x3cb   : > { %v6130_v9 = vpop.f32.mrb[57].mxu0 }
 0x3cc   : > { %6135 = vmatpush3.bf16.msra.mxu1 %v6805_v7  ;;  %v1990_v10 = vpop.f32.mrb[58].mxu0 }
 0x3cd   : > { %v1994_v12 = vpack.c.bf16 %v1990_v10, %v1987_v8  ;;  %v6131_v13 = vpop.f32.mrb[59].mxu0  ;;  %6136 = vmatprep.subr.bf16.mxu1 %v7010_v31 }
 0x3d0   : > { %6137 = vmatpush3.bf16.msra.mxu1 %v6807_v11 }
 0x3d1   : > { %6138 = vmatprep.subr.bf16.mxu1 %v7010_v31 }
 0x3d4   : > { %6139 = vmatpush3.bf16.msra.mxu1 %v6809_v14 }
 0x3d5   : > { %6140 = vmatprep.subr.bf16.mxu1 %v7010_v31 }
 0x3d8   : > { %6141 = vmatpush3.bf16.msra.mxu1 %v6811_v15 }
 0x3d9   : > { %6142 = vmatprep.subr.bf16.mxu1 %v7010_v31 }
 0x3dc   : > { %6143 = vmatpush3.bf16.msra.mxu1 %v6813_v16 }
 0x3dd   : > { %6144 = vmatprep.subr.bf16.mxu1 %v7010_v31 }
 0x3e0   : > { %6145 = vmatpush3.bf16.msra.mxu1 %v6815_v18 }
 0x3e1   : > { %6146 = vmatprep.subr.bf16.mxu1 %v7010_v31 }
 0x3e4   : > { %6147 = vmatpush3.bf16.msra.mxu1 %v6817_v19 }
 0x3e5   : > { %6190 = vmatprep.subr.bf16.mxu1 %v7010_v31 }
 0x3e6   : > { %v2148_v20 = vpop.f32.mrb[60].mxu0 }
 0x3e7   : > { %6149 = vmatmul.mubr.bf16.vlgmr.msra.gmra.mrb[36].mxu1 %v1994_v12  ;;  %v6168_v21 = vpop.f32.mrb[61].mxu0 }
 0x3e8   : > { %6191 = vmatpush3.bf16.msra.mxu1 %v7204_v48  ;;  %v2151_v22 = vpop.f32.mrb[62].mxu0  ;;  %6204 = vmatprep.mubr.msk.bf16.mxu1 %vm7011_vm0, %v7010_v31 }
 0x3e9   : > { %v2155_v23 = vpack.c.bf16 %v2151_v22, %v2148_v20  ;;  %v6169_v24 = vpop.f32.mrb[63].mxu0  ;;  %6192 = vmatprep.subr.bf16.mxu1 %v7010_v31 }
 0x3eb   : > { %6187 = vmatmul.mubr.bf16.vlgmr.msra.gmra.mrb[64].mxu0 %v2155_v23 }
 0x3ec   : > { %6193 = vmatpush3.bf16.msra.mxu1 %v7210_v59  ;;  %6229 = vmatpush3.bf16.msra.mxu0 %v7204_v48 }
 0x3ed   : > { %6194 = vmatprep.subr.bf16.mxu1 %v7010_v31  ;;  %6230 = vmatprep.subr.bf16.mxu0 %v7010_v31 }
 0x3ee   : > { %6242 = vmatprep.mubr.msk.bf16.mxu0 %vm7011_vm0, %v7010_v31 }
 0x3f0   : > { %6195 = vmatpush3.bf16.msra.mxu1 %v7216_v6  ;;  %6231 = vmatpush3.bf16.msra.mxu0 %v7210_v59 }
 0x3f1   : > { %6196 = vmatprep.subr.bf16.mxu1 %v7010_v31  ;;  %6232 = vmatprep.subr.bf16.mxu0 %v7010_v31 }
 0x3f4   : > { %6197 = vmatpush3.bf16.msra.mxu1 %v7222_v17  ;;  %6233 = vmatpush3.bf16.msra.mxu0 %v7216_v6 }
 0x3f5   : > { %6198 = vmatprep.subr.bf16.mxu1 %v7010_v31  ;;  %6234 = vmatprep.subr.bf16.mxu0 %v7010_v31 }
 0x3f8   : > { %6199 = vmatpush3.bf16.msra.mxu1 %v7228_v28  ;;  %6235 = vmatpush3.bf16.msra.mxu0 %v7222_v17 }
 0x3f9   : > { %6200 = vmatprep.subr.bf16.mxu1 %v7010_v31  ;;  %6236 = vmatprep.subr.bf16.mxu0 %v7010_v31 }
 0x3fa   : > { %v1128_v25 = vpop.f32.mrb[12].mxu1 }
 0x3fb   : > { %v1135_v26 = vadd.f32 %v1128_v25, %v7505_v35  ;;  %v5922_v27 = vpop.f32.mrb[13].mxu1  ;;  %v6821_v35 = vld [vmem:[%s8535_s3 + $0x58] sm:$0xff]  }
 0x3fc   : > { %6201 = vmatpush3.bf16.msra.mxu1 %v7234_v41  ;;  %6237 = vmatpush3.bf16.msra.mxu0 %v7228_v28  ;;  %v1131_v29 = vpop.f32.mrb[14].mxu1 }
 0x3fd   : > { %v1136_v30 = vadd.f32 %v1131_v29, %v7508_v39  ;;  %v5923_v32 = vpop.f32.mrb[15].mxu1  ;;  %6202 = vmatprep.subr.bf16.mxu1 %v7010_v31  ;;  %6238 = vmatprep.subr.bf16.mxu0 %v7010_v31 }
 0x400   : > { %6203 = vmatpush3.bf16.msra.mxu1 %v7239_v49  ;;  %6239 = vmatpush3.bf16.msra.mxu0 %v7234_v41 }
 0x401   : > { %6240 = vmatprep.subr.bf16.mxu0 %v7010_v31  ;;  %6208 = vmatprep.subr.bf16.mxu1 %v7010_v31 }
 0x403   : > { %6205 = vmatmul.mubr.msk.bf16.vlgmr.msra.gmra.mrb[40].mxu1 %vm662_vm2, %v6820_v33 }
 0x404   : > { %6241 = vmatpush3.bf16.msra.mxu0 %v7239_v49  ;;  %6224 = vmatprep.mubr.msk.bf16.mxu1 %vm7011_vm0, %v7010_v31 }
 0x405   : > { %6246 = vmatprep.subr.bf16.mxu0 %v7010_v31  ;;  %6209 = vmatpush3.bf16.msra.mxu1 %v6822_v43 }
 0x406   : > { %6210 = vmatprep.subr.bf16.mxu1 %v7010_v31 }
 0x407   : > { %6243 = vmatmul.mubr.msk.bf16.vlgmr.msra.gmra.mrb[68].mxu0 %vm662_vm2, %v6821_v35 }
 0x408   : > { %6262 = vmatprep.mubr.msk.bf16.mxu0 %vm7011_vm0, %v7010_v31  ;;  %6247 = vmatpush3.bf16.msra.mxu0 %v6824_v52  ;;  %v6840_v52 = vld [vmem:[%s8536_s4 + $0x300] sm:$0xff]  }
 0x409   : > { %6211 = vmatpush3.bf16.msra.mxu1 %v6823_v51  ;;  %6248 = vmatprep.subr.bf16.mxu0 %v7010_v31  ;;  %v6839_v51 = vld [vmem:[%s8535_s3 + $0x68] sm:$0xff]  }
 0x40a   : > { %6212 = vmatprep.subr.bf16.mxu1 %v7010_v31 }
 0x40c   : > { %6249 = vmatpush3.bf16.msra.mxu0 %v6826_v54  ;;  %v6842_v54 = vld [vmem:[%s8536_s4 + $0x340] sm:$0xff]  }
 0x40d   : > { %6213 = vmatpush3.bf16.msra.mxu1 %v6825_v53  ;;  %6250 = vmatprep.subr.bf16.mxu0 %v7010_v31  ;;  %v6841_v53 = vld [vmem:[%s8536_s4 + $0x308] sm:$0xff]  }
 0x40e   : > { %6214 = vmatprep.subr.bf16.mxu1 %v7010_v31 }
 0x410   : > { %6251 = vmatpush3.bf16.msra.mxu0 %v6828_v56  ;;  %v6844_v56 = vld [vmem:[%s8536_s4 + $0x348] sm:$0xff]  }
 0x411   : > { %6215 = vmatpush3.bf16.msra.mxu1 %v6827_v55  ;;  %6252 = vmatprep.subr.bf16.mxu0 %v7010_v31  ;;  %v6843_v55 = vld [vmem:[%s8536_s4 + $0x310] sm:$0xff]  }
 0x412   : > { %6216 = vmatprep.subr.bf16.mxu1 %v7010_v31 }
 0x414   : > { %6253 = vmatpush3.bf16.msra.mxu0 %v6830_v58  ;;  %v6846_v58 = vld [vmem:[%s8536_s4 + $0x350] sm:$0xff]  }
 0x415   : > { %6217 = vmatpush3.bf16.msra.mxu1 %v6829_v57  ;;  %6254 = vmatprep.subr.bf16.mxu0 %v7010_v31  ;;  %v6845_v57 = vld [vmem:[%s8536_s4 + $0x318] sm:$0xff]  }
 0x416   : > { %6218 = vmatprep.subr.bf16.mxu1 %v7010_v31 }
 0x418   : > { %6255 = vmatpush3.bf16.msra.mxu0 %v6832_v61  ;;  %v6848_v61 = vld [vmem:[%s8536_s4 + $0x358] sm:$0xff]  }
 0x419   : > { %6219 = vmatpush3.bf16.msra.mxu1 %v6831_v60  ;;  %6256 = vmatprep.subr.bf16.mxu0 %v7010_v31  ;;  %v6847_v60 = vld [vmem:[%s8536_s4 + $0x320] sm:$0xff]  }
 0x41a   : > { %v1289_v39 = vpop.f32.mrb[16].mxu1  ;;  %6220 = vmatprep.subr.bf16.mxu1 %v7010_v31 }
 0x41b   : > { %v1296_v34 = vadd.f32 %v1289_v39, %v1135_v26  ;;  %v5960_v37 = vpop.f32.mrb[17].mxu1 }
 0x41c   : > { %v1292_v38 = vpop.f32.mrb[18].mxu1  ;;  %6257 = vmatpush3.bf16.msra.mxu0 %v6834_v63  ;;  %v6850_v63 = vld [vmem:[%s8536_s4 + $0x360] sm:$0xff]  }
 0x41d   : > { %v1297_v40 = vadd.f32 %v1292_v38, %v1136_v30  ;;  %v5961_v42 = vpop.f32.mrb[19].mxu1  ;;  %6221 = vmatpush3.bf16.msra.mxu1 %v6833_v62  ;;  %6258 = vmatprep.subr.bf16.mxu0 %v7010_v31  ;;  %v6849_v62 = vld [vmem:[%s8536_s4 + $0x328] sm:$0xff]  }
 0x41e   : > { %6222 = vmatprep.subr.bf16.mxu1 %v7010_v31 }
 0x420   : > { %6259 = vmatpush3.bf16.msra.mxu0 %v6836_v1  ;;  %v6852_v1 = vld [vmem:[%s8536_s4 + $0x368] sm:$0xff]  }
 0x421   : > { %6223 = vmatpush3.bf16.msra.mxu1 %v6835_v0  ;;  %6260 = vmatprep.subr.bf16.mxu0 %v7010_v31  ;;  %v6851_v0 = vld [vmem:[%s8536_s4 + $0x330] sm:$0xff]  }
 0x422   : > { %6266 = vmatprep.subr.bf16.mxu1 %v7010_v31 }
 0x424   : > { %6261 = vmatpush3.bf16.msra.mxu0 %v6837_v2  ;;  %v6853_v2 = vld [vmem:[%s8536_s4 + $0x338] sm:$0xff]  }
 0x425   : > { %6304 = vmatprep.subr.bf16.mxu0 %v7010_v31 }
 0x43a   : > { %v1450_v44 = vpop.f32.mrb[20].mxu1 }
 0x43b   : > { %v1457_v45 = vadd.f32 %v1450_v44, %v1296_v34  ;;  %v5998_v46 = vpop.f32.mrb[21].mxu1 }
 0x43c   : > { %v1453_v47 = vpop.f32.mrb[22].mxu1 }
 0x43d   : > { %v1458_v50 = vadd.f32 %v1453_v47, %v1297_v40  ;;  %v5999_v36 = vpop.f32.mrb[23].mxu1 }
 0x43e   : > { %v6838_v36 = vld [vmem:[%s8535_s3 + $0x60] sm:$0xff]  }
 0x45a   : > { %v1611_v3 = vpop.f32.mrb[24].mxu1 }
 0x45b   : > { %v1618_v4 = vadd.f32 %v1611_v3, %v1457_v45  ;;  %v6036_v5 = vpop.f32.mrb[25].mxu1  ;;  %v6854_v3 = vld [vmem:[%s8536_s4 + $0x370] sm:$0xff]  }
 0x45c   : > { %v1614_v7 = vpop.f32.mrb[26].mxu1 }
 0x45d   : > { %v1619_v8 = vadd.f32 %v1614_v7, %v1458_v50  ;;  %v6037_v9 = vpop.f32.mrb[27].mxu1 }
 0x47a   : > { %v1772_v10 = vpop.f32.mrb[28].mxu1 }
 0x47b   : > { %v1779_v11 = vadd.f32 %v1772_v10, %v1618_v4  ;;  %v6074_v12 = vpop.f32.mrb[29].mxu1  ;;  %v6855_v4 = vld [vmem:[%s8536_s4 + $0x378] sm:$0xff]  }
 0x47c   : > { %v1775_v13 = vpop.f32.mrb[30].mxu1 }
 0x47d   : > { %v1780_v14 = vadd.f32 %v1775_v13, %v1619_v8  ;;  %v6075_v15 = vpop.f32.mrb[31].mxu1 }
 0x49a   : > { %v1933_v16 = vpop.f32.mrb[32].mxu1 }
 0x49b   : > { %v1940_v18 = vadd.f32 %v1933_v16, %v1779_v11  ;;  %v6112_v19 = vpop.f32.mrb[33].mxu1 }
 0x49c   : > { %v1936_v20 = vpop.f32.mrb[34].mxu1 }
 0x49d   : > { %v1941_v21 = vadd.f32 %v1936_v20, %v1780_v14  ;;  %v6113_v22 = vpop.f32.mrb[35].mxu1 }
 0x4ba   : > { %v2094_v23 = vpop.f32.mrb[36].mxu1 }
 0x4bb   : > { %v2101_v24 = vadd.f32 %v2094_v23, %v1940_v18  ;;  %v6150_v25 = vpop.f32.mrb[37].mxu1 }
 0x4bc   : > { %v2097_v26 = vpop.f32.mrb[38].mxu1 }
 0x4bd   : > { %v2102_v27 = vadd.f32 %v2097_v26, %v1941_v21  ;;  %v6151_v29 = vpop.f32.mrb[39].mxu1 }
 0x4be   : > { %v2255_v30 = vpop.f32.mrb[64].mxu0 }
 0x4bf   : > { %v7867_v32 = vadd.f32 %v2255_v30, %v2101_v24  ;;  %v6188_v33 = vpop.f32.mrb[65].mxu0  ;;  %v6863_v30 = vld [vmem:[%s8536_s4 + $0x398] sm:$0xff]  }
 0x4c0   : > { %v2258_v35 = vpop.f32.mrb[66].mxu0  ;;  %v6865_v33 = vld [vmem:[%s8536_s4 + $0x3a0] sm:$0xff]  }
 0x4c1   : > { %v7869_v39 = vadd.f32 %v2258_v35, %v2102_v27  ;;  %v6189_v34 = vpop.f32.mrb[67].mxu0  ;;  %v6866_v35 = vld [vmem:[%s8536_s4 + $0x3d8] sm:$0xff]  }
 0x4c2   : > { %v6868_v34 = vld [vmem:[%s8536_s4 + $0x3e0] sm:$0xff]  }
 0x4d6   : > { %v2309_v37 = vpop.f32.mrb[40].mxu1 }
 0x4d7   : > { %v6206_v38 = vpop.f32.mrb[41].mxu1 }
 0x4d8   : > { %v2312_v40 = vpop.f32.mrb[42].mxu1  ;;  %v6870_v38 = vld [vmem:[%s8536_s4 + $0x3e8] sm:$0xff]  }
 0x4d9   : > { %v2316_v42 = vpack.c.bf16 %v2312_v40, %v2309_v37  ;;  %v6207_v43 = vpop.f32.mrb[43].mxu1  ;;  %v6869_v37 = vld [vmem:[%s8536_s4 + $0x3b0] sm:$0xff]   ;;  %v6871_v40 = vld [vmem:[%s8536_s4 + $0x3b8] sm:$0xff]  }
 0x4da   : > { %v2470_v44 = vpop.f32.mrb[68].mxu0  ;;  %v6873_v43 = vld [vmem:[%s8536_s4 + $0x3f8] sm:$0xff]  }
 0x4db   : > { %6225 = vmatmul.mubr.bf16.vlgmr.msra.gmra.mrb[44].mxu1 %v2316_v42  ;;  %v6244_v45 = vpop.f32.mrb[69].mxu0  ;;  %v6872_v42 = vld [vmem:[%s8536_s4 + $0x3f0] sm:$0xff]  }
 0x4dc   : > { %6267 = vmatpush3.bf16.msra.mxu1 %v7204_v48  ;;  %v2473_v46 = vpop.f32.mrb[70].mxu0  ;;  %6280 = vmatprep.mubr.msk.bf16.mxu1 %vm7011_vm0, %v7010_v31 }
 0x4dd   : > { %v2477_v47 = vpack.c.bf16 %v2473_v46, %v2470_v44  ;;  %v6245_v50 = vpop.f32.mrb[71].mxu0  ;;  %6268 = vmatprep.subr.bf16.mxu1 %v7010_v31 }
 0x4df   : > { %6263 = vmatmul.mubr.bf16.vlgmr.msra.gmra.mrb[72].mxu0 %v2477_v47 }
 0x4e0   : > { %6269 = vmatpush3.bf16.msra.mxu1 %v7210_v59  ;;  %6305 = vmatpush3.bf16.msra.mxu0 %v7204_v48 }
 0x4e1   : > { %6270 = vmatprep.subr.bf16.mxu1 %v7010_v31  ;;  %6306 = vmatprep.subr.bf16.mxu0 %v7010_v31 }
 0x4e2   : > { %6318 = vmatprep.mubr.msk.bf16.mxu0 %vm7011_vm0, %v7010_v31 }
 0x4e4   : > { %6271 = vmatpush3.bf16.msra.mxu1 %v7216_v6  ;;  %6307 = vmatpush3.bf16.msra.mxu0 %v7210_v59 }
 0x4e5   : > { %6272 = vmatprep.subr.bf16.mxu1 %v7010_v31  ;;  %6308 = vmatprep.subr.bf16.mxu0 %v7010_v31 }
 0x4e8   : > { %6273 = vmatpush3.bf16.msra.mxu1 %v7222_v17  ;;  %6309 = vmatpush3.bf16.msra.mxu0 %v7216_v6 }
 0x4e9   : > { %6274 = vmatprep.subr.bf16.mxu1 %v7010_v31  ;;  %6310 = vmatprep.subr.bf16.mxu0 %v7010_v31 }
 0x4ec   : > { %6275 = vmatpush3.bf16.msra.mxu1 %v7228_v28  ;;  %6311 = vmatpush3.bf16.msra.mxu0 %v7222_v17 }
 0x4ed   : > { %6276 = vmatprep.subr.bf16.mxu1 %v7010_v31  ;;  %6312 = vmatprep.subr.bf16.mxu0 %v7010_v31 }
 0x4f0   : > { %6277 = vmatpush3.bf16.msra.mxu1 %v7234_v41  ;;  %6313 = vmatpush3.bf16.msra.mxu0 %v7228_v28 }
 0x4f1   : > { %6278 = vmatprep.subr.bf16.mxu1 %v7010_v31  ;;  %6314 = vmatprep.subr.bf16.mxu0 %v7010_v31 }
 0x4f4   : > { %6279 = vmatpush3.bf16.msra.mxu1 %v7239_v49  ;;  %6315 = vmatpush3.bf16.msra.mxu0 %v7234_v41 }
 0x4f5   : > { %6316 = vmatprep.subr.bf16.mxu0 %v7010_v31  ;;  %6284 = vmatprep.subr.bf16.mxu1 %v7010_v31 }
 0x4f7   : > { %6281 = vmatmul.mubr.msk.bf16.vlgmr.msra.gmra.mrb[48].mxu1 %vm662_vm2, %v6838_v36 }
 0x4f8   : > { %6317 = vmatpush3.bf16.msra.mxu0 %v7239_v49  ;;  %6300 = vmatprep.mubr.msk.bf16.mxu1 %vm7011_vm0, %v7010_v31 }
 0x4f9   : > { %6322 = vmatprep.subr.bf16.mxu0 %v7010_v31  ;;  %6285 = vmatpush3.bf16.msra.mxu1 %v6840_v52 }
 0x4fa   : > { %6286 = vmatprep.subr.bf16.mxu1 %v7010_v31 }
 0x4fb   : > { %6319 = vmatmul.mubr.msk.bf16.vlgmr.msra.gmra.mrb[76].mxu0 %vm662_vm2, %v6839_v51 }
 0x4fc   : > { %6338 = vmatprep.mubr.msk.bf16.mxu0 %vm7011_vm0, %v7010_v31  ;;  %6323 = vmatpush3.bf16.msra.mxu0 %v6842_v54 }
 0x4fd   : > { %6287 = vmatpush3.bf16.msra.mxu1 %v6841_v53  ;;  %6324 = vmatprep.subr.bf16.mxu0 %v7010_v31 }
 0x4fe   : > { %6288 = vmatprep.subr.bf16.mxu1 %v7010_v31 }
 0x500   : > { %6325 = vmatpush3.bf16.msra.mxu0 %v6844_v56 }
 0x501   : > { %6289 = vmatpush3.bf16.msra.mxu1 %v6843_v55  ;;  %6326 = vmatprep.subr.bf16.mxu0 %v7010_v31 }
 0x502   : > { %6290 = vmatprep.subr.bf16.mxu1 %v7010_v31 }
 0x504   : > { %6327 = vmatpush3.bf16.msra.mxu0 %v6846_v58 }
 0x505   : > { %6291 = vmatpush3.bf16.msra.mxu1 %v6845_v57  ;;  %6328 = vmatprep.subr.bf16.mxu0 %v7010_v31 }
 0x506   : > { %6292 = vmatprep.subr.bf16.mxu1 %v7010_v31 }
 0x508   : > { %6329 = vmatpush3.bf16.msra.mxu0 %v6848_v61 }
 0x509   : > { %6293 = vmatpush3.bf16.msra.mxu1 %v6847_v60  ;;  %6330 = vmatprep.subr.bf16.mxu0 %v7010_v31 }
 0x50a   : > { %6294 = vmatprep.subr.bf16.mxu1 %v7010_v31 }
 0x50c   : > { %6331 = vmatpush3.bf16.msra.mxu0 %v6850_v63 }
 0x50d   : > { %6295 = vmatpush3.bf16.msra.mxu1 %v6849_v62  ;;  %6332 = vmatprep.subr.bf16.mxu0 %v7010_v31 }
 0x50e   : > { %6296 = vmatprep.subr.bf16.mxu1 %v7010_v31 }
 0x510   : > { %6333 = vmatpush3.bf16.msra.mxu0 %v6852_v1 }
 0x511   : > { %6297 = vmatpush3.bf16.msra.mxu1 %v6851_v0  ;;  %6334 = vmatprep.subr.bf16.mxu0 %v7010_v31 }
 0x512   : > { %6298 = vmatprep.subr.bf16.mxu1 %v7010_v31 }
 0x514   : > { %6335 = vmatpush3.bf16.msra.mxu0 %v6854_v3 }
 0x515   : > { %6299 = vmatpush3.bf16.msra.mxu1 %v6853_v2  ;;  %6336 = vmatprep.subr.bf16.mxu0 %v7010_v31 }
 0x516   : > { %6342 = vmatprep.subr.bf16.mxu1 %v7010_v31 }
 0x518   : > { %6337 = vmatpush3.bf16.msra.mxu0 %v6855_v4 }
 0x519   : > { %6380 = vmatprep.subr.bf16.mxu0 %v7010_v31 }
 0x5ae   : > { %v2416_v5 = vpop.f32.mrb[44].mxu1 }
 0x5af   : > { %v2423_v7 = vadd.f32 %v2416_v5, %v7867_v32  ;;  %v6226_v8 = vpop.f32.mrb[45].mxu1  ;;  %v6864_v32 = vld [vmem:[%s8536_s4 + $0x3d0] sm:$0xff]  }
 0x5b0   : > { %v2419_v9 = vpop.f32.mrb[46].mxu1 }
 0x5b1   : > { %v2424_v10 = vadd.f32 %v2419_v9, %v7869_v39  ;;  %v6227_v11 = vpop.f32.mrb[47].mxu1  ;;  %v6867_v39 = vld [vmem:[%s8536_s4 + $0x3a8] sm:$0xff]  }
 0x5b2   : > { %v2577_v12 = vpop.f32.mrb[72].mxu0 }
 0x5b3   : > { %v7981_v13 = vadd.f32 %v2577_v12, %v2423_v7  ;;  %v6264_v14 = vpop.f32.mrb[73].mxu0  ;;  %v5158_v12 = vld [vmem:[%s8537_s5] ss:$0 sm:$0xff] }
 0x5b4   : > { %v2580_v15 = vpop.f32.mrb[74].mxu0 }
 0x5b5   : > { %v7983_v16 = vadd.f32 %v2580_v15, %v2424_v10  ;;  %v6265_v18 = vpop.f32.mrb[75].mxu0 }
 0x5ca   : > { %v2631_v19 = vpop.f32.mrb[48].mxu1 }
 0x5cb   : > { %v6282_v20 = vpop.f32.mrb[49].mxu1 }
 0x5cc   : > { %v2634_v21 = vpop.f32.mrb[50].mxu1 }
 0x5cd   : > { %v2638_v22 = vpack.c.bf16 %v2634_v21, %v2631_v19  ;;  %v6283_v23 = vpop.f32.mrb[51].mxu1 }
 0x5ce   : > { %v2792_v24 = vpop.f32.mrb[76].mxu0 }
 0x5cf   : > { %6301 = vmatmul.mubr.bf16.vlgmr.msra.gmra.mrb[52].mxu1 %v2638_v22  ;;  %v6320_v25 = vpop.f32.mrb[77].mxu0 }
 0x5d0   : > { %6343 = vmatpush3.bf16.msra.mxu1 %v7204_v48  ;;  %v2795_v26 = vpop.f32.mrb[78].mxu0  ;;  %6356 = vmatprep.mubr.msk.bf16.mxu1 %vm7011_vm0, %v7010_v31  ;;  %v5160_v25 = vld [vmem:[%s8538_s6 + $0x2] sm:$0x3] }
 0x5d1   : > { %v2799_v27 = vpack.c.bf16 %v2795_v26, %v2792_v24  ;;  %v6321_v29 = vpop.f32.mrb[79].mxu0  ;;  %6344 = vmatprep.subr.bf16.mxu1 %v7010_v31  ;;  %v3242_v24 = vld [vmem:[%s8538_s6] sm:$0x3] }
 0x5d2   : > { %v6874_v26 = vld [vmem:[%s8539_s7 + $0x40] sm:$0xff]   ;;  %v6876_v29 = vld [vmem:[%s8539_s7 + $0x48] sm:$0xff]  }
 0x5d3   : > { %6339 = vmatmul.mubr.bf16.vlgmr.msra.gmra.mrb[80].mxu0 %v2799_v27  ;;  %v6875_v27 = vld [vmem:[%s8539_s7] sm:$0xff]  }
 0x5d4   : > { %6345 = vmatpush3.bf16.msra.mxu1 %v7210_v59  ;;  %6381 = vmatpush3.bf16.msra.mxu0 %v7204_v48  ;;  %v6856_v48 = vld [vmem:[%s8535_s3 + $0x70] sm:$0xff]  }
 0x5d5   : > { %6346 = vmatprep.subr.bf16.mxu1 %v7010_v31  ;;  %6382 = vmatprep.subr.bf16.mxu0 %v7010_v31 }
 0x5d6   : > { %6394 = vmatprep.mubr.msk.bf16.mxu0 %vm7011_vm0, %v7010_v31 }
 0x5d8   : > { %6347 = vmatpush3.bf16.msra.mxu1 %v7216_v6  ;;  %6383 = vmatpush3.bf16.msra.mxu0 %v7210_v59  ;;  %v6857_v59 = vld [vmem:[%s8535_s3 + $0x78] sm:$0xff]  }
 0x5d9   : > { %6348 = vmatprep.subr.bf16.mxu1 %v7010_v31  ;;  %6384 = vmatprep.subr.bf16.mxu0 %v7010_v31 }
 0x5dc   : > { %6349 = vmatpush3.bf16.msra.mxu1 %v7222_v17  ;;  %6385 = vmatpush3.bf16.msra.mxu0 %v7216_v6  ;;  %v6858_v6 = vld [vmem:[%s8536_s4 + $0x380] sm:$0xff]  }
 0x5dd   : > { %6350 = vmatprep.subr.bf16.mxu1 %v7010_v31  ;;  %6386 = vmatprep.subr.bf16.mxu0 %v7010_v31 }
 0x5e0   : > { %6351 = vmatpush3.bf16.msra.mxu1 %v7228_v28  ;;  %6387 = vmatpush3.bf16.msra.mxu0 %v7222_v17  ;;  %v6859_v17 = vld [vmem:[%s8536_s4 + $0x388] sm:$0xff]  }
 0x5e1   : > { %6352 = vmatprep.subr.bf16.mxu1 %v7010_v31  ;;  %6388 = vmatprep.subr.bf16.mxu0 %v7010_v31 }
 0x5e4   : > { %6353 = vmatpush3.bf16.msra.mxu1 %v7234_v41  ;;  %6389 = vmatpush3.bf16.msra.mxu0 %v7228_v28  ;;  %v6860_v28 = vld [vmem:[%s8536_s4 + $0x3c0] sm:$0xff]  }
 0x5e5   : > { %6354 = vmatprep.subr.bf16.mxu1 %v7010_v31  ;;  %6390 = vmatprep.subr.bf16.mxu0 %v7010_v31 }
 0x5e8   : > { %6355 = vmatpush3.bf16.msra.mxu1 %v7239_v49  ;;  %6391 = vmatpush3.bf16.msra.mxu0 %v7234_v41  ;;  %v6861_v41 = vld [vmem:[%s8536_s4 + $0x390] sm:$0xff]  }
 0x5e9   : > { %6392 = vmatprep.subr.bf16.mxu0 %v7010_v31  ;;  %6360 = vmatprep.subr.bf16.mxu1 %v7010_v31 }
 0x5eb   : > { %6357 = vmatmul.mubr.msk.bf16.vlgmr.msra.gmra.mrb[56].mxu1 %vm662_vm2, %v6856_v48  ;;  %v6877_v48 = vld [vmem:[%s8539_s7 + $0x8] sm:$0xff]  }
 0x5ec   : > { %6393 = vmatpush3.bf16.msra.mxu0 %v7239_v49  ;;  %6376 = vmatprep.mubr.msk.bf16.mxu1 %vm7011_vm0, %v7010_v31  ;;  %v6862_v49 = vld [vmem:[%s8536_s4 + $0x3c8] sm:$0xff]  }
 0x5ed   : > { %6398 = vmatprep.subr.bf16.mxu0 %v7010_v31  ;;  %6361 = vmatpush3.bf16.msra.mxu1 %v6858_v6  ;;  %v6879_v6 = vld [vmem:[%s8539_s7 + $0x10] sm:$0xff]  }
 0x5ee   : > { %6362 = vmatprep.subr.bf16.mxu1 %v7010_v31 }
 0x5ef   : > { %6395 = vmatmul.mubr.msk.bf16.vlgmr.msra.gmra.mrb[84].mxu0 %vm662_vm2, %v6857_v59  ;;  %v6878_v59 = vld [vmem:[%s8539_s7 + $0x50] sm:$0xff]  }
 0x5f0   : > { %6414 = vmatprep.mubr.msk.bf16.mxu0 %vm7011_vm0, %v7010_v31  ;;  %6399 = vmatpush3.bf16.msra.mxu0 %v6860_v28  ;;  %v6881_v28 = vld [vmem:[%s8539_s7 + $0x18] sm:$0xff]  }
 0x5f1   : > { %6363 = vmatpush3.bf16.msra.mxu1 %v6859_v17  ;;  %6400 = vmatprep.subr.bf16.mxu0 %v7010_v31  ;;  %v6880_v17 = vld [vmem:[%s8539_s7 + $0x58] sm:$0xff]  }
 0x5f2   : > { %6364 = vmatprep.subr.bf16.mxu1 %v7010_v31 }
 0x5f4   : > { %6401 = vmatpush3.bf16.msra.mxu0 %v6862_v49  ;;  %v6883_v49 = vld [vmem:[%s8539_s7 + $0x20] sm:$0xff]  }
 0x5f5   : > { %6365 = vmatpush3.bf16.msra.mxu1 %v6861_v41  ;;  %6402 = vmatprep.subr.bf16.mxu0 %v7010_v31  ;;  %v6882_v41 = vld [vmem:[%s8539_s7 + $0x60] sm:$0xff]  }
 0x5f6   : > { %6366 = vmatprep.subr.bf16.mxu1 %v7010_v31 }
 0x5f8   : > { %6403 = vmatpush3.bf16.msra.mxu0 %v6864_v32  ;;  %v6885_v32 = vld [vmem:[%s8539_s7 + $0x28] sm:$0xff]  }
 0x5f9   : > { %6367 = vmatpush3.bf16.msra.mxu1 %v6863_v30  ;;  %6404 = vmatprep.subr.bf16.mxu0 %v7010_v31  ;;  %v6884_v30 = vld [vmem:[%s8539_s7 + $0x68] sm:$0xff]  }
 0x5fa   : > { %6368 = vmatprep.subr.bf16.mxu1 %v7010_v31 }
 0x5fc   : > { %6405 = vmatpush3.bf16.msra.mxu0 %v6866_v35  ;;  %v6887_v35 = vld [vmem:[%s8539_s7 + $0x30] sm:$0xff]  }
 0x5fd   : > { %6369 = vmatpush3.bf16.msra.mxu1 %v6865_v33  ;;  %6406 = vmatprep.subr.bf16.mxu0 %v7010_v31  ;;  %v6886_v33 = vld [vmem:[%s8539_s7 + $0x70] sm:$0xff]  }
 0x5fe   : > { %6370 = vmatprep.subr.bf16.mxu1 %v7010_v31 }
 0x600   : > { %6407 = vmatpush3.bf16.msra.mxu0 %v6868_v34  ;;  %v6889_v34 = vld [vmem:[%s8539_s7 + $0x38] sm:$0xff]  }
 0x601   : > { %6371 = vmatpush3.bf16.msra.mxu1 %v6867_v39  ;;  %6408 = vmatprep.subr.bf16.mxu0 %v7010_v31  ;;  %v6888_v39 = vld [vmem:[%s8539_s7 + $0x78] sm:$0xff]  }
 0x602   : > { %6372 = vmatprep.subr.bf16.mxu1 %v7010_v31 }
 0x604   : > { %6409 = vmatpush3.bf16.msra.mxu0 %v6870_v38 }
 0x605   : > { %6373 = vmatpush3.bf16.msra.mxu1 %v6869_v37  ;;  %6410 = vmatprep.subr.bf16.mxu0 %v7010_v31 }
 0x606   : > { %6374 = vmatprep.subr.bf16.mxu1 %v7010_v31 }
 0x608   : > { %6411 = vmatpush3.bf16.msra.mxu0 %v6872_v42 }
 0x609   : > { %6375 = vmatpush3.bf16.msra.mxu1 %v6871_v40  ;;  %6412 = vmatprep.subr.bf16.mxu0 %v7010_v31 }
 0x60a   : > { %6424 = vmatprep.subr.bf16.mxu1 %v7010_v31 }
 0x60c   : > { %6413 = vmatpush3.bf16.msra.mxu0 %v6873_v43 }
 0x60d   : > { %6418 = vmatprep.subr.bf16.mxu0 %v7010_v31 }
 0x6a2   : > { %v2738_v44 = vpop.f32.mrb[52].mxu1 }
 0x6a3   : > { %v2745_v45 = vadd.f32 %v2738_v44, %v7981_v13  ;;  %v6302_v46 = vpop.f32.mrb[53].mxu1 }
 0x6a4   : > { %v2741_v47 = vpop.f32.mrb[54].mxu1 }
 0x6a5   : > { %v2746_v50 = vadd.f32 %v2741_v47, %v7983_v16  ;;  %v6303_v36 = vpop.f32.mrb[55].mxu1 }
 0x6a6   : > { %v2899_v51 = vpop.f32.mrb[80].mxu0  ;;  %v5194_v36 = vld [vmem:[%s8538_s6 + $0x4] sm:$0x3] }
 0x6a7   : > { %v2906_v52 = vadd.f32 %v2899_v51, %v2745_v45  ;;  %v6340_v53 = vpop.f32.mrb[81].mxu0  ;;  %v5220_v51 = vld [vmem:[%s8538_s6 + $0x6] sm:$0x3] }
 0x6a8   : > { %v2902_v54 = vpop.f32.mrb[82].mxu0  ;;  %v6891_v53 = vld [vmem:[%s8539_s7 + $0xc0] sm:$0xff]  }
 0x6a9   : > { %v2907_v55 = vadd.f32 %v2902_v54, %v2746_v50  ;;  %v6341_v56 = vpop.f32.mrb[83].mxu0  ;;  %v6892_v54 = vld [vmem:[%s8539_s7 + $0x88] sm:$0xff]  }
 0x6aa   : > { %v6894_v56 = vld [vmem:[%s8539_s7 + $0x90] sm:$0xff]  }
 0x6be   : > { %v2953_v57 = vpop.f32.mrb[56].mxu1 }
 0x6bf   : > { %v6358_v58 = vpop.f32.mrb[57].mxu1 }
 0x6c0   : > { %v2956_v60 = vpop.f32.mrb[58].mxu1  ;;  %v6896_v58 = vld [vmem:[%s8539_s7 + $0x98] sm:$0xff]  }
 0x6c1   : > { %v2960_v61 = vpack.c.bf16 %v2956_v60, %v2953_v57  ;;  %v6359_v62 = vpop.f32.mrb[59].mxu1  ;;  %v6895_v57 = vld [vmem:[%s8539_s7 + $0xd0] sm:$0xff]   ;;  %v6897_v60 = vld [vmem:[%s8539_s7 + $0xd8] sm:$0xff]  }
 0x6c2   : > { %v3114_v63 = vpop.f32.mrb[84].mxu0  ;;  %v6899_v62 = vld [vmem:[%s8539_s7 + $0xe0] sm:$0xff]  }
 0x6c3   : > { %6377 = vmatmul.mubr.bf16.vlgmr.msra.gmra.mrb[60].mxu1 %v2960_v61  ;;  %v6396_v0 = vpop.f32.mrb[85].mxu0  ;;  %v6898_v61 = vld [vmem:[%s8539_s7 + $0xa0] sm:$0xff]  }
 0x6c4   : > { %v3117_v1 = vpop.f32.mrb[86].mxu0  ;;  %6426 = vmatprep.mubr.msk.bf16.mxu1 %vm7011_vm0, %v7010_v31  ;;  %v6901_v0 = vld [vmem:[%s8539_s7 + $0xe8] sm:$0xff]  }
 0x6c5   : > { %v3121_v2 = vpack.c.bf16 %v3117_v1, %v3114_v63  ;;  %v6397_v3 = vpop.f32.mrb[87].mxu0  ;;  %v6900_v63 = vld [vmem:[%s8539_s7 + $0xa8] sm:$0xff]   ;;  %v6902_v1 = vld [vmem:[%s8539_s7 + $0xb0] sm:$0xff]  }
 0x6c6   : > { %v6904_v3 = vld [vmem:[%s8539_s7 + $0xb8] sm:$0xff]  }
 0x6c7   : > { %6415 = vmatmul.mubr.bf16.vlgmr.msra.gmra.mrb[88].mxu0 %v3121_v2  ;;  %v6903_v2 = vld [vmem:[%s8539_s7 + $0xf0] sm:$0xff]  }
 0x6c8   : > { %6420 = vmatprep.mubr.msk.bf16.mxu0 %vm7011_vm0, %v7010_v31 }
 0x796   : > { %v3060_v4 = vpop.f32.mrb[60].mxu1 }
 0x797   : > { %v3067_v5 = vadd.f32 %v3060_v4, %v2906_v52  ;;  %v6378_v7 = vpop.f32.mrb[61].mxu1  ;;  %v6890_v52 = vld [vmem:[%s8539_s7 + $0x80] sm:$0xff]   ;;  %v6905_v4 = vld [vmem:[%s8539_s7 + $0xf8] sm:$0xff]  }
 0x798   : > { %v3063_v8 = vpop.f32.mrb[62].mxu1 }
 0x799   : > { %v3068_v9 = vadd.f32 %v3063_v8, %v2907_v55  ;;  %v6379_v10 = vpop.f32.mrb[63].mxu1  ;;  %v6893_v55 = vld [vmem:[%s8539_s7 + $0xc8] sm:$0xff]  }
 0x79a   : > { %v3221_v11 = vpop.f32.mrb[88].mxu0 }
 0x79b   : > { %v3228_v13 = vadd.f32 %v3221_v11, %v3067_v5  ;;  %v6416_v14 = vpop.f32.mrb[89].mxu0 }
 0x79c   : > { %v3224_v15 = vpop.f32.mrb[90].mxu0 }
 0x79d   : > { %v3237_v16 = vadd.f32 %v5158_v12, %v3228_v13  ;;  %v3229_v18 = vadd.f32 %v3224_v15, %v3068_v9  ;;  %v6417_v19 = vpop.f32.mrb[91].mxu0 }
 0x79f   : > { %v3238_v20 = vadd.f32 %v5158_v12, %v3229_v18  ;;  %v3239_v21 = vmax.f32 %v3237_v16, 0.0 }
 0x7a1   : > { %v3240_v22 = vmax.f32 %v3238_v20, 0.0 }
 0x7a3   : > { %v8102_v23 = vpack.c.bf16 %v3240_v22, %v3239_v21 }
 0x7a5   : > { %6419 = vmatpush3.bf16.msra.mxu0 %v8102_v23  ;;  %6425 = vmatpush3.bf16.msra.mxu1 %v8102_v23 }
 0x7a6   : > { %6430 = vmatprep.subr.bf16.mxu1 %v7010_v31  ;;  %6450 = vmatprep.subr.bf16.mxu0 %v7010_v31 }
 0x7a8   : > { %6421 = vmatmul.mubr.msk.bf16.vlgmr.msra.gmra.mrb[92].mxu0 %vm3243_vm3, %v3242_v24  ;;  %6427 = vmatmul.mubr.msk.bf16.vlgmr.msra.gmra.mrb[64].mxu1 %vm3243_vm3, %v5160_v25 }
 0x7a9   : > { %6431 = vmatpush3.bf16.msra.mxu1 %v6874_v26  ;;  %6451 = vmatpush3.bf16.msra.mxu0 %v6875_v27  ;;  %v5246_v27 = vld [vmem:[%s8538_s6 + $0x8] sm:$0x3] }
 0x7aa   : > { %6432 = vmatprep.subr.bf16.mxu1 %v7010_v31  ;;  %6452 = vmatprep.subr.bf16.mxu0 %v7010_v31 }
 0x7ab   : > { %6446 = vmatprep.mubr.msk.bf16.mxu1 %vm7011_vm0, %v7010_v31  ;;  %6466 = vmatprep.mubr.msk.bf16.mxu0 %vm7011_vm0, %v7010_v31 }
 0x7ad   : > { %6433 = vmatpush3.bf16.msra.mxu1 %v6876_v29  ;;  %6453 = vmatpush3.bf16.msra.mxu0 %v6877_v48  ;;  %v5272_v29 = vld [vmem:[%s8538_s6 + $0xa] sm:$0x3]  ;;  %v6906_v48 = vld [vmem:[%s8539_s7 + $0x100] sm:$0xff]  }
 0x7ae   : > { %6434 = vmatprep.subr.bf16.mxu1 %v7010_v31  ;;  %6454 = vmatprep.subr.bf16.mxu0 %v7010_v31 }
 0x7b1   : > { %6435 = vmatpush3.bf16.msra.mxu1 %v6878_v59  ;;  %6455 = vmatpush3.bf16.msra.mxu0 %v6879_v6  ;;  %v6907_v59 = vld [vmem:[%s8539_s7 + $0x140] sm:$0xff]   ;;  %v6908_v6 = vld [vmem:[%s8539_s7 + $0x108] sm:$0xff]  }
 0x7b2   : > { %6436 = vmatprep.subr.bf16.mxu1 %v7010_v31  ;;  %6456 = vmatprep.subr.bf16.mxu0 %v7010_v31 }
 0x7b5   : > { %6437 = vmatpush3.bf16.msra.mxu1 %v6880_v17  ;;  %6457 = vmatpush3.bf16.msra.mxu0 %v6881_v28  ;;  %v6909_v17 = vld [vmem:[%s8539_s7 + $0x148] sm:$0xff]   ;;  %v6910_v28 = vld [vmem:[%s8539_s7 + $0x110] sm:$0xff]  }
 0x7b6   : > { %6438 = vmatprep.subr.bf16.mxu1 %v7010_v31  ;;  %6458 = vmatprep.subr.bf16.mxu0 %v7010_v31 }
 0x7b9   : > { %6439 = vmatpush3.bf16.msra.mxu1 %v6882_v41  ;;  %6459 = vmatpush3.bf16.msra.mxu0 %v6883_v49  ;;  %v6911_v41 = vld [vmem:[%s8539_s7 + $0x150] sm:$0xff]   ;;  %v6912_v49 = vld [vmem:[%s8539_s7 + $0x118] sm:$0xff]  }
 0x7ba   : > { %6440 = vmatprep.subr.bf16.mxu1 %v7010_v31  ;;  %6460 = vmatprep.subr.bf16.mxu0 %v7010_v31 }
 0x7bd   : > { %6441 = vmatpush3.bf16.msra.mxu1 %v6884_v30  ;;  %6461 = vmatpush3.bf16.msra.mxu0 %v6885_v32  ;;  %v6913_v30 = vld [vmem:[%s8539_s7 + $0x158] sm:$0xff]   ;;  %v6914_v32 = vld [vmem:[%s8539_s7 + $0x120] sm:$0xff]  }
 0x7be   : > { %6442 = vmatprep.subr.bf16.mxu1 %v7010_v31  ;;  %6462 = vmatprep.subr.bf16.mxu0 %v7010_v31 }
 0x7c1   : > { %6443 = vmatpush3.bf16.msra.mxu1 %v6886_v33  ;;  %6463 = vmatpush3.bf16.msra.mxu0 %v6887_v35  ;;  %v6915_v33 = vld [vmem:[%s8539_s7 + $0x160] sm:$0xff]   ;;  %v6916_v35 = vld [vmem:[%s8539_s7 + $0x128] sm:$0xff]  }
 0x7c2   : > { %6444 = vmatprep.subr.bf16.mxu1 %v7010_v31  ;;  %6464 = vmatprep.subr.bf16.mxu0 %v7010_v31 }
 0x7c5   : > { %6445 = vmatpush3.bf16.msra.mxu1 %v6888_v39  ;;  %6465 = vmatpush3.bf16.msra.mxu0 %v6889_v34  ;;  %v6917_v39 = vld [vmem:[%s8539_s7 + $0x168] sm:$0xff]   ;;  %v6918_v34 = vld [vmem:[%s8539_s7 + $0x130] sm:$0xff]  }
 0x7c6   : > { %6470 = vmatprep.subr.bf16.mxu1 %v7010_v31  ;;  %6496 = vmatprep.subr.bf16.mxu0 %v7010_v31 }
 0x87b   : > { %v3281_v37 = vpop.f32.mrb[92].mxu0  ;;  %v3343_v38 = vpop.f32.mrb[64].mxu1 }
 0x87c   : > { %v3287_v40 = vpack.c.bf16 %v3281_v37, %v3281_v37  ;;  %v3349_v42 = vpack.c.bf16 %v3343_v38, %v3343_v38  ;;  %v6428_v43 = vpop.f32.mrb[65].mxu1  ;;  %v6422_v44 = vpop.f32.mrb[93].mxu0  ;;  %v6919_v37 = vld [vmem:[%s8539_s7 + $0x170] sm:$0xff]   ;;  %v6920_v38 = vld [vmem:[%s8539_s7 + $0x138] sm:$0xff]  }
 0x87d   : > { %v3346_v45 = vpop.f32.mrb[66].mxu1  ;;  %v3284_v46 = vpop.f32.mrb[94].mxu0 }
 0x87e   : > { %6447 = vmatmul.mubr.bf16.vlgmr.msra.gmra.mrb[68].mxu1 %v3349_v42  ;;  %6467 = vmatmul.mubr.bf16.vlgmr.msra.gmra.mrb[96].mxu0 %v3287_v40  ;;  %v6429_v47 = vpop.f32.mrb[67].mxu1  ;;  %v6423_v50 = vpop.f32.mrb[95].mxu0  ;;  %v6921_v40 = vld [vmem:[%s8539_s7 + $0x178] sm:$0xff]  }
 0x87f   : > { %6471 = vmatpush3.bf16.msra.mxu1 %v8102_v23  ;;  %6497 = vmatpush3.bf16.msra.mxu0 %v8102_v23 }
 0x880   : > { %6472 = vmatprep.mubr.msk.bf16.mxu1 %vm7011_vm0, %v7010_v31  ;;  %6498 = vmatprep.mubr.msk.bf16.mxu0 %vm7011_vm0, %v7010_v31 }
 0x881   : > { %6476 = vmatprep.subr.bf16.mxu1 %v7010_v31  ;;  %6502 = vmatprep.subr.bf16.mxu0 %v7010_v31 }
 0x886   : > { %6473 = vmatmul.mubr.msk.bf16.vlgmr.msra.gmra.mrb[72].mxu1 %vm3243_vm3, %v5194_v36  ;;  %6499 = vmatmul.mubr.msk.bf16.vlgmr.msra.gmra.mrb[100].mxu0 %vm3243_vm3, %v5220_v51 }
 0x887   : > { %6477 = vmatpush3.bf16.msra.mxu1 %v6890_v52  ;;  %6503 = vmatpush3.bf16.msra.mxu0 %v6891_v53 }
 0x888   : > { %6478 = vmatprep.subr.bf16.mxu1 %v7010_v31  ;;  %6504 = vmatprep.subr.bf16.mxu0 %v7010_v31 }
 0x889   : > { %6492 = vmatprep.mubr.msk.bf16.mxu1 %vm7011_vm0, %v7010_v31  ;;  %6518 = vmatprep.mubr.msk.bf16.mxu0 %vm7011_vm0, %v7010_v31 }
 0x88b   : > { %6479 = vmatpush3.bf16.msra.mxu1 %v6892_v54  ;;  %6505 = vmatpush3.bf16.msra.mxu0 %v6893_v55 }
 0x88c   : > { %6480 = vmatprep.subr.bf16.mxu1 %v7010_v31  ;;  %6506 = vmatprep.subr.bf16.mxu0 %v7010_v31 }
 0x88f   : > { %6481 = vmatpush3.bf16.msra.mxu1 %v6894_v56  ;;  %6507 = vmatpush3.bf16.msra.mxu0 %v6895_v57 }
 0x890   : > { %6482 = vmatprep.subr.bf16.mxu1 %v7010_v31  ;;  %6508 = vmatprep.subr.bf16.mxu0 %v7010_v31 }
 0x893   : > { %6483 = vmatpush3.bf16.msra.mxu1 %v6896_v58  ;;  %6509 = vmatpush3.bf16.msra.mxu0 %v6897_v60 }
 0x894   : > { %6484 = vmatprep.subr.bf16.mxu1 %v7010_v31  ;;  %6510 = vmatprep.subr.bf16.mxu0 %v7010_v31 }
 0x897   : > { %6485 = vmatpush3.bf16.msra.mxu1 %v6898_v61  ;;  %6511 = vmatpush3.bf16.msra.mxu0 %v6899_v62 }
 0x898   : > { %6486 = vmatprep.subr.bf16.mxu1 %v7010_v31  ;;  %6512 = vmatprep.subr.bf16.mxu0 %v7010_v31 }
 0x89b   : > { %6487 = vmatpush3.bf16.msra.mxu1 %v6900_v63  ;;  %6513 = vmatpush3.bf16.msra.mxu0 %v6901_v0  ;;  %v5298_v0 = vld [vmem:[%s8538_s6 + $0xc] sm:$0x3] }
 0x89c   : > { %6488 = vmatprep.subr.bf16.mxu1 %v7010_v31  ;;  %6514 = vmatprep.subr.bf16.mxu0 %v7010_v31 }
 0x89f   : > { %6489 = vmatpush3.bf16.msra.mxu1 %v6902_v1  ;;  %6515 = vmatpush3.bf16.msra.mxu0 %v6903_v2  ;;  %v5324_v1 = vld [vmem:[%s8538_s6 + $0xe] sm:$0x3]  ;;  %v6922_v2 = vld [vmem:[%s8539_s7 + $0x180] sm:$0xff]  }
 0x8a0   : > { %6490 = vmatprep.subr.bf16.mxu1 %v7010_v31  ;;  %6516 = vmatprep.subr.bf16.mxu0 %v7010_v31 }
 0x8a3   : > { %6491 = vmatpush3.bf16.msra.mxu1 %v6904_v3  ;;  %6517 = vmatpush3.bf16.msra.mxu0 %v6905_v4  ;;  %v6923_v3 = vld [vmem:[%s8539_s7 + $0x1c0] sm:$0xff]   ;;  %v6924_v4 = vld [vmem:[%s8539_s7 + $0x188] sm:$0xff]  }
 0x8a4   : > { %6522 = vmatprep.subr.bf16.mxu1 %v7010_v31  ;;  %6548 = vmatprep.subr.bf16.mxu0 %v7010_v31 }
 0x951   : > { %v3449_v5 = vpop.f32.mrb[68].mxu1  ;;  %v3537_v7 = vpop.f32.mrb[96].mxu0 }
 0x952   : > { %v6448_v8 = vpop.f32.mrb[69].mxu1  ;;  %v8268_v9 = vadd.f32 %v3537_v7, %v3449_v5  ;;  %v6468_v10 = vpop.f32.mrb[97].mxu0  ;;  %v6925_v5 = vld [vmem:[%s8539_s7 + $0x1c8] sm:$0xff]   ;;  %v6926_v7 = vld [vmem:[%s8539_s7 + $0x190] sm:$0xff]  }
 0x953   : > { %v3452_v11 = vpop.f32.mrb[70].mxu1  ;;  %v3540_v12 = vpop.f32.mrb[98].mxu0  ;;  %v6927_v8 = vld [vmem:[%s8539_s7 + $0x1d0] sm:$0xff]   ;;  %v6929_v10 = vld [vmem:[%s8539_s7 + $0x1d8] sm:$0xff]  }
 0x954   : > { %v6449_v13 = vpop.f32.mrb[71].mxu1  ;;  %v6469_v14 = vpop.f32.mrb[99].mxu0  ;;  %v6930_v11 = vld [vmem:[%s8539_s7 + $0x1a0] sm:$0xff]  }
 0x955   : > { %v6931_v12 = vld [vmem:[%s8539_s7 + $0x1e0] sm:$0xff]   ;;  %v6932_v13 = vld [vmem:[%s8539_s7 + $0x1a8] sm:$0xff]  }
 0x956   : > { %v6933_v14 = vld [vmem:[%s8539_s7 + $0x1e8] sm:$0xff]  }
 0x959   : > { %v3582_v15 = vpop.f32.mrb[72].mxu1  ;;  %v3734_v16 = vpop.f32.mrb[100].mxu0 }
 0x95a   : > { %v3588_v18 = vpack.c.bf16 %v3582_v15, %v3582_v15  ;;  %v3740_v19 = vpack.c.bf16 %v3734_v16, %v3734_v16  ;;  %v6474_v20 = vpop.f32.mrb[73].mxu1  ;;  %v6500_v21 = vpop.f32.mrb[101].mxu0  ;;  %v6934_v15 = vld [vmem:[%s8539_s7 + $0x1b0] sm:$0xff]  }
 0x95b   : > { %v3585_v22 = vpop.f32.mrb[74].mxu1  ;;  %v3737_v24 = vpop.f32.mrb[102].mxu0  ;;  %v6935_v16 = vld [vmem:[%s8539_s7 + $0x1f0] sm:$0xff]  }
 0x95c   : > { %6493 = vmatmul.mubr.bf16.vlgmr.msra.gmra.mrb[76].mxu1 %v3588_v18  ;;  %6519 = vmatmul.mubr.bf16.vlgmr.msra.gmra.mrb[104].mxu0 %v3740_v19  ;;  %v6475_v25 = vpop.f32.mrb[75].mxu1  ;;  %v6501_v26 = vpop.f32.mrb[103].mxu0  ;;  %v6936_v18 = vld [vmem:[%s8539_s7 + $0x1b8] sm:$0xff]  }
 0x95d   : > { %6523 = vmatpush3.bf16.msra.mxu1 %v8102_v23  ;;  %6549 = vmatpush3.bf16.msra.mxu0 %v8102_v23  ;;  %v6937_v19 = vld [vmem:[%s8539_s7 + $0x1f8] sm:$0xff]  }
 0x95e   : > { %6524 = vmatprep.mubr.msk.bf16.mxu1 %vm7011_vm0, %v7010_v31  ;;  %6550 = vmatprep.mubr.msk.bf16.mxu0 %vm7011_vm0, %v7010_v31 }
 0x95f   : > { %6528 = vmatprep.subr.bf16.mxu1 %v7010_v31  ;;  %6554 = vmatprep.subr.bf16.mxu0 %v7010_v31 }
 0x964   : > { %6525 = vmatmul.mubr.msk.bf16.vlgmr.msra.gmra.mrb[80].mxu1 %vm3243_vm3, %v5246_v27  ;;  %6551 = vmatmul.mubr.msk.bf16.vlgmr.msra.gmra.mrb[108].mxu0 %vm3243_vm3, %v5272_v29 }
 0x965   : > { %6529 = vmatpush3.bf16.msra.mxu1 %v6906_v48  ;;  %6555 = vmatpush3.bf16.msra.mxu0 %v6907_v59 }
 0x966   : > { %6530 = vmatprep.subr.bf16.mxu1 %v7010_v31  ;;  %6556 = vmatprep.subr.bf16.mxu0 %v7010_v31 }
 0x967   : > { %6544 = vmatprep.mubr.msk.bf16.mxu1 %vm7011_vm0, %v7010_v31  ;;  %6570 = vmatprep.mubr.msk.bf16.mxu0 %vm7011_vm0, %v7010_v31 }
 0x969   : > { %6531 = vmatpush3.bf16.msra.mxu1 %v6908_v6  ;;  %6557 = vmatpush3.bf16.msra.mxu0 %v6909_v17 }
 0x96a   : > { %6532 = vmatprep.subr.bf16.mxu1 %v7010_v31  ;;  %6558 = vmatprep.subr.bf16.mxu0 %v7010_v31 }
 0x96d   : > { %6533 = vmatpush3.bf16.msra.mxu1 %v6910_v28  ;;  %6559 = vmatpush3.bf16.msra.mxu0 %v6911_v41 }
 0x96e   : > { %6534 = vmatprep.subr.bf16.mxu1 %v7010_v31  ;;  %6560 = vmatprep.subr.bf16.mxu0 %v7010_v31 }
 0x971   : > { %6535 = vmatpush3.bf16.msra.mxu1 %v6912_v49  ;;  %6561 = vmatpush3.bf16.msra.mxu0 %v6913_v30 }
 0x972   : > { %6536 = vmatprep.subr.bf16.mxu1 %v7010_v31  ;;  %6562 = vmatprep.subr.bf16.mxu0 %v7010_v31 }
 0x975   : > { %6537 = vmatpush3.bf16.msra.mxu1 %v6914_v32  ;;  %6563 = vmatpush3.bf16.msra.mxu0 %v6915_v33 }
 0x976   : > { %6538 = vmatprep.subr.bf16.mxu1 %v7010_v31  ;;  %6564 = vmatprep.subr.bf16.mxu0 %v7010_v31 }
 0x979   : > { %6539 = vmatpush3.bf16.msra.mxu1 %v6916_v35  ;;  %6565 = vmatpush3.bf16.msra.mxu0 %v6917_v39 }
 0x97a   : > { %6540 = vmatprep.subr.bf16.mxu1 %v7010_v31  ;;  %6566 = vmatprep.subr.bf16.mxu0 %v7010_v31 }
 0x97d   : > { %6541 = vmatpush3.bf16.msra.mxu1 %v6918_v34  ;;  %6567 = vmatpush3.bf16.msra.mxu0 %v6919_v37  ;;  %v5350_v34 = vld [vmem:[%s8538_s6 + $0x10] sm:$0x3]  ;;  %v6938_v37 = vld [vmem:[%s8539_s7 + $0x200] sm:$0xff]  }
 0x97e   : > { %6542 = vmatprep.subr.bf16.mxu1 %v7010_v31  ;;  %6568 = vmatprep.subr.bf16.mxu0 %v7010_v31 }
 0x981   : > { %6543 = vmatpush3.bf16.msra.mxu1 %v6920_v38  ;;  %6569 = vmatpush3.bf16.msra.mxu0 %v6921_v40  ;;  %v6940_v38 = vld [vmem:[%s8539_s7 + $0x210] sm:$0xff]   ;;  %v6941_v40 = vld [vmem:[%s8539_s7 + $0x218] sm:$0xff]  }
 0x982   : > { %6574 = vmatprep.subr.bf16.mxu1 %v7010_v31  ;;  %6600 = vmatprep.subr.bf16.mxu0 %v7010_v31 }
 0xa2f   : > { %v3688_v42 = vpop.f32.mrb[76].mxu1  ;;  %v3840_v43 = vpop.f32.mrb[104].mxu0 }
 0xa30   : > { %v3694_v44 = vadd.f32 %v3688_v42, %v8268_v9  ;;  %v6494_v45 = vpop.f32.mrb[77].mxu1  ;;  %v6520_v46 = vpop.f32.mrb[105].mxu0  ;;  %v6928_v9 = vld [vmem:[%s8539_s7 + $0x198] sm:$0xff]   ;;  %v6942_v42 = vld [vmem:[%s8539_s7 + $0x220] sm:$0xff]  }
 0xa31   : > { %v3691_v47 = vpop.f32.mrb[78].mxu1  ;;  %v3843_v50 = vpop.f32.mrb[106].mxu0  ;;  %v6945_v45 = vld [vmem:[%s8539_s7 + $0x238] sm:$0xff]  }
 0xa32   : > { %v8355_v36 = vadd.f32 %v3840_v43, %v3694_v44  ;;  %v6495_v51 = vpop.f32.mrb[79].mxu1  ;;  %v6521_v52 = vpop.f32.mrb[107].mxu0  ;;  %v6943_v43 = vld [vmem:[%s8539_s7 + $0x228] sm:$0xff]   ;;  %v6944_v44 = vld [vmem:[%s8539_s7 + $0x230] sm:$0xff]  }
 0xa37   : > { %v3886_v53 = vpop.f32.mrb[80].mxu1  ;;  %v4038_v54 = vpop.f32.mrb[108].mxu0 }
 0xa38   : > { %v3892_v55 = vpack.c.bf16 %v3886_v53, %v3886_v53  ;;  %v4044_v56 = vpack.c.bf16 %v4038_v54, %v4038_v54  ;;  %v6526_v57 = vpop.f32.mrb[81].mxu1  ;;  %v6552_v58 = vpop.f32.mrb[109].mxu0 }
 0xa39   : > { %v3889_v60 = vpop.f32.mrb[82].mxu1  ;;  %v4041_v61 = vpop.f32.mrb[110].mxu0 }
 0xa3a   : > { %6545 = vmatmul.mubr.bf16.vlgmr.msra.gmra.mrb[84].mxu1 %v3892_v55  ;;  %6571 = vmatmul.mubr.bf16.vlgmr.msra.gmra.mrb[112].mxu0 %v4044_v56  ;;  %v6527_v62 = vpop.f32.mrb[83].mxu1  ;;  %v6553_v63 = vpop.f32.mrb[111].mxu0 }
 0xa3b   : > { %6575 = vmatpush3.bf16.msra.mxu1 %v8102_v23  ;;  %6601 = vmatpush3.bf16.msra.mxu0 %v8102_v23  ;;  %v5376_v63 = vld [vmem:[%s8540_s8] ss:$0 sm:$0xff] }
 0xa3c   : > { %6576 = vmatprep.mubr.msk.bf16.mxu1 %vm7011_vm0, %v7010_v31  ;;  %6602 = vmatprep.mubr.msk.bf16.mxu0 %vm7011_vm0, %v7010_v31 }
 0xa3d   : > { %6580 = vmatprep.subr.bf16.mxu1 %v7010_v31  ;;  %6606 = vmatprep.subr.bf16.mxu0 %v7010_v31 }
 0xa42   : > { %6577 = vmatmul.mubr.msk.bf16.vlgmr.msra.gmra.mrb[88].mxu1 %vm3243_vm3, %v5298_v0  ;;  %6603 = vmatmul.mubr.msk.bf16.vlgmr.msra.gmra.mrb[116].mxu0 %vm3243_vm3, %v5324_v1 }
 0xa43   : > { %6581 = vmatpush3.bf16.msra.mxu1 %v6922_v2  ;;  %6607 = vmatpush3.bf16.msra.mxu0 %v6923_v3 }
 0xa44   : > { %6582 = vmatprep.subr.bf16.mxu1 %v7010_v31  ;;  %6608 = vmatprep.subr.bf16.mxu0 %v7010_v31 }
 0xa45   : > { %6596 = vmatprep.mubr.msk.bf16.mxu1 %vm7011_vm0, %v7010_v31  ;;  %6622 = vmatprep.mubr.msk.bf16.mxu0 %vm7011_vm0, %v7010_v31 }
 0xa47   : > { %6583 = vmatpush3.bf16.msra.mxu1 %v6924_v4  ;;  %6609 = vmatpush3.bf16.msra.mxu0 %v6925_v5 }
 0xa48   : > { %6584 = vmatprep.subr.bf16.mxu1 %v7010_v31  ;;  %6610 = vmatprep.subr.bf16.mxu0 %v7010_v31 }
 0xa4b   : > { %6585 = vmatpush3.bf16.msra.mxu1 %v6926_v7  ;;  %6611 = vmatpush3.bf16.msra.mxu0 %v6927_v8 }
 0xa4c   : > { %6586 = vmatprep.subr.bf16.mxu1 %v7010_v31  ;;  %6612 = vmatprep.subr.bf16.mxu0 %v7010_v31 }
 0xa4f   : > { %6587 = vmatpush3.bf16.msra.mxu1 %v6928_v9  ;;  %6613 = vmatpush3.bf16.msra.mxu0 %v6929_v10 }
 0xa50   : > { %6588 = vmatprep.subr.bf16.mxu1 %v7010_v31  ;;  %6614 = vmatprep.subr.bf16.mxu0 %v7010_v31 }
 0xa53   : > { %6589 = vmatpush3.bf16.msra.mxu1 %v6930_v11  ;;  %6615 = vmatpush3.bf16.msra.mxu0 %v6931_v12 }
 0xa54   : > { %6590 = vmatprep.subr.bf16.mxu1 %v7010_v31  ;;  %6616 = vmatprep.subr.bf16.mxu0 %v7010_v31 }
 0xa57   : > { %6591 = vmatpush3.bf16.msra.mxu1 %v6932_v13  ;;  %6617 = vmatpush3.bf16.msra.mxu0 %v6933_v14 }
 0xa58   : > { %6592 = vmatprep.subr.bf16.mxu1 %v7010_v31  ;;  %6618 = vmatprep.subr.bf16.mxu0 %v7010_v31 }
 0xa5b   : > { %6593 = vmatpush3.bf16.msra.mxu1 %v6934_v15  ;;  %6619 = vmatpush3.bf16.msra.mxu0 %v6935_v16 }
 0xa5c   : > { %6594 = vmatprep.subr.bf16.mxu1 %v7010_v31  ;;  %6620 = vmatprep.subr.bf16.mxu0 %v7010_v31 }
 0xa5f   : > { %6595 = vmatpush3.bf16.msra.mxu1 %v6936_v18  ;;  %6621 = vmatpush3.bf16.msra.mxu0 %v6937_v19 }
 0xa60   : > { %6626 = vmatprep.subr.bf16.mxu1 %v7010_v31 }
 0xb0d   : > { %v3992_v20 = vpop.f32.mrb[84].mxu1  ;;  %v4144_v21 = vpop.f32.mrb[112].mxu0 }
 0xb0e   : > { %v3998_v22 = vadd.f32 %v3992_v20, %v8355_v36  ;;  %v6546_v24 = vpop.f32.mrb[85].mxu1  ;;  %v6572_v25 = vpop.f32.mrb[113].mxu0 }
 0xb0f   : > { %v3995_v26 = vpop.f32.mrb[86].mxu1  ;;  %v4147_v27 = vpop.f32.mrb[114].mxu0 }
 0xb10   : > { %v4150_v29 = vadd.f32 %v4144_v21, %v3998_v22  ;;  %v6547_v48 = vpop.f32.mrb[87].mxu1  ;;  %v6573_v59 = vpop.f32.mrb[115].mxu0 }
 0xb15   : > { %v4190_v6 = vpop.f32.mrb[88].mxu1  ;;  %v4342_v17 = vpop.f32.mrb[116].mxu0 }
 0xb16   : > { %v4196_v28 = vpack.c.bf16 %v4190_v6, %v4190_v6  ;;  %v4348_v41 = vpack.c.bf16 %v4342_v17, %v4342_v17  ;;  %v6578_v49 = vpop.f32.mrb[89].mxu1  ;;  %v6604_v30 = vpop.f32.mrb[117].mxu0 }
 0xb17   : > { %v4193_v32 = vpop.f32.mrb[90].mxu1  ;;  %v4345_v33 = vpop.f32.mrb[118].mxu0 }
 0xb18   : > { %6597 = vmatmul.mubr.bf16.vlgmr.msra.gmra.mrb[92].mxu1 %v4196_v28  ;;  %v6579_v35 = vpop.f32.mrb[91].mxu1  ;;  %6623 = vmatmul.mubr.bf16.vlgmr.msra.gmra.mrb[120].mxu0 %v4348_v41  ;;  %v6605_v39 = vpop.f32.mrb[119].mxu0 }
 0xb19   : > { %6627 = vmatpush3.bf16.msra.mxu1 %v8102_v23  ;;  %6628 = vmatprep.mubr.msk.bf16.mxu1 %vm7011_vm0, %v7010_v31  ;;  %v6939_v23 = vld [vmem:[%s8539_s7 + $0x208] sm:$0xff]  }
 0xb1a   : > { %6632 = vmatprep.subr.bf16.mxu1 %v7010_v31 }
 0xb20   : > { %6629 = vmatmul.mubr.msk.bf16.vlgmr.msra.gmra.mrb[96].mxu1 %vm3243_vm3, %v5350_v34 }
 0xb21   : > { %6633 = vmatpush3.bf16.msra.mxu1 %v6938_v37  ;;  %6648 = vmatprep.mubr.msk.bf16.mxu1 %vm7011_vm0, %v7010_v31 }
 0xb22   : > { %6634 = vmatprep.subr.bf16.mxu1 %v7010_v31 }
 0xb25   : > { %6635 = vmatpush3.bf16.msra.mxu1 %v6939_v23 }
 0xb26   : > { %6636 = vmatprep.subr.bf16.mxu1 %v7010_v31 }
 0xb29   : > { %6637 = vmatpush3.bf16.msra.mxu1 %v6940_v38 }
 0xb2a   : > { %6638 = vmatprep.subr.bf16.mxu1 %v7010_v31 }
 0xb2d   : > { %6639 = vmatpush3.bf16.msra.mxu1 %v6941_v40 }
 0xb2e   : > { %6640 = vmatprep.subr.bf16.mxu1 %v7010_v31 }
 0xb31   : > { %6641 = vmatpush3.bf16.msra.mxu1 %v6942_v42 }
 0xb32   : > { %6642 = vmatprep.subr.bf16.mxu1 %v7010_v31 }
 0xb35   : > { %6643 = vmatpush3.bf16.msra.mxu1 %v6943_v43 }
 0xb36   : > { %6644 = vmatprep.subr.bf16.mxu1 %v7010_v31 }
 0xb39   : > { %6645 = vmatpush3.bf16.msra.mxu1 %v6944_v44 }
 0xb3a   : > { %6646 = vmatprep.subr.bf16.mxu1 %v7010_v31 }
 0xb3d   : > { %6647 = vmatpush3.bf16.msra.mxu1 %v6945_v45 }
 0xbeb   : > { %v4296_v46 = vpop.f32.mrb[92].mxu1  ;;  %v4448_v47 = vpop.f32.mrb[120].mxu0 }
 0xbec   : > { %v4302_v50 = vadd.f32 %v4296_v46, %v4150_v29  ;;  %v6598_v36 = vpop.f32.mrb[93].mxu1  ;;  %v6624_v51 = vpop.f32.mrb[121].mxu0 }
 0xbed   : > { %v4299_v52 = vpop.f32.mrb[94].mxu1  ;;  %v4451_v53 = vpop.f32.mrb[122].mxu0 }
 0xbee   : > { %v4454_v54 = vadd.f32 %v4448_v47, %v4302_v50  ;;  %v6599_v55 = vpop.f32.mrb[95].mxu1  ;;  %v6625_v56 = vpop.f32.mrb[123].mxu0 }
 0xbf3   : > { %v4494_v57 = vpop.f32.mrb[96].mxu1 }
 0xbf4   : > { %v4500_v58 = vpack.c.bf16 %v4494_v57, %v4494_v57  ;;  %v6630_v31 = vpop.f32.mrb[97].mxu1 }
 0xbf5   : > { %v4497_v60 = vpop.f32.mrb[98].mxu1 }
 0xbf6   : > { %6649 = vmatmul.mubr.bf16.vlgmr.msra.gmra.mrb[100].mxu1 %v4500_v58  ;;  %v6631_v61 = vpop.f32.mrb[99].mxu1 }
 0xcc9   : > { %v4600_v62 = vpop.f32.mrb[100].mxu1 }
 0xcca   : > { %v4606_v0 = vadd.f32 %v4600_v62, %v4454_v54  ;;  %v6650_v1 = vpop.f32.mrb[101].mxu1 }
 0xccb   : > { %v4603_v2 = vpop.f32.mrb[102].mxu1 }
 0xccc   : > { %v4614_v3 = vadd.f32 %v5376_v63, %v4606_v0  ;;  %v6651_v4 = vpop.f32.mrb[103].mxu1 }
 0xcce   : > { %v4615_v5 = vmax.f32 %v4614_v3, 0.0 }
 0xcd0   : > { %4617 = vst.msk [vmem:[%s325_s26] sm:$0xf] %vm4616_vm4, %v4615_v5 }
 0xcd1   : > { %6959 = shalt.err (!%p6956_p3)
}
 0xcd2   : > { %s6960_s22 = scalar_lea.hbm %s8490_s29, 64  ;;  %s6964_s26 = scalar_lea.hbm %s8541_s9, 128 }
 0xcd3   : > { %p6961_p4 = scmp.ne.s32.totalorder %s8490_s29, %s6960_s22  ;;  %p6965_p9 = scmp.lt.u32.totalorder %s8490_s29, %s8541_s9 }
 0xcd4   : > { %p6966_p10 = scmp.lt.u32.totalorder %s6964_s26, %s6960_s22  ;;  %p6968_p12 = scmp.lt.u32.totalorder %s6960_s22, %s8490_s29 }
 0xcd5   : > { %p6962_p7 = pnand %p6961_p4, %p7101_p5 }
 0xcd6   : > { %p6967_p11 = por %p6966_p10, %p6965_p9 }
 0xcd7   : > { %p6963_p8 = pneg %p6962_p7 }
 0xcd8   : > { %p6969_p13 = por %p6968_p12, %p6967_p11 }
 0xcda   : > { %p6970_p0 = pnand %p6969_p13, %p6963_p8 }
 0xcdc   : > { %6973 = shalt.err (!%p6970_p0)
}
 0xcdd   : > { %6653 = dma.vmem_to_hbm [thread:$0]  (%p7101_p5), %s8492_s24, 64, %s8490_s29, %s4619_s14  }
 0xcde PF: > { %p6659_p1 = scmp.ge.s32.totalorder %s7008_s12, 2  ;;  %s4644_s21 = sand.u32 1, %s6996_s30  }
 0xcdf   : > { %s4645_s13 = scalar_lea.sflag [#allocation3], %s4644_s21 }
 0xce0   : > { %p6656_p2 = pnand %p6659_p1, %p7105_p6 }
 0xce2   : > { %6991 = dma.done.wait (!%p6656_p2), %s4645_s13, 64  }
 0xce3   : > { %6993 = vsyncadd (!%p6656_p2), %s4645_s13, 4294967232  ;;  %p19_p3 = scmp.ge.s32.totalorder %s7088_s15, 4   ;;  %s8544_s30 = smov %s7000_s10 }
 0xce4   : > { %s8545_s10 = smov %s7004_s11  ;;  %s8546_s11 = smov %s7099_s18 }
 0xce5   : > { %s8547_s12 = smov %s7088_s15  ;;  %21 = sbr.rel (!%p19_p3) target bundleno = 3 (0x3), region = 137 }
 0xcec   :  { %4650 = vsyncpa [#allocation3], 1 }
 0xced   :  { %4652 = vsyncpa [#allocation3 + $0x1], 1 }

</bundles_post_ra>
